<compile_context>
chip_gen: v6e
topology: v6e:2x2x1
jax: 0.10.0
libtpu: 0.0.40
codegen_flags: <defaults>
</compile_context>

<pallas_src>
import functools

import jax
import jax.numpy as jnp
from jax.experimental import pallas as pl
from jax.experimental.pallas import tpu as pltpu


def _round_up(x, m):
    return ((x + m - 1) // m) * m


# ----------------------------- Pallas kernels ------------------------------

def _conv_mm_kernel(p_ref, w_ref, s_ref, t_ref, o_ref, *, leaky):
    """Lane-dense transposed conv GEMM tile.

    o[Cout, TILE_M] = W[Cout, Kp] @ P[Kp, TILE_M]  (bf16 x bf16 -> f32 accumulate),
    then per-channel affine (bias / eval-BatchNorm) and optional LeakyReLU(0.2).
    Output last dim is TILE_M (multiple of 128) -> unmasked vector stores.
    """
    y = jnp.dot(w_ref[...], p_ref[...], preferred_element_type=jnp.float32)
    y = y * s_ref[...] + t_ref[...]
    if leaky:
        y = jnp.where(y >= 0.0, y, 0.2 * y)
    o_ref[...] = y.astype(o_ref.dtype)


def _attn_kernel(x_ref, w_ref, b_ref, g_ref, o_ref, *, sec, c):
    """SAGAN-style self-attention for one batch element.

    x: [N, C].  q/k/v projections are fused into one GEMM against a lane-padded
    weight [C, 3*sec] (sections at 0, sec, 2*sec; padded columns are zero so they
    contribute nothing to the energy / value matmuls).
    """
    x = x_ref[0]                                                       # [N, C]
    qkv = jnp.dot(x.astype(jnp.bfloat16), w_ref[...],
                  preferred_element_type=jnp.float32) + b_ref[...]     # [N, 3*sec]
    q = qkv[:, 0:sec]
    k = qkv[:, sec:2 * sec]
    v = qkv[:, 2 * sec:3 * sec]
    energy = jnp.dot(q, k.T, preferred_element_type=jnp.float32)       # [N, N]
    energy = energy - jnp.max(energy, axis=-1, keepdims=True)
    p = jnp.exp(energy)
    attn = p * pl.reciprocal(jnp.sum(p, axis=-1, keepdims=True), approx=True)
    out = jnp.dot(attn, v, preferred_element_type=jnp.float32)         # [N, sec]
    o_ref[0] = (g_ref[0, 0] * out[:, 0:c] + x.astype(jnp.float32)).astype(o_ref.dtype)


# ------------------------------- JAX glue ----------------------------------

def _im2col_3d_T(x_cf, ksize, stride, pad):
    """x_cf: [C, B, D, H, W] -> patches_T [C*kd*kh*kw, B*Do*Ho*Wo] (K-major layout)."""
    C, B, D, H, W = x_cf.shape
    kd, kh, kw = ksize
    sd, sh, sw = stride
    xp = jnp.pad(x_cf, ((0, 0), (0, 0), (pad, pad), (pad, pad), (pad, pad)))
    Dp, Hp, Wp = D + 2 * pad, H + 2 * pad, W + 2 * pad
    Do = (Dp - kd) // sd + 1
    Ho = (Hp - kh) // sh + 1
    Wo = (Wp - kw) // sw + 1
    cols = []
    for zd in range(kd):
        for zh in range(kh):
            for zw in range(kw):
                cols.append(xp[:, :,
                               zd:zd + sd * Do:sd,
                               zh:zh + sh * Ho:sh,
                               zw:zw + sw * Wo:sw])
    cols = jnp.stack(cols, axis=1)                            # [C, kk, B, Do, Ho, Wo]
    cols = cols.reshape(C * kd * kh * kw, B * Do * Ho * Wo)   # [K, M]
    return cols, (Do, Ho, Wo)


def conv3d_bn_lrelu(x_cf, weight, scale, shift, *, stride, leaky, out_dtype):
    """Conv3d (cross-correlation, pad=1) + per-channel affine + optional LeakyReLU(0.2).

    x_cf:   [Cin, B, D, H, W]  (channels-major layout kept between layers)
    weight: [Cout, Cin, kd, kh, kw] (PyTorch layout)
    return: [Cout, B, Do, Ho, Wo] in out_dtype
    """
    Cout, Cin, kd, kh, kw = weight.shape
    B = x_cf.shape[1]
    patches_T, (Do, Ho, Wo) = _im2col_3d_T(x_cf.astype(jnp.bfloat16),
                                           (kd, kh, kw), stride, 1)
    K, M = patches_T.shape
    K_pad = _round_up(K, 128)                     # fill MXU contraction, aligned loads
    TILE_M = 512 if M >= 512 else _round_up(M, 128)
    num_m = pl.cdiv(M, TILE_M)
    M_pad = num_m * TILE_M
    patches_T = jnp.pad(patches_T, ((0, K_pad - K), (0, M_pad - M)))
    w_mat = jnp.pad(weight.reshape(Cout, K).astype(jnp.bfloat16),
                    ((0, 0), (0, K_pad - K)))

    y = pl.pallas_call(
        functools.partial(_conv_mm_kernel, leaky=leaky),
        out_shape=jax.ShapeDtypeStruct((Cout, M_pad), out_dtype),
        grid=(num_m,),
        in_specs=[
            pl.BlockSpec((K_pad, TILE_M), lambda i: (0, i)),   # patches tile (pipelined)
            pl.BlockSpec((Cout, K_pad), lambda i: (0, 0)),     # weights (resident)
            pl.BlockSpec((Cout, 1), lambda i: (0, 0)),         # scale
            pl.BlockSpec((Cout, 1), lambda i: (0, 0)),         # shift
        ],
        out_specs=pl.BlockSpec((Cout, TILE_M), lambda i: (0, i)),
        compiler_params=pltpu.CompilerParams(
            dimension_semantics=("parallel",),
            vmem_limit_bytes=32 * 1024 * 1024),
    )(patches_T, w_mat,
      scale.reshape(Cout, 1).astype(jnp.float32),
      shift.reshape(Cout, 1).astype(jnp.float32))
    return y[:, :M].reshape(Cout, B, Do, Ho, Wo)


def sba_attention(x_cf, wq, bq, wk, bk, wv, bv, gamma, out_dtype):
    """SBA_Block_3D: self-attention over the D*H*W positions of each batch element."""
    C, B, D, H, W = x_cf.shape
    N = D * H * W
    Cq = wq.shape[0]
    SEC = _round_up(max(C, Cq), 128)              # lane-group aligned q/k/v sections
    x_bnc = x_cf.reshape(C, B, N).transpose(1, 2, 0)          # [B, N, C] (tiny)

    wq_m = wq.reshape(Cq, C).T
    wk_m = wk.reshape(Cq, C).T
    wv_m = wv.reshape(C, C).T
    w_qkv = jnp.zeros((C, 3 * SEC), jnp.float32)
    w_qkv = w_qkv.at[:, 0:Cq].set(wq_m)
    w_qkv = w_qkv.at[:, SEC:SEC + Cq].set(wk_m)
    w_qkv = w_qkv.at[:, 2 * SEC:2 * SEC + C].set(wv_m)
    b_qkv = jnp.zeros((1, 3 * SEC), jnp.float32)
    b_qkv = b_qkv.at[0, 0:Cq].set(bq)
    b_qkv = b_qkv.at[0, SEC:SEC + Cq].set(bk)
    b_qkv = b_qkv.at[0, 2 * SEC:2 * SEC + C].set(bv)

    y = pl.pallas_call(
        functools.partial(_attn_kernel, sec=SEC, c=C),
        out_shape=jax.ShapeDtypeStruct((B, N, C), out_dtype),
        grid=(B,),
        in_specs=[
            pl.BlockSpec((1, N, C), lambda b: (b, 0, 0)),
            pl.BlockSpec((C, 3 * SEC), lambda b: (0, 0)),
            pl.BlockSpec((1, 3 * SEC), lambda b: (0, 0)),
            pl.BlockSpec((1, 1), lambda b: (0, 0)),
        ],
        out_specs=pl.BlockSpec((1, N, C), lambda b: (b, 0, 0)),
        compiler_params=pltpu.CompilerParams(dimension_semantics=("parallel",)),
    )(x_bnc, w_qkv.astype(jnp.bfloat16), b_qkv,
      gamma.reshape(1, 1).astype(jnp.float32))
    return y.transpose(2, 0, 1).reshape(C, B, D, H, W)


# ------------------------ parameters & forward pass -------------------------

def init_params(key, input_nc=2, ndf=8, n_layers=3):
    def normal(k, shape, std=0.02):
        return std * jax.random.normal(k, shape, jnp.float32)

    keys = iter(jax.random.split(key, 64))
    kw = (3, 4, 4)
    p = {}
    # first conv (has bias, no norm)
    p["conv0_w"] = normal(next(keys), (ndf, input_nc) + kw)
    p["conv0_b"] = normal(next(keys), (ndf,))
    # strided convs with BatchNorm3d (no conv bias since norm is BatchNorm3d)
    nf_mult = 1
    for n in range(1, n_layers):
        nf_prev, nf_mult = nf_mult, min(2 ** n, 8)
        cin, cout = ndf * nf_prev, ndf * nf_mult
        p[f"conv{n}_w"] = normal(next(keys), (cout, cin) + kw)
        p[f"bn{n}_gamma"] = 1.0 + normal(next(keys), (cout,))
        p[f"bn{n}_beta"] = normal(next(keys), (cout,))
        p[f"bn{n}_mean"] = normal(next(keys), (cout,))
        p[f"bn{n}_var"] = jax.random.uniform(next(keys), (cout,), jnp.float32, 0.5, 1.5)
    # SBA attention block at ndf * nf_mult channels, reduction ratio 8
    c_att = ndf * nf_mult
    cq = c_att // 8
    p["att_wq"] = normal(next(keys), (cq, c_att, 1, 1, 1))
    p["att_bq"] = normal(next(keys), (cq,))
    p["att_wk"] = normal(next(keys), (cq, c_att, 1, 1, 1))
    p["att_bk"] = normal(next(keys), (cq,))
    p["att_wv"] = normal(next(keys), (c_att, c_att, 1, 1, 1))
    p["att_bv"] = normal(next(keys), (c_att,))
    # PyTorch inits gamma to 0; use a nonzero deterministic value so attention contributes.
    p["att_gamma"] = jnp.array(0.5, jnp.float32)
    # sequence2: stride-1 conv + BN + LeakyReLU, then stride-1 conv to 1 channel
    nf_prev, nf_mult = nf_mult, min(2 ** n_layers, 8)
    cin, cout = ndf * nf_prev, ndf * nf_mult
    p["conv_s2_w"] = normal(next(keys), (cout, cin) + kw)
    p["bn_s2_gamma"] = 1.0 + normal(next(keys), (cout,))
    p["bn_s2_beta"] = normal(next(keys), (cout,))
    p["bn_s2_mean"] = normal(next(keys), (cout,))
    p["bn_s2_var"] = jax.random.uniform(next(keys), (cout,), jnp.float32, 0.5, 1.5)
    p["conv_out_w"] = normal(next(keys), (1, cout) + kw)
    p["conv_out_b"] = normal(next(keys), (1,))
    return p


def _bn_affine(g, b, m, v, eps=1e-5):
    s = g / jnp.sqrt(v + eps)
    return s, b - m * s


def discriminator_forward(params, x, n_layers=3):
    ndf = params["conv0_w"].shape[0]
    # NCDHW -> [C, B, D, H, W]; activations stay channels-major between layers so the
    # [K, M] im2col / [Cout, M] conv output need no per-layer transposes.
    y = jnp.transpose(x, (1, 0, 2, 3, 4))
    # self.model
    y = conv3d_bn_lrelu(y, params["conv0_w"],
                        scale=jnp.ones((ndf,), jnp.float32),
                        shift=params["conv0_b"],
                        stride=(2, 2, 2), leaky=True, out_dtype=jnp.bfloat16)
    for n in range(1, n_layers):
        s, t = _bn_affine(params[f"bn{n}_gamma"], params[f"bn{n}_beta"],
                          params[f"bn{n}_mean"], params[f"bn{n}_var"])
        y = conv3d_bn_lrelu(y, params[f"conv{n}_w"], s, t,
                            stride=(2, 2, 2), leaky=True, out_dtype=jnp.bfloat16)
    # self.model_att1
    y = sba_attention(y, params["att_wq"], params["att_bq"],
                      params["att_wk"], params["att_bk"],
                      params["att_wv"], params["att_bv"], params["att_gamma"],
                      out_dtype=jnp.bfloat16)
    # self.model2
    s, t = _bn_affine(params["bn_s2_gamma"], params["bn_s2_beta"],
                      params["bn_s2_mean"], params["bn_s2_var"])
    y = conv3d_bn_lrelu(y, params["conv_s2_w"], s, t,
                        stride=(1, 1, 1), leaky=True, out_dtype=jnp.bfloat16)
    y = conv3d_bn_lrelu(y, params["conv_out_w"],
                        scale=jnp.ones((1,), jnp.float32),
                        shift=params["conv_out_b"],
                        stride=(1, 1, 1), leaky=False, out_dtype=jnp.float32)
    return jnp.transpose(y, (1, 0, 2, 3, 4))      # back to NCDHW


if __name__ == "__main__":
    key = jax.random.PRNGKey(0)
    k_param, k_x = jax.random.split(key)
    input_nc, ndf, n_layers = 2, 8, 3
    params = init_params(k_param, input_nc=input_nc, ndf=ndf, n_layers=n_layers)
    # NCDHW input; D=16, H=W=32 keeps every intermediate spatial dim >= 1.
    x = jax.random.normal(k_x, (2, input_nc, 16, 32, 32), jnp.float32)
    fwd = jax.jit(functools.partial(discriminator_forward, n_layers=n_layers))
    out = jax.block_until_ready(fwd(params, x))
    assert out.shape == (2, 1, 2, 2, 2), out.shape
    assert bool(jnp.all(jnp.isfinite(out)))
    print("KERNEL_OK")
</pallas_src>

<mosaic_0001>
module attributes {stable_mosaic.version = 11 : i64} {
  func.func @_conv_mm_kernel(%arg0: i32, %arg1: memref<128x512xbf16, #tpu.memory_space<vmem>>, %arg2: memref<8x128xbf16, #tpu.memory_space<vmem>>, %arg3: memref<8x1xf32, #tpu.memory_space<vmem>>, %arg4: memref<8x1xf32, #tpu.memory_space<vmem>>, %arg5: memref<8x512xbf16, #tpu.memory_space<vmem>>) attributes {dimension_semantics = [#tpu.dimension_semantics<parallel>], iteration_bounds = array<i64: 8>, scalar_prefetch = 0 : i64, scratch_operands = 0 : i64, tpu.core_type = #tpu.core_type<tc>, window_params = [{transform_indices = @transform_0, window_bounds = array<i64: 128, 512>}, {pipeline_mode = #tpu.pipeline_mode<synchronous>, transform_indices = @transform_1, window_bounds = array<i64: 8, 128>}, {pipeline_mode = #tpu.pipeline_mode<synchronous>, transform_indices = @transform_2, window_bounds = array<i64: 8, 1>}, {pipeline_mode = #tpu.pipeline_mode<synchronous>, transform_indices = @transform_3, window_bounds = array<i64: 8, 1>}, {transform_indices = @transform_4, window_bounds = array<i64: 8, 512>}]} {
    %c0 = arith.constant 0 : index
    %c0_0 = arith.constant 0 : index
    %0 = vector.load %arg2[%c0, %c0_0] : memref<8x128xbf16, #tpu.memory_space<vmem>>, vector<8x128xbf16>
    %c0_1 = arith.constant 0 : index
    %c0_2 = arith.constant 0 : index
    %1 = vector.load %arg1[%c0_1, %c0_2] : memref<128x512xbf16, #tpu.memory_space<vmem>>, vector<128x512xbf16>
    %cst = arith.constant dense<0.000000e+00> : vector<8x512xf32>
    %2 = tpu.matmul %0, %1, %cst {dimension_numbers = #tpu.dot_dimension_numbers<[1], [0], [0], [1], [0, 0, 1, 1], [], []>} : vector<8x128xbf16>, vector<128x512xbf16>, vector<8x512xf32> -> vector<8x512xf32>
    %c0_3 = arith.constant 0 : index
    %c0_4 = arith.constant 0 : index
    %3 = vector.load %arg3[%c0_3, %c0_4] : memref<8x1xf32, #tpu.memory_space<vmem>>, vector<8x1xf32>
    %4 = vector.broadcast %3 : vector<8x1xf32> to vector<8x512xf32>
    %5 = arith.mulf %2, %4 : vector<8x512xf32>
    %c0_5 = arith.constant 0 : index
    %c0_6 = arith.constant 0 : index
    %6 = vector.load %arg4[%c0_5, %c0_6] : memref<8x1xf32, #tpu.memory_space<vmem>>, vector<8x1xf32>
    %7 = vector.broadcast %6 : vector<8x1xf32> to vector<8x512xf32>
    %8 = arith.addf %5, %7 : vector<8x512xf32>
    %cst_7 = arith.constant 0.000000e+00 : f32
    %9 = vector.broadcast %cst_7 : f32 to vector<8x512xf32>
    %10 = arith.cmpf oge, %8, %9 : vector<8x512xf32>
    %cst_8 = arith.constant 2.000000e-01 : f32
    %11 = vector.broadcast %cst_8 : f32 to vector<8x512xf32>
    %12 = arith.mulf %11, %8 : vector<8x512xf32>
    %13 = arith.select %10, %8, %12 : vector<8x512xi1>, vector<8x512xf32>
    %14 = arith.truncf %13 : vector<8x512xf32> to vector<8x512xbf16>
    %c0_9 = arith.constant 0 : index
    %c0_10 = arith.constant 0 : index
    %15 = vector.load %arg5[%c0_9, %c0_10] : memref<8x512xbf16, #tpu.memory_space<vmem>>, vector<8x512xbf16>
    tpu.vector_store %arg5[%c0_9, %c0_10], %14 {strides = array<i32>} : memref<8x512xbf16, #tpu.memory_space<vmem>>, vector<8x512xbf16>,
    return
  }
  func.func @transform_0(%arg0: i32) -> (i32, i32) {
    %c0_i32 = arith.constant 0 : i32
    %c0_i32_0 = arith.constant 0 : i32
    return %c0_i32, %arg0 : i32, i32
  }
  func.func @transform_1(%arg0: i32) -> (i32, i32) {
    %c0_i32 = arith.constant 0 : i32
    %c0_i32_0 = arith.constant 0 : i32
    %c0_i32_1 = arith.constant 0 : i32
    return %c0_i32, %c0_i32_0 : i32, i32
  }
  func.func @transform_2(%arg0: i32) -> (i32, i32) {
    %c0_i32 = arith.constant 0 : i32
    %c0_i32_0 = arith.constant 0 : i32
    %c0_i32_1 = arith.constant 0 : i32
    return %c0_i32, %c0_i32_0 : i32, i32
  }
  func.func @transform_3(%arg0: i32) -> (i32, i32) {
    %c0_i32 = arith.constant 0 : i32
    %c0_i32_0 = arith.constant 0 : i32
    %c0_i32_1 = arith.constant 0 : i32
    return %c0_i32, %c0_i32_0 : i32, i32
  }
  func.func @transform_4(%arg0: i32) -> (i32, i32) {
    %c0_i32 = arith.constant 0 : i32
    %c0_i32_0 = arith.constant 0 : i32
    return %c0_i32, %arg0 : i32, i32
  }
}

module attributes {stable_mosaic.version = 11 : i64} {
  func.func @_conv_mm_kernel(%arg0: i32, %arg1: memref<384x512xbf16, #tpu.memory_space<vmem>>, %arg2: memref<16x384xbf16, #tpu.memory_space<vmem>>, %arg3: memref<16x1xf32, #tpu.memory_space<vmem>>, %arg4: memref<16x1xf32, #tpu.memory_space<vmem>>, %arg5: memref<16x512xbf16, #tpu.memory_space<vmem>>) attributes {dimension_semantics = [#tpu.dimension_semantics<parallel>], iteration_bounds = array<i64: 1>, scalar_prefetch = 0 : i64, scratch_operands = 0 : i64, tpu.core_type = #tpu.core_type<tc>, window_params = [{transform_indices = @transform_0, window_bounds = array<i64: 384, 512>}, {pipeline_mode = #tpu.pipeline_mode<synchronous>, transform_indices = @transform_1, window_bounds = array<i64: 16, 384>}, {pipeline_mode = #tpu.pipeline_mode<synchronous>, transform_indices = @transform_2, window_bounds = array<i64: 16, 1>}, {pipeline_mode = #tpu.pipeline_mode<synchronous>, transform_indices = @transform_3, window_bounds = array<i64: 16, 1>}, {transform_indices = @transform_4, window_bounds = array<i64: 16, 512>}]} {
    %c0 = arith.constant 0 : index
    %c0_0 = arith.constant 0 : index
    %0 = vector.load %arg2[%c0, %c0_0] : memref<16x384xbf16, #tpu.memory_space<vmem>>, vector<16x384xbf16>
    %c0_1 = arith.constant 0 : index
    %c0_2 = arith.constant 0 : index
    %1 = vector.load %arg1[%c0_1, %c0_2] : memref<384x512xbf16, #tpu.memory_space<vmem>>, vector<384x512xbf16>
    %cst = arith.constant dense<0.000000e+00> : vector<16x512xf32>
    %2 = tpu.matmul %0, %1, %cst {dimension_numbers = #tpu.dot_dimension_numbers<[1], [0], [0], [1], [0, 0, 1, 1], [], []>} : vector<16x384xbf16>, vector<384x512xbf16>, vector<16x512xf32> -> vector<16x512xf32>
    %c0_3 = arith.constant 0 : index
    %c0_4 = arith.constant 0 : index
    %3 = vector.load %arg3[%c0_3, %c0_4] : memref<16x1xf32, #tpu.memory_space<vmem>>, vector<16x1xf32>
    %4 = vector.broadcast %3 : vector<16x1xf32> to vector<16x512xf32>
    %5 = arith.mulf %2, %4 : vector<16x512xf32>
    %c0_5 = arith.constant 0 : index
    %c0_6 = arith.constant 0 : index
    %6 = vector.load %arg4[%c0_5, %c0_6] : memref<16x1xf32, #tpu.memory_space<vmem>>, vector<16x1xf32>
    %7 = vector.broadcast %6 : vector<16x1xf32> to vector<16x512xf32>
    %8 = arith.addf %5, %7 : vector<16x512xf32>
    %cst_7 = arith.constant 0.000000e+00 : f32
    %9 = vector.broadcast %cst_7 : f32 to vector<16x512xf32>
    %10 = arith.cmpf oge, %8, %9 : vector<16x512xf32>
    %cst_8 = arith.constant 2.000000e-01 : f32
    %11 = vector.broadcast %cst_8 : f32 to vector<16x512xf32>
    %12 = arith.mulf %11, %8 : vector<16x512xf32>
    %13 = arith.select %10, %8, %12 : vector<16x512xi1>, vector<16x512xf32>
    %14 = arith.truncf %13 : vector<16x512xf32> to vector<16x512xbf16>
    %c0_9 = arith.constant 0 : index
    %c0_10 = arith.constant 0 : index
    %15 = vector.load %arg5[%c0_9, %c0_10] : memref<16x512xbf16, #tpu.memory_space<vmem>>, vector<16x512xbf16>
    tpu.vector_store %arg5[%c0_9, %c0_10], %14 {strides = array<i32>} : memref<16x512xbf16, #tpu.memory_space<vmem>>, vector<16x512xbf16>,
    return
  }
  func.func @transform_0(%arg0: i32) -> (i32, i32) {
    %c0_i32 = arith.constant 0 : i32
    %c0_i32_0 = arith.constant 0 : i32
    return %c0_i32, %arg0 : i32, i32
  }
  func.func @transform_1(%arg0: i32) -> (i32, i32) {
    %c0_i32 = arith.constant 0 : i32
    %c0_i32_0 = arith.constant 0 : i32
    %c0_i32_1 = arith.constant 0 : i32
    return %c0_i32, %c0_i32_0 : i32, i32
  }
  func.func @transform_2(%arg0: i32) -> (i32, i32) {
    %c0_i32 = arith.constant 0 : i32
    %c0_i32_0 = arith.constant 0 : i32
    %c0_i32_1 = arith.constant 0 : i32
    return %c0_i32, %c0_i32_0 : i32, i32
  }
  func.func @transform_3(%arg0: i32) -> (i32, i32) {
    %c0_i32 = arith.constant 0 : i32
    %c0_i32_0 = arith.constant 0 : i32
    %c0_i32_1 = arith.constant 0 : i32
    return %c0_i32, %c0_i32_0 : i32, i32
  }
  func.func @transform_4(%arg0: i32) -> (i32, i32) {
    %c0_i32 = arith.constant 0 : i32
    %c0_i32_0 = arith.constant 0 : i32
    return %c0_i32, %arg0 : i32, i32
  }
}

module attributes {stable_mosaic.version = 11 : i64} {
  func.func @_conv_mm_kernel(%arg0: i32, %arg1: memref<768x128xbf16, #tpu.memory_space<vmem>>, %arg2: memref<32x768xbf16, #tpu.memory_space<vmem>>, %arg3: memref<32x1xf32, #tpu.memory_space<vmem>>, %arg4: memref<32x1xf32, #tpu.memory_space<vmem>>, %arg5: memref<32x128xbf16, #tpu.memory_space<vmem>>) attributes {dimension_semantics = [#tpu.dimension_semantics<parallel>], iteration_bounds = array<i64: 1>, scalar_prefetch = 0 : i64, scratch_operands = 0 : i64, tpu.core_type = #tpu.core_type<tc>, window_params = [{transform_indices = @transform_0, window_bounds = array<i64: 768, 128>}, {pipeline_mode = #tpu.pipeline_mode<synchronous>, transform_indices = @transform_1, window_bounds = array<i64: 32, 768>}, {pipeline_mode = #tpu.pipeline_mode<synchronous>, transform_indices = @transform_2, window_bounds = array<i64: 32, 1>}, {pipeline_mode = #tpu.pipeline_mode<synchronous>, transform_indices = @transform_3, window_bounds = array<i64: 32, 1>}, {transform_indices = @transform_4, window_bounds = array<i64: 32, 128>}]} {
    %c0 = arith.constant 0 : index
    %c0_0 = arith.constant 0 : index
    %0 = vector.load %arg2[%c0, %c0_0] : memref<32x768xbf16, #tpu.memory_space<vmem>>, vector<32x768xbf16>
    %c0_1 = arith.constant 0 : index
    %c0_2 = arith.constant 0 : index
    %1 = vector.load %arg1[%c0_1, %c0_2] : memref<768x128xbf16, #tpu.memory_space<vmem>>, vector<768x128xbf16>
    %cst = arith.constant dense<0.000000e+00> : vector<32x128xf32>
    %2 = tpu.matmul %0, %1, %cst {dimension_numbers = #tpu.dot_dimension_numbers<[1], [0], [0], [1], [0, 0, 1, 1], [], []>} : vector<32x768xbf16>, vector<768x128xbf16>, vector<32x128xf32> -> vector<32x128xf32>
    %c0_3 = arith.constant 0 : index
    %c0_4 = arith.constant 0 : index
    %3 = vector.load %arg3[%c0_3, %c0_4] : memref<32x1xf32, #tpu.memory_space<vmem>>, vector<32x1xf32>
    %4 = vector.broadcast %3 : vector<32x1xf32> to vector<32x128xf32>
    %5 = arith.mulf %2, %4 : vector<32x128xf32>
    %c0_5 = arith.constant 0 : index
    %c0_6 = arith.constant 0 : index
    %6 = vector.load %arg4[%c0_5, %c0_6] : memref<32x1xf32, #tpu.memory_space<vmem>>, vector<32x1xf32>
    %7 = vector.broadcast %6 : vector<32x1xf32> to vector<32x128xf32>
    %8 = arith.addf %5, %7 : vector<32x128xf32>
    %cst_7 = arith.constant 0.000000e+00 : f32
    %9 = vector.broadcast %cst_7 : f32 to vector<32x128xf32>
    %10 = arith.cmpf oge, %8, %9 : vector<32x128xf32>
    %cst_8 = arith.constant 2.000000e-01 : f32
    %11 = vector.broadcast %cst_8 : f32 to vector<32x128xf32>
    %12 = arith.mulf %11, %8 : vector<32x128xf32>
    %13 = arith.select %10, %8, %12 : vector<32x128xi1>, vector<32x128xf32>
    %14 = arith.truncf %13 : vector<32x128xf32> to vector<32x128xbf16>
    %c0_9 = arith.constant 0 : index
    %c0_10 = arith.constant 0 : index
    %15 = vector.load %arg5[%c0_9, %c0_10] : memref<32x128xbf16, #tpu.memory_space<vmem>>, vector<32x128xbf16>
    tpu.vector_store %arg5[%c0_9, %c0_10], %14 {strides = array<i32>} : memref<32x128xbf16, #tpu.memory_space<vmem>>, vector<32x128xbf16>,
    return
  }
  func.func @transform_0(%arg0: i32) -> (i32, i32) {
    %c0_i32 = arith.constant 0 : i32
    %c0_i32_0 = arith.constant 0 : i32
    return %c0_i32, %arg0 : i32, i32
  }
  func.func @transform_1(%arg0: i32) -> (i32, i32) {
    %c0_i32 = arith.constant 0 : i32
    %c0_i32_0 = arith.constant 0 : i32
    %c0_i32_1 = arith.constant 0 : i32
    return %c0_i32, %c0_i32_0 : i32, i32
  }
  func.func @transform_2(%arg0: i32) -> (i32, i32) {
    %c0_i32 = arith.constant 0 : i32
    %c0_i32_0 = arith.constant 0 : i32
    %c0_i32_1 = arith.constant 0 : i32
    return %c0_i32, %c0_i32_0 : i32, i32
  }
  func.func @transform_3(%arg0: i32) -> (i32, i32) {
    %c0_i32 = arith.constant 0 : i32
    %c0_i32_0 = arith.constant 0 : i32
    %c0_i32_1 = arith.constant 0 : i32
    return %c0_i32, %c0_i32_0 : i32, i32
  }
  func.func @transform_4(%arg0: i32) -> (i32, i32) {
    %c0_i32 = arith.constant 0 : i32
    %c0_i32_0 = arith.constant 0 : i32
    return %c0_i32, %arg0 : i32, i32
  }
}

module attributes {stable_mosaic.version = 11 : i64} {
  func.func @_attn_kernel(%arg0: i32, %arg1: memref<1x32x32xbf16, #tpu.memory_space<vmem>>, %arg2: memref<32x384xbf16, #tpu.memory_space<vmem>>, %arg3: memref<1x384xf32, #tpu.memory_space<vmem>>, %arg4: memref<1x1xf32, #tpu.memory_space<vmem>>, %arg5: memref<1x32x32xbf16, #tpu.memory_space<vmem>>) attributes {dimension_semantics = [#tpu.dimension_semantics<parallel>], iteration_bounds = array<i64: 2>, scalar_prefetch = 0 : i64, scratch_operands = 0 : i64, tpu.core_type = #tpu.core_type<tc>, window_params = [{transform_indices = @transform_0, window_bounds = array<i64: 1, 32, 32>}, {pipeline_mode = #tpu.pipeline_mode<synchronous>, transform_indices = @transform_1, window_bounds = array<i64: 32, 384>}, {pipeline_mode = #tpu.pipeline_mode<synchronous>, transform_indices = @transform_2, window_bounds = array<i64: 1, 384>}, {pipeline_mode = #tpu.pipeline_mode<synchronous>, transform_indices = @transform_3, window_bounds = array<i64: 1, 1>}, {transform_indices = @transform_4, window_bounds = array<i64: 1, 32, 32>}]} {
    %c0 = arith.constant 0 : index
    %c0_0 = arith.constant 0 : index
    %c0_1 = arith.constant 0 : index
    %0 = vector.load %arg1[%c0, %c0_0, %c0_1] : memref<1x32x32xbf16, #tpu.memory_space<vmem>>, vector<1x32x32xbf16>
    %1 = vector.shape_cast %0 : vector<1x32x32xbf16> to vector<32x32xbf16>
    %c0_2 = arith.constant 0 : index
    %c0_3 = arith.constant 0 : index
    %2 = vector.load %arg2[%c0_2, %c0_3] : memref<32x384xbf16, #tpu.memory_space<vmem>>, vector<32x384xbf16>
    %cst = arith.constant dense<0.000000e+00> : vector<32x384xf32>
    %3 = tpu.matmul %1, %2, %cst {dimension_numbers = #tpu.dot_dimension_numbers<[1], [0], [0], [1], [0, 0, 1, 1], [], []>} : vector<32x32xbf16>, vector<32x384xbf16>, vector<32x384xf32> -> vector<32x384xf32>
    %c0_4 = arith.constant 0 : index
    %c0_5 = arith.constant 0 : index
    %4 = vector.load %arg3[%c0_4, %c0_5] : memref<1x384xf32, #tpu.memory_space<vmem>>, vector<1x384xf32>
    %5 = vector.broadcast %4 : vector<1x384xf32> to vector<32x384xf32>
    %6 = arith.addf %3, %5 : vector<32x384xf32>
    %7 = vector.extract_strided_slice %6 {offsets = [0, 0], sizes = [32, 128], strides = [1, 1]} : vector<32x384xf32> to vector<32x128xf32>
    %8 = vector.extract_strided_slice %6 {offsets = [0, 128], sizes = [32, 128], strides = [1, 1]} : vector<32x384xf32> to vector<32x128xf32>
    %9 = vector.extract_strided_slice %6 {offsets = [0, 256], sizes = [32, 128], strides = [1, 1]} : vector<32x384xf32> to vector<32x128xf32>
    %10 = tpu.transpose %8, [1, 0] : vector<32x128xf32> -> vector<128x32xf32>
    %cst_6 = arith.constant dense<0.000000e+00> : vector<32x32xf32>
    %11 = tpu.matmul %7, %10, %cst_6 {dimension_numbers = #tpu.dot_dimension_numbers<[1], [0], [0], [1], [0, 0, 1, 1], [], []>} : vector<32x128xf32>, vector<128x32xf32>, vector<32x32xf32> -> vector<32x32xf32>
    %cst_7 = arith.constant dense<0xFF800000> : vector<32xf32>
    %12 = vector.multi_reduction <maximumf>, %11, %cst_7 [1] : vector<32x32xf32> to vector<32xf32>
    %13 = vector.shape_cast %12 : vector<32xf32> to vector<32x1xf32>
    %14 = vector.broadcast %13 : vector<32x1xf32> to vector<32x32xf32>
    %15 = arith.subf %11, %14 : vector<32x32xf32>
    %16 = math.exp %15 : vector<32x32xf32>
    %cst_8 = arith.constant dense<0.000000e+00> : vector<32xf32>
    %17 = vector.multi_reduction <add>, %16, %cst_8 [1] : vector<32x32xf32> to vector<32xf32>
    %18 = vector.shape_cast %17 : vector<32xf32> to vector<32x1xf32>
    %19 = tpu.reciprocal %18 {approx = true} : vector<32x1xf32> -> vector<32x1xf32>
    %20 = vector.broadcast %19 : vector<32x1xf32> to vector<32x32xf32>
    %21 = arith.mulf %16, %20 : vector<32x32xf32>
    %cst_9 = arith.constant dense<0.000000e+00> : vector<32x128xf32>
    %22 = tpu.matmul %21, %9, %cst_9 {dimension_numbers = #tpu.dot_dimension_numbers<[1], [0], [0], [1], [0, 0, 1, 1], [], []>} : vector<32x32xf32>, vector<32x128xf32>, vector<32x128xf32> -> vector<32x128xf32>
    %c0_10 = arith.constant 0 : index
    %c0_11 = arith.constant 0 : index
    %23 = vector.load %arg4[%c0_10, %c0_11] : memref<1x1xf32, #tpu.memory_space<vmem>>, vector<1x1xf32>
    %24 = vector.extract %23[0, 0] : f32 from vector<1x1xf32>
    %25 = vector.extract_strided_slice %22 {offsets = [0, 0], sizes = [32, 32], strides = [1, 1]} : vector<32x128xf32> to vector<32x32xf32>
    %26 = vector.broadcast %24 : f32 to vector<32x32xf32>
    %27 = arith.mulf %26, %25 : vector<32x32xf32>
    %28 = arith.extf %1 : vector<32x32xbf16> to vector<32x32xf32>
    %29 = arith.addf %27, %28 : vector<32x32xf32>
    %30 = arith.truncf %29 : vector<32x32xf32> to vector<32x32xbf16>
    %c0_12 = arith.constant 0 : index
    %c0_13 = arith.constant 0 : index
    %c0_14 = arith.constant 0 : index
    %31 = vector.load %arg5[%c0_12, %c0_13, %c0_14] : memref<1x32x32xbf16, #tpu.memory_space<vmem>>, vector<1x32x32xbf16>
    %32 = vector.shape_cast %31 : vector<1x32x32xbf16> to vector<32x32xbf16>
    %33 = vector.shape_cast %30 : vector<32x32xbf16> to vector<1x32x32xbf16>
    tpu.vector_store %arg5[%c0_12, %c0_13, %c0_14], %33 {strides = array<i32>} : memref<1x32x32xbf16, #tpu.memory_space<vmem>>, vector<1x32x32xbf16>,
    return
  }
  func.func @transform_0(%arg0: i32) -> (i32, i32, i32) {
    %c0_i32 = arith.constant 0 : i32
    %c0_i32_0 = arith.constant 0 : i32
    %c0_i32_1 = arith.constant 0 : i32
    return %arg0, %c0_i32, %c0_i32_0 : i32, i32, i32
  }
  func.func @transform_1(%arg0: i32) -> (i32, i32) {
    %c0_i32 = arith.constant 0 : i32
    %c0_i32_0 = arith.constant 0 : i32
    %c0_i32_1 = arith.constant 0 : i32
    return %c0_i32, %c0_i32_0 : i32, i32
  }
  func.func @transform_2(%arg0: i32) -> (i32, i32) {
    %c0_i32 = arith.constant 0 : i32
    %c0_i32_0 = arith.constant 0 : i32
    %c0_i32_1 = arith.constant 0 : i32
    return %c0_i32, %c0_i32_0 : i32, i32
  }
  func.func @transform_3(%arg0: i32) -> (i32, i32) {
    %c0_i32 = arith.constant 0 : i32
    %c0_i32_0 = arith.constant 0 : i32
    %c0_i32_1 = arith.constant 0 : i32
    return %c0_i32, %c0_i32_0 : i32, i32
  }
  func.func @transform_4(%arg0: i32) -> (i32, i32, i32) {
    %c0_i32 = arith.constant 0 : i32
    %c0_i32_0 = arith.constant 0 : i32
    %c0_i32_1 = arith.constant 0 : i32
    return %arg0, %c0_i32, %c0_i32_0 : i32, i32, i32
  }
}

module attributes {stable_mosaic.version = 11 : i64} {
  func.func @_conv_mm_kernel(%arg0: i32, %arg1: memref<1536x128xbf16, #tpu.memory_space<vmem>>, %arg2: memref<64x1536xbf16, #tpu.memory_space<vmem>>, %arg3: memref<64x1xf32, #tpu.memory_space<vmem>>, %arg4: memref<64x1xf32, #tpu.memory_space<vmem>>, %arg5: memref<64x128xbf16, #tpu.memory_space<vmem>>) attributes {dimension_semantics = [#tpu.dimension_semantics<parallel>], iteration_bounds = array<i64: 1>, scalar_prefetch = 0 : i64, scratch_operands = 0 : i64, tpu.core_type = #tpu.core_type<tc>, window_params = [{transform_indices = @transform_0, window_bounds = array<i64: 1536, 128>}, {pipeline_mode = #tpu.pipeline_mode<synchronous>, transform_indices = @transform_1, window_bounds = array<i64: 64, 1536>}, {pipeline_mode = #tpu.pipeline_mode<synchronous>, transform_indices = @transform_2, window_bounds = array<i64: 64, 1>}, {pipeline_mode = #tpu.pipeline_mode<synchronous>, transform_indices = @transform_3, window_bounds = array<i64: 64, 1>}, {transform_indices = @transform_4, window_bounds = array<i64: 64, 128>}]} {
    %c0 = arith.constant 0 : index
    %c0_0 = arith.constant 0 : index
    %0 = vector.load %arg2[%c0, %c0_0] : memref<64x1536xbf16, #tpu.memory_space<vmem>>, vector<64x1536xbf16>
    %c0_1 = arith.constant 0 : index
    %c0_2 = arith.constant 0 : index
    %1 = vector.load %arg1[%c0_1, %c0_2] : memref<1536x128xbf16, #tpu.memory_space<vmem>>, vector<1536x128xbf16>
    %cst = arith.constant dense<0.000000e+00> : vector<64x128xf32>
    %2 = tpu.matmul %0, %1, %cst {dimension_numbers = #tpu.dot_dimension_numbers<[1], [0], [0], [1], [0, 0, 1, 1], [], []>} : vector<64x1536xbf16>, vector<1536x128xbf16>, vector<64x128xf32> -> vector<64x128xf32>
    %c0_3 = arith.constant 0 : index
    %c0_4 = arith.constant 0 : index
    %3 = vector.load %arg3[%c0_3, %c0_4] : memref<64x1xf32, #tpu.memory_space<vmem>>, vector<64x1xf32>
    %4 = vector.broadcast %3 : vector<64x1xf32> to vector<64x128xf32>
    %5 = arith.mulf %2, %4 : vector<64x128xf32>
    %c0_5 = arith.constant 0 : index
    %c0_6 = arith.constant 0 : index
    %6 = vector.load %arg4[%c0_5, %c0_6] : memref<64x1xf32, #tpu.memory_space<vmem>>, vector<64x1xf32>
    %7 = vector.broadcast %6 : vector<64x1xf32> to vector<64x128xf32>
    %8 = arith.addf %5, %7 : vector<64x128xf32>
    %cst_7 = arith.constant 0.000000e+00 : f32
    %9 = vector.broadcast %cst_7 : f32 to vector<64x128xf32>
    %10 = arith.cmpf oge, %8, %9 : vector<64x128xf32>
    %cst_8 = arith.constant 2.000000e-01 : f32
    %11 = vector.broadcast %cst_8 : f32 to vector<64x128xf32>
    %12 = arith.mulf %11, %8 : vector<64x128xf32>
    %13 = arith.select %10, %8, %12 : vector<64x128xi1>, vector<64x128xf32>
    %14 = arith.truncf %13 : vector<64x128xf32> to vector<64x128xbf16>
    %c0_9 = arith.constant 0 : index
    %c0_10 = arith.constant 0 : index
    %15 = vector.load %arg5[%c0_9, %c0_10] : memref<64x128xbf16, #tpu.memory_space<vmem>>, vector<64x128xbf16>
    tpu.vector_store %arg5[%c0_9, %c0_10], %14 {strides = array<i32>} : memref<64x128xbf16, #tpu.memory_space<vmem>>, vector<64x128xbf16>,
    return
  }
  func.func @transform_0(%arg0: i32) -> (i32, i32) {
    %c0_i32 = arith.constant 0 : i32
    %c0_i32_0 = arith.constant 0 : i32
    return %c0_i32, %arg0 : i32, i32
  }
  func.func @transform_1(%arg0: i32) -> (i32, i32) {
    %c0_i32 = arith.constant 0 : i32
    %c0_i32_0 = arith.constant 0 : i32
    %c0_i32_1 = arith.constant 0 : i32
    return %c0_i32, %c0_i32_0 : i32, i32
  }
  func.func @transform_2(%arg0: i32) -> (i32, i32) {
    %c0_i32 = arith.constant 0 : i32
    %c0_i32_0 = arith.constant 0 : i32
    %c0_i32_1 = arith.constant 0 : i32
    return %c0_i32, %c0_i32_0 : i32, i32
  }
  func.func @transform_3(%arg0: i32) -> (i32, i32) {
    %c0_i32 = arith.constant 0 : i32
    %c0_i32_0 = arith.constant 0 : i32
    %c0_i32_1 = arith.constant 0 : i32
    return %c0_i32, %c0_i32_0 : i32, i32
  }
  func.func @transform_4(%arg0: i32) -> (i32, i32) {
    %c0_i32 = arith.constant 0 : i32
    %c0_i32_0 = arith.constant 0 : i32
    return %c0_i32, %arg0 : i32, i32
  }
}

module attributes {stable_mosaic.version = 11 : i64} {
  func.func @_conv_mm_kernel(%arg0: i32, %arg1: memref<3072x128xbf16, #tpu.memory_space<vmem>>, %arg2: memref<1x3072xbf16, #tpu.memory_space<vmem>>, %arg3: memref<1x1xf32, #tpu.memory_space<vmem>>, %arg4: memref<1x1xf32, #tpu.memory_space<vmem>>, %arg5: memref<1x128xf32, #tpu.memory_space<vmem>>) attributes {dimension_semantics = [#tpu.dimension_semantics<parallel>], iteration_bounds = array<i64: 1>, scalar_prefetch = 0 : i64, scratch_operands = 0 : i64, tpu.core_type = #tpu.core_type<tc>, window_params = [{transform_indices = @transform_0, window_bounds = array<i64: 3072, 128>}, {pipeline_mode = #tpu.pipeline_mode<synchronous>, transform_indices = @transform_1, window_bounds = array<i64: 1, 3072>}, {pipeline_mode = #tpu.pipeline_mode<synchronous>, transform_indices = @transform_2, window_bounds = array<i64: 1, 1>}, {pipeline_mode = #tpu.pipeline_mode<synchronous>, transform_indices = @transform_3, window_bounds = array<i64: 1, 1>}, {transform_indices = @transform_4, window_bounds = array<i64: 1, 128>}]} {
    %c0 = arith.constant 0 : index
    %c0_0 = arith.constant 0 : index
    %0 = vector.load %arg2[%c0, %c0_0] : memref<1x3072xbf16, #tpu.memory_space<vmem>>, vector<1x3072xbf16>
    %c0_1 = arith.constant 0 : index
    %c0_2 = arith.constant 0 : index
    %1 = vector.load %arg1[%c0_1, %c0_2] : memref<3072x128xbf16, #tpu.memory_space<vmem>>, vector<3072x128xbf16>
    %cst = arith.constant dense<0.000000e+00> : vector<1x128xf32>
    %2 = tpu.matmul %0, %1, %cst {dimension_numbers = #tpu.dot_dimension_numbers<[1], [0], [0], [1], [0, 0, 1, 1], [], []>} : vector<1x3072xbf16>, vector<3072x128xbf16>, vector<1x128xf32> -> vector<1x128xf32>
    %c0_3 = arith.constant 0 : index
    %c0_4 = arith.constant 0 : index
    %3 = vector.load %arg3[%c0_3, %c0_4] : memref<1x1xf32, #tpu.memory_space<vmem>>, vector<1x1xf32>
    %4 = vector.broadcast %3 : vector<1x1xf32> to vector<1x128xf32>
    %5 = arith.mulf %2, %4 : vector<1x128xf32>
    %c0_5 = arith.constant 0 : index
    %c0_6 = arith.constant 0 : index
    %6 = vector.load %arg4[%c0_5, %c0_6] : memref<1x1xf32, #tpu.memory_space<vmem>>, vector<1x1xf32>
    %7 = vector.broadcast %6 : vector<1x1xf32> to vector<1x128xf32>
    %8 = arith.addf %5, %7 : vector<1x128xf32>
    %c0_7 = arith.constant 0 : index
    %c0_8 = arith.constant 0 : index
    %9 = vector.load %arg5[%c0_7, %c0_8] : memref<1x128xf32, #tpu.memory_space<vmem>>, vector<1x128xf32>
    tpu.vector_store %arg5[%c0_7, %c0_8], %8 {strides = array<i32>} : memref<1x128xf32, #tpu.memory_space<vmem>>, vector<1x128xf32>,
    return
  }
  func.func @transform_0(%arg0: i32) -> (i32, i32) {
    %c0_i32 = arith.constant 0 : i32
    %c0_i32_0 = arith.constant 0 : i32
    return %c0_i32, %arg0 : i32, i32
  }
  func.func @transform_1(%arg0: i32) -> (i32, i32) {
    %c0_i32 = arith.constant 0 : i32
    %c0_i32_0 = arith.constant 0 : i32
    %c0_i32_1 = arith.constant 0 : i32
    return %c0_i32, %c0_i32_0 : i32, i32
  }
  func.func @transform_2(%arg0: i32) -> (i32, i32) {
    %c0_i32 = arith.constant 0 : i32
    %c0_i32_0 = arith.constant 0 : i32
    %c0_i32_1 = arith.constant 0 : i32
    return %c0_i32, %c0_i32_0 : i32, i32
  }
  func.func @transform_3(%arg0: i32) -> (i32, i32) {
    %c0_i32 = arith.constant 0 : i32
    %c0_i32_0 = arith.constant 0 : i32
    %c0_i32_1 = arith.constant 0 : i32
    return %c0_i32, %c0_i32_0 : i32, i32
  }
  func.func @transform_4(%arg0: i32) -> (i32, i32) {
    %c0_i32 = arith.constant 0 : i32
    %c0_i32_0 = arith.constant 0 : i32
    return %c0_i32, %arg0 : i32, i32
  }
}

</mosaic_0001>

<bundles_post_ra>
// kernel: discriminator_forward.6
= control target key start
LH: loop header
LB: loop body
LE: loop exit
PB: predicated region body
PF: predicated region fallthrough
CT: control target
= control target key end

     0   :  { %s844_s15 = smov 0   ;;  %s846_s16 = smov 0   ;;  %s1007_s0 = inlined_call_operand.vmem [shape: bf16[128,4096], index: 0, kind: input, shape index: {}]   ;;  %s1008_s1 = inlined_call_operand.vmem [shape: bf16[8,128], index: 1, kind: input, shape index: {}]   ;;  %s1009_s2 = inlined_call_operand.vmem [shape: f32[8,1], index: 2, kind: input, shape index: {}]   ;;  %s1010_s3 = inlined_call_operand.vmem [shape: f32[8,1], index: 3, kind: input, shape index: {}]   ;;  %s1011_s4 = inlined_call_operand.vmem [shape: bf16[8,4096], index: 4, kind: output, shape index: {}]  }
   0x1   :  { %s848_s17 = smov 0  }
   0x2 LB: > { %s670_s18 = sadd.s32 4294967295, %s816_s17   ;;  %s861_s19 = sadd.s32 1, %s816_s17   ;;  %s816_s17 = sphi %s848_s17, %s1014_s17   ;;  %s812_s16 = sphi %s846_s16, %s1013_s16   ;;  %s808_s15 = sphi %s844_s15, %s1012_s15  }
   0x3   : > { %s18_s20 = ssub.s32 %s816_s17, %s861_s19  ;;  %s21_s21 = sadd.s32 1, %s812_s16 }
   0x4   : > { %p19_p0 = scmp.eq.s32.totalorder %s18_s20, 0  ;;  %p28_p1 = scmp.ne.s32.totalorder %s812_s16, %s808_s15 }
   0x5   : > { %p29_p2 = scmp.eq.s32.totalorder %s816_s17, 0  ;;  %p673_p4 = scmp.ge.s32.totalorder %s816_s17, 8 }
   0x6   : > { %s870_s22 = scalar_select %p19_p0, %s812_s16, %s21_s21  }
   0x7   : > { %p30_p3 = por %p29_p2, %p28_p1  ;;  %152 = sbr.rel (%p673_p4) target bundleno = 32 (0x20), region = 28 }
   0xc   : > { %155 = sbr.rel (!%p30_p3) target bundleno = 32 (0x20), region = 32  ;;  %s157_s23 = sand.u32 (%p30_p3), 1, %s812_s16  }
   0xd   : > { %s717_s24 = sshll.u32 (%p30_p3), %s816_s17, 4  ;;  %s674_s25 = sshll.u32 (%p30_p3), %s157_s23, 8 }
   0xe   : > { %s878_s28 = scalar_lea.vmem (%p30_p3), %s1007_s0, %s717_s24  ;;  %s883_s29 = scalar_lea.vmem (%p30_p3), [#allocation2], %s674_s25 }
   0xf   : > { %v175_v0 = vld [vmem:[%s878_s28] sm:$0xff] (%p30_p3)  ;;  %v177_v1 = vld [vmem:[%s878_s28 + $0x8] sm:$0xff] (%p30_p3) }
  0x10   : > { %v179_v2 = vld [vmem:[%s878_s28 + $0x80] sm:$0xff] (%p30_p3)  ;;  %176 = vst [vmem:[%s883_s29] sm:$0xff] (%p30_p3), %v175_v0  ;;  %178 = vst [vmem:[%s883_s29 + $0x8] sm:$0xff] (%p30_p3), %v177_v1  ;;  %v181_v3 = vld [vmem:[%s878_s28 + $0x88] sm:$0xff] (%p30_p3) }
  0x11   : > { %180 = vst [vmem:[%s883_s29 + $0x10] sm:$0xff] %v179_v2  ;;  %v183_v4 = vld [vmem:[%s878_s28 + $0x100] sm:$0xff]  ;;  %v185_v5 = vld [vmem:[%s878_s28 + $0x108] sm:$0xff]  ;;  %182 = vst [vmem:[%s883_s29 + $0x18] sm:$0xff] %v181_v3 }
  0x12   : > { %184 = vst [vmem:[%s883_s29 + $0x20] sm:$0xff] %v183_v4  ;;  %186 = vst [vmem:[%s883_s29 + $0x28] sm:$0xff] %v185_v5  ;;  %v187_v6 = vld [vmem:[%s878_s28 + $0x180] sm:$0xff]  ;;  %v189_v7 = vld [vmem:[%s878_s28 + $0x188] sm:$0xff] }
  0x13   : > { %v191_v8 = vld [vmem:[%s878_s28 + $0x200] sm:$0xff]  ;;  %188 = vst [vmem:[%s883_s29 + $0x30] sm:$0xff] %v187_v6  ;;  %190 = vst [vmem:[%s883_s29 + $0x38] sm:$0xff] %v189_v7  ;;  %v193_v9 = vld [vmem:[%s878_s28 + $0x208] sm:$0xff] }
  0x14   : > { %192 = vst [vmem:[%s883_s29 + $0x40] sm:$0xff] %v191_v8  ;;  %v195_v10 = vld [vmem:[%s878_s28 + $0x280] sm:$0xff]  ;;  %v197_v11 = vld [vmem:[%s878_s28 + $0x288] sm:$0xff]  ;;  %194 = vst [vmem:[%s883_s29 + $0x48] sm:$0xff] %v193_v9 }
  0x15   : > { %196 = vst [vmem:[%s883_s29 + $0x50] sm:$0xff] %v195_v10  ;;  %198 = vst [vmem:[%s883_s29 + $0x58] sm:$0xff] %v197_v11  ;;  %v199_v12 = vld [vmem:[%s878_s28 + $0x300] sm:$0xff]  ;;  %v201_v13 = vld [vmem:[%s878_s28 + $0x308] sm:$0xff] }
  0x16   : > { %v203_v14 = vld [vmem:[%s878_s28 + $0x380] sm:$0xff]  ;;  %200 = vst [vmem:[%s883_s29 + $0x60] sm:$0xff] %v199_v12  ;;  %202 = vst [vmem:[%s883_s29 + $0x68] sm:$0xff] %v201_v13  ;;  %v205_v15 = vld [vmem:[%s878_s28 + $0x388] sm:$0xff] }
  0x17   : > { %204 = vst [vmem:[%s883_s29 + $0x70] sm:$0xff] %v203_v14  ;;  %v207_v16 = vld [vmem:[%s878_s28 + $0x400] sm:$0xff]  ;;  %v209_v17 = vld [vmem:[%s878_s28 + $0x408] sm:$0xff]  ;;  %206 = vst [vmem:[%s883_s29 + $0x78] sm:$0xff] %v205_v15 }
  0x18   : > { %208 = vst [vmem:[%s883_s29 + $0x80] sm:$0xff] %v207_v16  ;;  %210 = vst [vmem:[%s883_s29 + $0x88] sm:$0xff] %v209_v17  ;;  %v211_v18 = vld [vmem:[%s878_s28 + $0x480] sm:$0xff]  ;;  %v213_v19 = vld [vmem:[%s878_s28 + $0x488] sm:$0xff] }
  0x19   : > { %v215_v20 = vld [vmem:[%s878_s28 + $0x500] sm:$0xff]  ;;  %212 = vst [vmem:[%s883_s29 + $0x90] sm:$0xff] %v211_v18  ;;  %214 = vst [vmem:[%s883_s29 + $0x98] sm:$0xff] %v213_v19  ;;  %v217_v21 = vld [vmem:[%s878_s28 + $0x508] sm:$0xff] }
  0x1a   : > { %216 = vst [vmem:[%s883_s29 + $0xa0] sm:$0xff] %v215_v20  ;;  %v219_v22 = vld [vmem:[%s878_s28 + $0x580] sm:$0xff]  ;;  %v221_v23 = vld [vmem:[%s878_s28 + $0x588] sm:$0xff]  ;;  %218 = vst [vmem:[%s883_s29 + $0xa8] sm:$0xff] %v217_v21 }
  0x1b   : > { %220 = vst [vmem:[%s883_s29 + $0xb0] sm:$0xff] %v219_v22  ;;  %222 = vst [vmem:[%s883_s29 + $0xb8] sm:$0xff] %v221_v23  ;;  %v223_v24 = vld [vmem:[%s878_s28 + $0x600] sm:$0xff]  ;;  %v225_v25 = vld [vmem:[%s878_s28 + $0x608] sm:$0xff] }
  0x1c   : > { %v227_v26 = vld [vmem:[%s878_s28 + $0x680] sm:$0xff]  ;;  %224 = vst [vmem:[%s883_s29 + $0xc0] sm:$0xff] %v223_v24  ;;  %226 = vst [vmem:[%s883_s29 + $0xc8] sm:$0xff] %v225_v25  ;;  %v229_v27 = vld [vmem:[%s878_s28 + $0x688] sm:$0xff] }
  0x1d   : > { %228 = vst [vmem:[%s883_s29 + $0xd0] sm:$0xff] %v227_v26  ;;  %v231_v28 = vld [vmem:[%s878_s28 + $0x700] sm:$0xff]  ;;  %v233_v29 = vld [vmem:[%s878_s28 + $0x708] sm:$0xff]  ;;  %230 = vst [vmem:[%s883_s29 + $0xd8] sm:$0xff] %v229_v27 }
  0x1e   : > { %232 = vst [vmem:[%s883_s29 + $0xe0] sm:$0xff] %v231_v28  ;;  %234 = vst [vmem:[%s883_s29 + $0xe8] sm:$0xff] %v233_v29  ;;  %v235_v30 = vld [vmem:[%s878_s28 + $0x780] sm:$0xff]  ;;  %v237_v31 = vld [vmem:[%s878_s28 + $0x788] sm:$0xff] }
  0x1f   : > { %236 = vst [vmem:[%s883_s29 + $0xf0] sm:$0xff] %v235_v30  ;;  %238 = vst [vmem:[%s883_s29 + $0xf8] sm:$0xff] %v237_v31 }
  0x20 PF: > { %p677_p5 = scmp.ge.s32.totalorder %s816_s17, 1  ;;  %p243_p6 = scmp.lt.s32.totalorder %s816_s17, 9 }
  0x22   : > { %p244_p7 = pnand %p677_p5, %p243_p6 }
  0x23   : > { %s250_s30 = sand.u32 (!%p244_p7), 1, %s808_s15   ;;  %s679_s13 = sshll.u32 (!%p244_p7), %s670_s18, 2 }
  0x24   : > { %247 = sbr.rel (%p244_p7) target bundleno = 281 (0x119), region = 55  ;;  %s678_s7 = sshll.u32 (!%p244_p7), %s250_s30, 8 }
  0x25   : > { %s952_s8 = scalar_lea.vmem (!%p244_p7), [#allocation2], %s678_s7  ;;  %p277_p8 = scmp.lt.s32.totalorder (!%p244_p7), %s679_s13, 31 }
  0x29   : > { %v558_v32 = vld [vmem:[%s1009_s2] sm:$0xff]  ;;  %v818_v33 = vmov 0   ;;  %v748_v36 = vld [vmem:[%s952_s8 + $0xec] ss:$16 sps:$4 sm:$0xff]   ;;  %v751_v38 = vld [vmem:[%s952_s8 + $0xe8] ss:$16 sps:$4 sm:$0xff]  }
  0x2a   : > { %508 = vmatprep.mubr.bf16.mxu0 %v818_v33  ;;  %549 = vmatprep.mubr.bf16.mxu1 %v818_v33  ;;  %v746_v34 = vld [vmem:[%s952_s8 + $0xe4] ss:$16 sps:$4 sm:$0xff]   ;;  %v750_v37 = vld [vmem:[%s952_s8 + $0xe0] ss:$16 sps:$4 sm:$0xff]   ;;  %v754_v40 = vld [vmem:[%s952_s8 + $0xcc] ss:$16 sps:$4 sm:$0xff]  }
  0x2b   : > { %745 = vset.pattern.permute.xlu0 %v818_v33  ;;  %v568_v35 = vld [vmem:[%s1010_s3] sm:$0xff]  ;;  %476 = vmatprep.subr.bf16.mxu0 %v746_v34  ;;  %v757_v42 = vld [vmem:[%s952_s8 + $0xc8] ss:$16 sps:$4 sm:$0xff]   ;;  %v760_v44 = vld [vmem:[%s952_s8 + $0xac] ss:$16 sps:$4 sm:$0xff]   ;;  %s1016_s13 = smov (!%p277_p8, %s679_s13), 31 }
  0x2c   : > { %561 = vperm.xlu0 %745, %v558_v32   ;;  %517 = vmatprep.subr.bf16.mxu1 %v748_v36  ;;  %v752_v39 = vld [vmem:[%s952_s8 + $0xc4] ss:$16 sps:$4 sm:$0xff]   ;;  %v756_v41 = vld [vmem:[%s952_s8 + $0xc0] ss:$16 sps:$4 sm:$0xff]   ;;  %v763_v46 = vld [vmem:[%s952_s8 + $0xa8] ss:$16 sps:$4 sm:$0xff]  }
  0x2d   : > { %477 = vmatpush1.bf16.msra.mxu0 %v750_v37  ;;  %518 = vmatpush1.bf16.msra.mxu1 %v751_v38  ;;  %v758_v43 = vld [vmem:[%s952_s8 + $0xa4] ss:$16 sps:$4 sm:$0xff]   ;;  %v762_v45 = vld [vmem:[%s952_s8 + $0xa0] ss:$16 sps:$4 sm:$0xff]   ;;  %v766_v48 = vld [vmem:[%s952_s8 + $0x8c] ss:$16 sps:$4 sm:$0xff]  }
  0x2e   : > { %478 = vmatprep.subr.bf16.mxu0 %v752_v39  ;;  %519 = vmatprep.subr.bf16.mxu1 %v754_v40  ;;  %v764_v47 = vld [vmem:[%s952_s8 + $0x84] ss:$16 sps:$4 sm:$0xff]   ;;  %v768_v49 = vld [vmem:[%s952_s8 + $0x80] ss:$16 sps:$4 sm:$0xff]   ;;  %v769_v50 = vld [vmem:[%s952_s8 + $0x88] ss:$16 sps:$4 sm:$0xff]  }
  0x2f   : > { %v770_v51 = vld [vmem:[%s952_s8 + $0x64] ss:$16 sps:$4 sm:$0xff]   ;;  %v772_v52 = vld [vmem:[%s952_s8 + $0x6c] ss:$16 sps:$4 sm:$0xff]   ;;  %v774_v53 = vld [vmem:[%s952_s8 + $0x60] ss:$16 sps:$4 sm:$0xff]  }
  0x30   : > { %571 = vperm.xlu0 %745, %v568_v35   ;;  %v775_v54 = vld [vmem:[%s952_s8 + $0x68] ss:$16 sps:$4 sm:$0xff]   ;;  %v776_v55 = vld [vmem:[%s952_s8 + $0x44] ss:$16 sps:$4 sm:$0xff]   ;;  %v778_v56 = vld [vmem:[%s952_s8 + $0x4c] ss:$16 sps:$4 sm:$0xff]  }
  0x31   : > { %479 = vmatpush1.bf16.msra.mxu0 %v756_v41  ;;  %520 = vmatpush1.bf16.msra.mxu1 %v757_v42  ;;  %v780_v57 = vld [vmem:[%s952_s8 + $0x40] ss:$16 sps:$4 sm:$0xff]   ;;  %v781_v58 = vld [vmem:[%s952_s8 + $0x48] ss:$16 sps:$4 sm:$0xff]   ;;  %v782_v59 = vld [vmem:[%s952_s8 + $0x24] ss:$16 sps:$4 sm:$0xff]  }
  0x32   : > { %480 = vmatprep.subr.bf16.mxu0 %v758_v43  ;;  %521 = vmatprep.subr.bf16.mxu1 %v760_v44  ;;  %v784_v60 = vld [vmem:[%s952_s8 + $0x2c] ss:$16 sps:$4 sm:$0xff]   ;;  %v786_v61 = vld [vmem:[%s952_s8 + $0x20] ss:$16 sps:$4 sm:$0xff]   ;;  %v787_v62 = vld [vmem:[%s952_s8 + $0x28] ss:$16 sps:$4 sm:$0xff]  }
  0x33   : > { %v788_v63 = vld [vmem:[%s952_s8 + $0x4] ss:$16 sps:$4 sm:$0xff]   ;;  %v790_v0 = vld [vmem:[%s952_s8 + $0xc] ss:$16 sps:$4 sm:$0xff]   ;;  %v792_v1 = vld [vmem:[%s952_s8] ss:$16 sps:$4 sm:$0xff]  }
  0x34   : > { %v793_v2 = vld [vmem:[%s952_s8 + $0x8] ss:$16 sps:$4 sm:$0xff]   ;;  %v283_v3 = vld [vmem:[%s1008_s1] sm:$0xf]  ;;  %s680_s14 = sshll.u32 %s1016_s13, 2 }
  0x35   : > { %481 = vmatpush1.bf16.msra.mxu0 %v762_v45  ;;  %522 = vmatpush1.bf16.msra.mxu1 %v763_v46  ;;  %s280_s18 = scalar_lea.vmem %s1011_s4, %s680_s14 }
  0x36   : > { %482 = vmatprep.subr.bf16.mxu0 %v764_v47  ;;  %523 = vmatprep.subr.bf16.mxu1 %v766_v48 }
  0x39   : > { %483 = vmatpush1.bf16.msra.mxu0 %v768_v49  ;;  %524 = vmatpush1.bf16.msra.mxu1 %v769_v50 }
  0x3a   : > { %484 = vmatprep.subr.bf16.mxu0 %v770_v51  ;;  %525 = vmatprep.subr.bf16.mxu1 %v772_v52 }
  0x3d   : > { %485 = vmatpush1.bf16.msra.mxu0 %v774_v53  ;;  %526 = vmatpush1.bf16.msra.mxu1 %v775_v54 }
  0x3e   : > { %486 = vmatprep.subr.bf16.mxu0 %v776_v55  ;;  %527 = vmatprep.subr.bf16.mxu1 %v778_v56 }
  0x41   : > { %487 = vmatpush1.bf16.msra.mxu0 %v780_v57  ;;  %528 = vmatpush1.bf16.msra.mxu1 %v781_v58 }
  0x42   : > { %488 = vmatprep.subr.bf16.mxu0 %v782_v59  ;;  %529 = vmatprep.subr.bf16.mxu1 %v784_v60 }
  0x45   : > { %489 = vmatpush1.bf16.msra.mxu0 %v786_v61  ;;  %530 = vmatpush1.bf16.msra.mxu1 %v787_v62 }
  0x46   : > { %490 = vmatprep.subr.bf16.mxu0 %v788_v63  ;;  %531 = vmatprep.subr.bf16.mxu1 %v790_v0 }
  0x49   : > { %491 = vmatpush1.bf16.msra.mxu0 %v792_v1  ;;  %532 = vmatpush1.bf16.msra.mxu1 %v793_v2 }
  0x4c   : > { %509 = vmatmul.mubr.bf16.vlgmr.msra.gmra.mxu0 %v283_v3  ;;  %550 = vmatmul.mubr.bf16.vlgmr.msra.gmra.mxu1 %v283_v3 }
  0xa7   : > { %v562_v4 = vpop.permute.xlu0 %561 }
  0xab   : > { %v572_v7 = vpop.permute.xlu0 %571 }
 0x10c   : > { %v510_v5 = vpop.f32.mrf.mxu0  ;;  %v551_v6 = vpop.f32.mrf.mxu1 }
 0x10d   : > { %v564_v8 = vmul.f32 %v562_v4, %v510_v5  ;;  %v566_v9 = vmul.f32 %v562_v4, %v551_v6 }
 0x10e   : > { %v512_v10 = vpop.f32.mrf.mxu0  ;;  %v553_v11 = vpop.f32.mrf.mxu1 }
 0x10f   : > { %v574_v12 = vadd.f32 %v572_v7, %v564_v8  ;;  %v576_v13 = vadd.f32 %v572_v7, %v566_v9  ;;  %v565_v14 = vmul.f32 %v562_v4, %v512_v10  ;;  %v567_v15 = vmul.f32 %v562_v4, %v553_v11 }
 0x110   : > { %v514_v16 = vpop.f32.mrf.mxu0  ;;  %v555_v17 = vpop.f32.mrf.mxu1 }
 0x111   : > { %v582_v18 = vmul.f32 0.2, %v574_v12  ;;  %v584_v19 = vmul.f32 0.2, %v576_v13  ;;  %v575_v20 = vadd.f32 %v572_v7, %v565_v14  ;;  %v577_v21 = vadd.f32 %v572_v7, %v567_v15 }
 0x112   : > { %v515_v22 = vpop.f32.mrf.mxu0  ;;  %v556_v23 = vpop.f32.mrf.mxu1  ;;  %vm578_vm0 = vcmp.ge.f32.partialorder %v574_v12, 0.0  ;;  %vm580_vm1 = vcmp.ge.f32.partialorder %v576_v13, 0.0 }
 0x113   : > { %vm579_vm2 = vcmp.ge.f32.partialorder %v575_v20, 0.0  ;;  %v583_v24 = vmul.f32 0.2, %v575_v20  ;;  %vm581_vm3 = vcmp.ge.f32.partialorder %v577_v21, 0.0  ;;  %v585_v25 = vmul.f32 0.2, %v577_v21 }
 0x114   : > { %v586_v26 = vsel %vm578_vm0, %v574_v12, %v582_v18  ;;  %v588_v27 = vsel %vm580_vm1, %v576_v13, %v584_v19 }
 0x115   : > { %v587_v28 = vsel %vm579_vm2, %v575_v20, %v583_v24  ;;  %v589_v29 = vsel %vm581_vm3, %v577_v21, %v585_v25 }
 0x116   : > { %v718_v30 = vpack.c.bf16 %v587_v28, %v586_v26  ;;  %v719_v31 = vpack.c.bf16 %v589_v29, %v588_v27 }
 0x118   : > { %606 = vst [vmem:[%s280_s18] sm:$0xff] %v718_v30  ;;  %607 = vst [vmem:[%s280_s18 + $0x8] sm:$0xff] %v719_v31 }
 0x119 PF: > { %p11_p9 = scmp.ge.s32.totalorder %s861_s19, 10   ;;  %s1012_s15 = smov %s812_s16 }
 0x11a   : > { %s1013_s16 = smov %s870_s22  ;;  %s1014_s17 = smov %s861_s19 }
 0x11b   :  { %13 = sbr.rel (!%p11_p9) target bundleno = 2 (0x2), region = 94 }

// kernel: discriminator_forward.7
= control target key start
LH: loop header
LB: loop body
LE: loop exit
PB: predicated region body
PF: predicated region fallthrough
CT: control target
= control target key end

     0   :  { %v1140_v1 = vmov 0   ;;  %s1499_s0 = inlined_call_operand.vmem [shape: bf16[384,512], index: 0, kind: input, shape index: {}]   ;;  %s1500_s1 = inlined_call_operand.vmem [shape: bf16[16,384], index: 1, kind: input, shape index: {}]   ;;  %s1501_s2 = inlined_call_operand.vmem [shape: f32[16,1], index: 2, kind: input, shape index: {}]   ;;  %s1502_s3 = inlined_call_operand.vmem [shape: f32[16,1], index: 3, kind: input, shape index: {}]   ;;  %s1503_s4 = inlined_call_operand.vmem [shape: bf16[16,512], index: 4, kind: output, shape index: {}]  }
   0x1   :  { %v992_v0 = vld [vmem:[%s1499_s0 + $0xe4] ss:$16 sps:$4 sm:$0xff]   ;;  %689 = vmatprep.mubr.bf16.mxu1 %v1140_v1  ;;  %990 = vset.pattern.permute.xlu0 %v1140_v1  ;;  %v996_v3 = vld [vmem:[%s1499_s0 + $0xe0] ss:$16 sps:$4 sm:$0xff]   ;;  %v1045_v34 = vld [vmem:[%s1499_s0 + $0xec] ss:$16 sps:$4 sm:$0xff]  }
   0x2   :  { %v994_v2 = vld [vmem:[%s1499_s0 + $0x2e4] ss:$16 sps:$4 sm:$0xff]   ;;  %991 = vset.pattern.permute.xlu1 %v1140_v1  ;;  %614 = vmatprep.subr.bf16.mxu0 %v992_v0  ;;  %v997_v4 = vld [vmem:[%s1499_s0 + $0x2e0] ss:$16 sps:$4 sm:$0xff]   ;;  %v1043_v36 = vld [vmem:[%s1499_s0 + $0xe8] ss:$16 sps:$4 sm:$0xff]  }
   0x3   :  { %657 = vmatprep.subr.bf16.mxu1 %v994_v2  ;;  %v998_v5 = vld [vmem:[%s1499_s0 + $0xc4] ss:$16 sps:$4 sm:$0xff]   ;;  %615 = vmatpush1.bf16.msra.mxu0 %v996_v3  ;;  %v1002_v7 = vld [vmem:[%s1499_s0 + $0xc0] ss:$16 sps:$4 sm:$0xff]   ;;  %v1051_v39 = vld [vmem:[%s1499_s0 + $0xcc] ss:$16 sps:$4 sm:$0xff]  }
   0x4   :  { %658 = vmatpush1.bf16.msra.mxu1 %v997_v4  ;;  %v1000_v6 = vld [vmem:[%s1499_s0 + $0x2c4] ss:$16 sps:$4 sm:$0xff]   ;;  %616 = vmatprep.subr.bf16.mxu0 %v998_v5  ;;  %v1003_v8 = vld [vmem:[%s1499_s0 + $0x2c0] ss:$16 sps:$4 sm:$0xff]   ;;  %v1049_v40 = vld [vmem:[%s1499_s0 + $0xc8] ss:$16 sps:$4 sm:$0xff]  }
   0x5   :  { %659 = vmatprep.subr.bf16.mxu1 %v1000_v6  ;;  %v1004_v9 = vld [vmem:[%s1499_s0 + $0xa4] ss:$16 sps:$4 sm:$0xff]   ;;  %v1008_v11 = vld [vmem:[%s1499_s0 + $0xa0] ss:$16 sps:$4 sm:$0xff]   ;;  %v1057_v43 = vld [vmem:[%s1499_s0 + $0xac] ss:$16 sps:$4 sm:$0xff]  }
   0x6   :  { %v1006_v10 = vld [vmem:[%s1499_s0 + $0x2a4] ss:$16 sps:$4 sm:$0xff]   ;;  %v1009_v12 = vld [vmem:[%s1499_s0 + $0x2a0] ss:$16 sps:$4 sm:$0xff]   ;;  %v1055_v44 = vld [vmem:[%s1499_s0 + $0xa8] ss:$16 sps:$4 sm:$0xff]  }
   0x7   :  { %617 = vmatpush1.bf16.msra.mxu0 %v1002_v7  ;;  %v1010_v13 = vld [vmem:[%s1499_s0 + $0x84] ss:$16 sps:$4 sm:$0xff]   ;;  %v1014_v15 = vld [vmem:[%s1499_s0 + $0x80] ss:$16 sps:$4 sm:$0xff]   ;;  %v1063_v47 = vld [vmem:[%s1499_s0 + $0x8c] ss:$16 sps:$4 sm:$0xff]  }
   0x8   :  { %660 = vmatpush1.bf16.msra.mxu1 %v1003_v8  ;;  %618 = vmatprep.subr.bf16.mxu0 %v1004_v9  ;;  %v1012_v14 = vld [vmem:[%s1499_s0 + $0x284] ss:$16 sps:$4 sm:$0xff]   ;;  %v1015_v16 = vld [vmem:[%s1499_s0 + $0x280] ss:$16 sps:$4 sm:$0xff]   ;;  %v1061_v48 = vld [vmem:[%s1499_s0 + $0x88] ss:$16 sps:$4 sm:$0xff]  }
   0x9   :  { %661 = vmatprep.subr.bf16.mxu1 %v1006_v10  ;;  %v1016_v17 = vld [vmem:[%s1499_s0 + $0x64] ss:$16 sps:$4 sm:$0xff]   ;;  %v1020_v19 = vld [vmem:[%s1499_s0 + $0x60] ss:$16 sps:$4 sm:$0xff]   ;;  %v1069_v52 = vld [vmem:[%s1499_s0 + $0x6c] ss:$16 sps:$4 sm:$0xff]  }
   0xa   :  { %v1018_v18 = vld [vmem:[%s1499_s0 + $0x264] ss:$16 sps:$4 sm:$0xff]   ;;  %v1021_v20 = vld [vmem:[%s1499_s0 + $0x260] ss:$16 sps:$4 sm:$0xff]   ;;  %v1067_v53 = vld [vmem:[%s1499_s0 + $0x68] ss:$16 sps:$4 sm:$0xff]  }
   0xb   :  { %619 = vmatpush1.bf16.msra.mxu0 %v1008_v11  ;;  %v1022_v21 = vld [vmem:[%s1499_s0 + $0x44] ss:$16 sps:$4 sm:$0xff]   ;;  %v1026_v23 = vld [vmem:[%s1499_s0 + $0x40] ss:$16 sps:$4 sm:$0xff]   ;;  %v1075_v56 = vld [vmem:[%s1499_s0 + $0x4c] ss:$16 sps:$4 sm:$0xff]  }
   0xc   :  { %662 = vmatpush1.bf16.msra.mxu1 %v1009_v12  ;;  %620 = vmatprep.subr.bf16.mxu0 %v1010_v13  ;;  %v1024_v22 = vld [vmem:[%s1499_s0 + $0x244] ss:$16 sps:$4 sm:$0xff]   ;;  %v1027_v24 = vld [vmem:[%s1499_s0 + $0x240] ss:$16 sps:$4 sm:$0xff]   ;;  %v1073_v57 = vld [vmem:[%s1499_s0 + $0x48] ss:$16 sps:$4 sm:$0xff]  }
   0xd   :  { %663 = vmatprep.subr.bf16.mxu1 %v1012_v14  ;;  %v1028_v25 = vld [vmem:[%s1499_s0 + $0x24] ss:$16 sps:$4 sm:$0xff]   ;;  %v1032_v27 = vld [vmem:[%s1499_s0 + $0x20] ss:$16 sps:$4 sm:$0xff]   ;;  %v1081_v60 = vld [vmem:[%s1499_s0 + $0x2c] ss:$16 sps:$4 sm:$0xff]  }
   0xe   :  { %v1030_v26 = vld [vmem:[%s1499_s0 + $0x224] ss:$16 sps:$4 sm:$0xff]   ;;  %v1033_v28 = vld [vmem:[%s1499_s0 + $0x220] ss:$16 sps:$4 sm:$0xff]   ;;  %v1079_v61 = vld [vmem:[%s1499_s0 + $0x28] ss:$16 sps:$4 sm:$0xff]  }
   0xf   :  { %621 = vmatpush1.bf16.msra.mxu0 %v1014_v15  ;;  %v1034_v29 = vld [vmem:[%s1499_s0 + $0x4] ss:$16 sps:$4 sm:$0xff]   ;;  %v1038_v31 = vld [vmem:[%s1499_s0] ss:$16 sps:$4 sm:$0xff]   ;;  %v1087_v0 = vld [vmem:[%s1499_s0 + $0xc] ss:$16 sps:$4 sm:$0xff]  }
  0x10   :  { %664 = vmatpush1.bf16.msra.mxu1 %v1015_v16  ;;  %622 = vmatprep.subr.bf16.mxu0 %v1016_v17  ;;  %v1036_v30 = vld [vmem:[%s1499_s0 + $0x204] ss:$16 sps:$4 sm:$0xff]   ;;  %v1039_v32 = vld [vmem:[%s1499_s0 + $0x200] ss:$16 sps:$4 sm:$0xff]   ;;  %v1085_v2 = vld [vmem:[%s1499_s0 + $0x8] ss:$16 sps:$4 sm:$0xff]  }
  0x11   :  { %665 = vmatprep.subr.bf16.mxu1 %v1018_v18  ;;  %v1040_v33 = vld [vmem:[%s1499_s0 + $0x1e4] ss:$16 sps:$4 sm:$0xff]   ;;  %v1046_v37 = vld [vmem:[%s1499_s0 + $0x1e0] ss:$16 sps:$4 sm:$0xff]   ;;  %v1094_v4 = vld [vmem:[%s1499_s0 + $0x1ec] ss:$16 sps:$4 sm:$0xff]  }
  0x12   :  { %v1274_v35 = vld [vmem:[%s1500_s1 + $0x8] ss:$12 sps:$4 sm:$0xff]   ;;  %v1052_v41 = vld [vmem:[%s1499_s0 + $0x1c0] ss:$16 sps:$4 sm:$0xff]   ;;  %v1097_v5 = vld [vmem:[%s1499_s0 + $0x2ec] ss:$16 sps:$4 sm:$0xff]  }
  0x13   :  { %623 = vmatpush1.bf16.msra.mxu0 %v1020_v19  ;;  %v1047_v38 = vld [vmem:[%s1499_s0 + $0x1c4] ss:$16 sps:$4 sm:$0xff]   ;;  %v1058_v45 = vld [vmem:[%s1499_s0 + $0x1a0] ss:$16 sps:$4 sm:$0xff]   ;;  %v1092_v7 = vld [vmem:[%s1499_s0 + $0x1e8] ss:$16 sps:$4 sm:$0xff]  }
  0x14   :  { %666 = vmatpush1.bf16.msra.mxu1 %v1021_v20  ;;  %624 = vmatprep.subr.bf16.mxu0 %v1022_v21  ;;  %v1053_v42 = vld [vmem:[%s1499_s0 + $0x1a4] ss:$16 sps:$4 sm:$0xff]   ;;  %v1064_v49 = vld [vmem:[%s1499_s0 + $0x180] ss:$16 sps:$4 sm:$0xff]   ;;  %v1095_v8 = vld [vmem:[%s1499_s0 + $0x2e8] ss:$16 sps:$4 sm:$0xff]  }
  0x15   :  { %667 = vmatprep.subr.bf16.mxu1 %v1024_v22  ;;  %v1059_v46 = vld [vmem:[%s1499_s0 + $0x184] ss:$16 sps:$4 sm:$0xff]   ;;  %v1070_v54 = vld [vmem:[%s1499_s0 + $0x160] ss:$16 sps:$4 sm:$0xff]   ;;  %v1100_v9 = vld [vmem:[%s1499_s0 + $0x1cc] ss:$16 sps:$4 sm:$0xff]  }
  0x16   :  { %v1065_v50 = vld [vmem:[%s1499_s0 + $0x164] ss:$16 sps:$4 sm:$0xff]   ;;  %v1076_v58 = vld [vmem:[%s1499_s0 + $0x140] ss:$16 sps:$4 sm:$0xff]   ;;  %v1103_v10 = vld [vmem:[%s1499_s0 + $0x2cc] ss:$16 sps:$4 sm:$0xff]  }
  0x17   :  { %625 = vmatpush1.bf16.msra.mxu0 %v1026_v23  ;;  %v1091_v51 = vld [vmem:[%s1500_s1 + $0x4] ss:$12 sps:$4 sm:$0xff]   ;;  %v1379_v6 = vld [vmem:[%s1500_s1] ss:$12 sps:$4 sm:$0xff]   ;;  %v1098_v13 = vld [vmem:[%s1499_s0 + $0x1c8] ss:$16 sps:$4 sm:$0xff]  }
  0x18   :  { %668 = vmatpush1.bf16.msra.mxu1 %v1027_v24  ;;  %626 = vmatprep.subr.bf16.mxu0 %v1028_v25  ;;  %v1071_v55 = vld [vmem:[%s1499_s0 + $0x144] ss:$16 sps:$4 sm:$0xff]   ;;  %v1082_v62 = vld [vmem:[%s1499_s0 + $0x120] ss:$16 sps:$4 sm:$0xff]   ;;  %v1101_v14 = vld [vmem:[%s1499_s0 + $0x2c8] ss:$16 sps:$4 sm:$0xff]  }
  0x19   :  { %669 = vmatprep.subr.bf16.mxu1 %v1030_v26  ;;  %646 = vmatprep.mubr.bf16.mxu0 %v1091_v51  ;;  %v1077_v59 = vld [vmem:[%s1499_s0 + $0x124] ss:$16 sps:$4 sm:$0xff]   ;;  %v1088_v3 = vld [vmem:[%s1499_s0 + $0x100] ss:$16 sps:$4 sm:$0xff]   ;;  %v787_v15 = vld [vmem:[%s1501_s2 + $0x8] sm:$0xff] }
  0x1a   :  { %v1083_v63 = vld [vmem:[%s1499_s0 + $0x104] ss:$16 sps:$4 sm:$0xff]   ;;  %v1106_v16 = vld [vmem:[%s1499_s0 + $0x1ac] ss:$16 sps:$4 sm:$0xff]   ;;  %v1104_v19 = vld [vmem:[%s1499_s0 + $0x1a8] ss:$16 sps:$4 sm:$0xff]  }
  0x1b   :  { %627 = vmatpush1.bf16.msra.mxu0 %v1032_v27  ;;  %v786_v11 = vld [vmem:[%s1501_s2] sm:$0xff]  ;;  %v1109_v17 = vld [vmem:[%s1499_s0 + $0x2ac] ss:$16 sps:$4 sm:$0xff]   ;;  %v1107_v20 = vld [vmem:[%s1499_s0 + $0x2a8] ss:$16 sps:$4 sm:$0xff]  }
  0x1c   :  { %670 = vmatpush1.bf16.msra.mxu1 %v1033_v28  ;;  %628 = vmatprep.subr.bf16.mxu0 %v1034_v29  ;;  %v806_v12 = vld [vmem:[%s1502_s3] sm:$0xff]  ;;  %v807_v18 = vld [vmem:[%s1502_s3 + $0x8] sm:$0xff] }
  0x1d   :  { %671 = vmatprep.subr.bf16.mxu1 %v1036_v30  ;;  %790 = vperm.xlu0 %990, %v786_v11   ;;  %v1115_v21 = vld [vmem:[%s1499_s0 + $0x28c] ss:$16 sps:$4 sm:$0xff]   ;;  %v1110_v22 = vld [vmem:[%s1499_s0 + $0x188] ss:$16 sps:$4 sm:$0xff]  }
  0x1e   :  { %810 = vperm.xlu1 %991, %v806_v12   ;;  %v1113_v23 = vld [vmem:[%s1499_s0 + $0x288] ss:$16 sps:$4 sm:$0xff]   ;;  %v1118_v24 = vld [vmem:[%s1499_s0 + $0x16c] ss:$16 sps:$4 sm:$0xff]  }
  0x1f   :  { %629 = vmatpush1.bf16.msra.mxu0 %v1038_v31  ;;  %v1121_v25 = vld [vmem:[%s1499_s0 + $0x26c] ss:$16 sps:$4 sm:$0xff]   ;;  %v1116_v26 = vld [vmem:[%s1499_s0 + $0x168] ss:$16 sps:$4 sm:$0xff]  }
  0x20   :  { %672 = vmatpush1.bf16.msra.mxu1 %v1039_v32  ;;  %630 = vmatprep.subr.bf16.mxu0 %v1040_v33  ;;  %v1119_v27 = vld [vmem:[%s1499_s0 + $0x268] ss:$16 sps:$4 sm:$0xff]   ;;  %v1124_v28 = vld [vmem:[%s1499_s0 + $0x14c] ss:$16 sps:$4 sm:$0xff]  }
  0x21   :  { %700 = vmatprep.subr.bf16.mxu1 %v1045_v34  ;;  %795 = vperm.xlu0 %990, %v787_v15   ;;  %v1127_v29 = vld [vmem:[%s1499_s0 + $0x24c] ss:$16 sps:$4 sm:$0xff]   ;;  %v1122_v30 = vld [vmem:[%s1499_s0 + $0x148] ss:$16 sps:$4 sm:$0xff]  }
  0x22   :  { %815 = vperm.xlu1 %991, %v807_v18   ;;  %v1125_v31 = vld [vmem:[%s1499_s0 + $0x248] ss:$16 sps:$4 sm:$0xff]   ;;  %v1130_v32 = vld [vmem:[%s1499_s0 + $0x12c] ss:$16 sps:$4 sm:$0xff]  }
  0x23   :  { %690 = vmatmul.mubr.bf16.vlgmr.msra.gmra.mxu1 %v1274_v35  ;;  %631 = vmatpush2.bf16.msra.mxu0 %v1046_v37  ;;  %v1133_v33 = vld [vmem:[%s1499_s0 + $0x22c] ss:$16 sps:$4 sm:$0xff]   ;;  %v1128_v34 = vld [vmem:[%s1499_s0 + $0x128] ss:$16 sps:$4 sm:$0xff]  }
  0x24   :  { %701 = vmatpush1.bf16.msra.mxu1 %v1043_v36  ;;  %632 = vmatprep.subr.bf16.mxu0 %v1047_v38  ;;  %v1131_v36 = vld [vmem:[%s1499_s0 + $0x228] ss:$16 sps:$4 sm:$0xff]   ;;  %v1136_v37 = vld [vmem:[%s1499_s0 + $0x10c] ss:$16 sps:$4 sm:$0xff]  }
  0x25   :  { %702 = vmatprep.subr.bf16.mxu1 %v1051_v39  ;;  %732 = vmatprep.mubr.bf16.mxu1 %v1091_v51  ;;  %v1139_v38 = vld [vmem:[%s1499_s0 + $0x20c] ss:$16 sps:$4 sm:$0xff]   ;;  %v1134_v39 = vld [vmem:[%s1499_s0 + $0x108] ss:$16 sps:$4 sm:$0xff]  }
  0x27   :  { %633 = vmatpush2.bf16.msra.mxu0 %v1052_v41 }
  0x28   :  { %703 = vmatpush1.bf16.msra.mxu1 %v1049_v40  ;;  %634 = vmatprep.subr.bf16.mxu0 %v1053_v42  ;;  %v1137_v40 = vld [vmem:[%s1499_s0 + $0x208] ss:$16 sps:$4 sm:$0xff]  }
  0x29   :  { %704 = vmatprep.subr.bf16.mxu1 %v1057_v43 }
  0x2b   :  { %635 = vmatpush2.bf16.msra.mxu0 %v1058_v45 }
  0x2c   :  { %705 = vmatpush1.bf16.msra.mxu1 %v1055_v44  ;;  %636 = vmatprep.subr.bf16.mxu0 %v1059_v46 }
  0x2d   :  { %706 = vmatprep.subr.bf16.mxu1 %v1063_v47 }
  0x2f   :  { %637 = vmatpush2.bf16.msra.mxu0 %v1064_v49 }
  0x30   :  { %707 = vmatpush1.bf16.msra.mxu1 %v1061_v48  ;;  %638 = vmatprep.subr.bf16.mxu0 %v1065_v50 }
  0x31   :  { %708 = vmatprep.subr.bf16.mxu1 %v1069_v52 }
  0x33   :  { %639 = vmatpush2.bf16.msra.mxu0 %v1070_v54 }
  0x34   :  { %709 = vmatpush1.bf16.msra.mxu1 %v1067_v53  ;;  %640 = vmatprep.subr.bf16.mxu0 %v1071_v55 }
  0x35   :  { %710 = vmatprep.subr.bf16.mxu1 %v1075_v56 }
  0x37   :  { %641 = vmatpush2.bf16.msra.mxu0 %v1076_v58 }
  0x38   :  { %711 = vmatpush1.bf16.msra.mxu1 %v1073_v57  ;;  %642 = vmatprep.subr.bf16.mxu0 %v1077_v59 }
  0x39   :  { %712 = vmatprep.subr.bf16.mxu1 %v1081_v60 }
  0x3b   :  { %643 = vmatpush2.bf16.msra.mxu0 %v1082_v62 }
  0x3c   :  { %713 = vmatpush1.bf16.msra.mxu1 %v1079_v61  ;;  %644 = vmatprep.subr.bf16.mxu0 %v1083_v63 }
  0x3d   :  { %714 = vmatprep.subr.bf16.mxu1 %v1087_v0 }
  0x3f   :  { %645 = vmatpush2.bf16.msra.mxu0 %v1088_v3 }
  0x40   :  { %715 = vmatpush1.bf16.msra.mxu1 %v1085_v2  ;;  %743 = vmatprep.subr.bf16.mxu0 %v1097_v5 }
  0x41   :  { %716 = vmatprep.subr.bf16.mxu1 %v1094_v4 }
  0x42   :  { %647 = vmatmul.mubr.bf16.vlgmr.msra.gmra.mxu0 %v1379_v6 }
  0x43   :  { %744 = vmatpush1.bf16.msra.mxu0 %v1095_v8  ;;  %775 = vmatprep.mubr.bf16.mxu0 %v1140_v1  ;;  %v1112_v1 = vld [vmem:[%s1499_s0 + $0x18c] ss:$16 sps:$4 sm:$0xff]  }
  0x44   :  { %717 = vmatpush2.bf16.msra.mxu1 %v1092_v7  ;;  %745 = vmatprep.subr.bf16.mxu0 %v1103_v10 }
  0x45   :  { %718 = vmatprep.subr.bf16.mxu1 %v1100_v9 }
  0x47   :  { %746 = vmatpush1.bf16.msra.mxu0 %v1101_v14 }
  0x48   :  { %719 = vmatpush2.bf16.msra.mxu1 %v1098_v13  ;;  %747 = vmatprep.subr.bf16.mxu0 %v1109_v17 }
  0x49   :  { %720 = vmatprep.subr.bf16.mxu1 %v1106_v16 }
  0x4b   :  { %748 = vmatpush1.bf16.msra.mxu0 %v1107_v20 }
  0x4c   :  { %721 = vmatpush2.bf16.msra.mxu1 %v1104_v19  ;;  %749 = vmatprep.subr.bf16.mxu0 %v1115_v21 }
  0x4d   :  { %722 = vmatprep.subr.bf16.mxu1 %v1112_v1 }
  0x4f   :  { %750 = vmatpush1.bf16.msra.mxu0 %v1113_v23 }
  0x50   :  { %723 = vmatpush2.bf16.msra.mxu1 %v1110_v22  ;;  %751 = vmatprep.subr.bf16.mxu0 %v1121_v25 }
  0x51   :  { %724 = vmatprep.subr.bf16.mxu1 %v1118_v24 }
  0x53   :  { %752 = vmatpush1.bf16.msra.mxu0 %v1119_v27 }
  0x54   :  { %725 = vmatpush2.bf16.msra.mxu1 %v1116_v26  ;;  %753 = vmatprep.subr.bf16.mxu0 %v1127_v29 }
  0x55   :  { %726 = vmatprep.subr.bf16.mxu1 %v1124_v28 }
  0x57   :  { %754 = vmatpush1.bf16.msra.mxu0 %v1125_v31 }
  0x58   :  { %727 = vmatpush2.bf16.msra.mxu1 %v1122_v30  ;;  %755 = vmatprep.subr.bf16.mxu0 %v1133_v33 }
  0x59   :  { %728 = vmatprep.subr.bf16.mxu1 %v1130_v32 }
  0x5b   :  { %756 = vmatpush1.bf16.msra.mxu0 %v1131_v36 }
  0x5c   :  { %729 = vmatpush2.bf16.msra.mxu1 %v1128_v34  ;;  %757 = vmatprep.subr.bf16.mxu0 %v1139_v38 }
  0x5d   :  { %730 = vmatprep.subr.bf16.mxu1 %v1136_v37 }
  0x5f   :  { %758 = vmatpush1.bf16.msra.mxu0 %v1137_v40 }
  0x60   :  { %731 = vmatpush2.bf16.msra.mxu1 %v1134_v39 }
  0x62   :  { %776 = vmatmul.mubr.bf16.vlgmr.msra.gmra.mxu0 %v1274_v35 }
  0x63   :  { %733 = vmatmul.mubr.bf16.vlgmr.msra.gmra.mxu1 %v1379_v6 }
  0x98   :  { %v791_v42 = vpop.permute.xlu0 %790 }
  0x99   :  { %v811_v45 = vpop.permute.xlu1 %810 }
  0x9c   :  { %v796_v52 = vpop.permute.xlu0 %795 }
  0x9d   :  { %v816_v57 = vpop.permute.xlu1 %815 }
  0xe3   :  { %v691_v41 = vpop.f32.mrf.mxu1 }
  0xe5   :  { %v693_v43 = vpop.f32.mrf.mxu1 }
  0xe7   :  { %v695_v48 = vpop.f32.mrf.mxu1 }
  0xe9   :  { %v697_v58 = vpop.f32.mrf.mxu1 }
 0x102   :  { %v648_v44 = vpop.f32.mrf.mxu0 }
 0x103   :  { %v692_v46 = vadd.f32 %v691_v41, %v648_v44 }
 0x104   :  { %v650_v47 = vpop.f32.mrf.mxu0 }
 0x105   :  { %v798_v49 = vmul.f32 %v791_v42, %v692_v46  ;;  %v694_v50 = vadd.f32 %v693_v43, %v650_v47 }
 0x106   :  { %v652_v51 = vpop.f32.mrf.mxu0 }
 0x107   :  { %v799_v53 = vmul.f32 %v791_v42, %v694_v50  ;;  %v818_v54 = vadd.f32 %v811_v45, %v798_v49  ;;  %v696_v55 = vadd.f32 %v695_v48, %v652_v51 }
 0x108   :  { %v654_v56 = vpop.f32.mrf.mxu0 }
 0x109   :  { %v819_v59 = vadd.f32 %v811_v45, %v799_v53  ;;  %v834_v35 = vmul.f32 0.2, %v818_v54  ;;  %v802_v60 = vmul.f32 %v796_v52, %v696_v55  ;;  %vm826_vm0 = vcmp.ge.f32.partialorder %v818_v54, 0.0 }
 0x10a   :  { %v698_v61 = vadd.f32 %v697_v58, %v654_v56 }
 0x10b   :  { %vm827_vm1 = vcmp.ge.f32.partialorder %v819_v59, 0.0  ;;  %v835_v62 = vmul.f32 0.2, %v819_v59  ;;  %v822_v63 = vadd.f32 %v816_v57, %v802_v60  ;;  %v842_v2 = vsel %vm826_vm0, %v818_v54, %v834_v35 }
 0x10c   :  { %v803_v0 = vmul.f32 %v796_v52, %v698_v61 }
 0x10d   :  { %v843_v3 = vsel %vm827_vm1, %v819_v59, %v835_v62  ;;  %v838_v6 = vmul.f32 0.2, %v822_v63  ;;  %vm830_vm2 = vcmp.ge.f32.partialorder %v822_v63, 0.0 }
 0x10e   :  { %v985_v4 = vpack.c.bf16 %v843_v3, %v842_v2  ;;  %v823_v5 = vadd.f32 %v816_v57, %v803_v0 }
 0x10f   :  { %v846_v8 = vsel %vm830_vm2, %v822_v63, %v838_v6 }
 0x110   :  { %874 = vst [vmem:[%s1503_s4] sm:$0xff] %v985_v4  ;;  %vm831_vm3 = vcmp.ge.f32.partialorder %v823_v5, 0.0  ;;  %v839_v7 = vmul.f32 0.2, %v823_v5 }
 0x112   :  { %v847_v9 = vsel %vm831_vm3, %v823_v5, %v839_v7 }
 0x113   :  { %v987_v10 = vpack.c.bf16 %v847_v9, %v846_v8 }
 0x115   :  { %876 = vst [vmem:[%s1503_s4 + $0x10] sm:$0xff] %v987_v10 }
 0x122   :  { %v777_v12 = vpop.f32.mrf.mxu0 }
 0x123   :  { %v734_v11 = vpop.f32.mrf.mxu1 }
 0x124   :  { %v778_v13 = vadd.f32 %v777_v12, %v734_v11  ;;  %v779_v15 = vpop.f32.mrf.mxu0 }
 0x125   :  { %v736_v14 = vpop.f32.mrf.mxu1 }
 0x126   :  { %v800_v16 = vmul.f32 %v791_v42, %v778_v13  ;;  %v780_v17 = vadd.f32 %v779_v15, %v736_v14  ;;  %v781_v19 = vpop.f32.mrf.mxu0 }
 0x127   :  { %v738_v18 = vpop.f32.mrf.mxu1 }
 0x128   :  { %v820_v20 = vadd.f32 %v811_v45, %v800_v16  ;;  %v801_v1 = vmul.f32 %v791_v42, %v780_v17  ;;  %v782_v21 = vadd.f32 %v781_v19, %v738_v18  ;;  %v783_v23 = vpop.f32.mrf.mxu0 }
 0x129   :  { %v740_v22 = vpop.f32.mrf.mxu1 }
 0x12a   :  { %v836_v24 = vmul.f32 0.2, %v820_v20  ;;  %v821_v25 = vadd.f32 %v811_v45, %v801_v1  ;;  %v804_v26 = vmul.f32 %v796_v52, %v782_v21  ;;  %vm828_vm4 = vcmp.ge.f32.partialorder %v820_v20, 0.0 }
 0x12b   :  { %v784_v27 = vadd.f32 %v783_v23, %v740_v22 }
 0x12c   :  { %vm829_vm5 = vcmp.ge.f32.partialorder %v821_v25, 0.0  ;;  %v837_v28 = vmul.f32 0.2, %v821_v25  ;;  %v824_v29 = vadd.f32 %v816_v57, %v804_v26  ;;  %v844_v31 = vsel %vm828_vm4, %v820_v20, %v836_v24 }
 0x12d   :  { %v805_v30 = vmul.f32 %v796_v52, %v784_v27 }
 0x12e   :  { %v845_v32 = vsel %vm829_vm5, %v821_v25, %v837_v28  ;;  %v840_v34 = vmul.f32 0.2, %v824_v29  ;;  %vm832_vm6 = vcmp.ge.f32.partialorder %v824_v29, 0.0 }
 0x12f   :  { %v986_v33 = vpack.c.bf16 %v845_v32, %v844_v31  ;;  %v825_v36 = vadd.f32 %v816_v57, %v805_v30 }
 0x130   :  { %v848_v38 = vsel %vm832_vm6, %v824_v29, %v840_v34 }
 0x131   :  { %875 = vst [vmem:[%s1503_s4 + $0x8] sm:$0xff] %v986_v33  ;;  %vm833_vm7 = vcmp.ge.f32.partialorder %v825_v36, 0.0  ;;  %v841_v37 = vmul.f32 0.2, %v825_v36 }
 0x133   :  { %v849_v39 = vsel %vm833_vm7, %v825_v36, %v841_v37 }
 0x134   :  { %v988_v40 = vpack.c.bf16 %v849_v39, %v848_v38 }
 0x136   :  { %877 = vst [vmem:[%s1503_s4 + $0x18] sm:$0xff] %v988_v40 }

// kernel: discriminator_forward.8
= control target key start
LH: loop header
LB: loop body
LE: loop exit
PB: predicated region body
PF: predicated region fallthrough
CT: control target
= control target key end

     0   :  { %v961_v1 = vmov 0   ;;  %s1197_s0 = inlined_call_operand.vmem [shape: bf16[768,128], index: 0, kind: input, shape index: {}]   ;;  %s1198_s1 = inlined_call_operand.vmem [shape: bf16[32,768], index: 1, kind: input, shape index: {}]   ;;  %s1199_s2 = inlined_call_operand.vmem [shape: f32[32,1], index: 2, kind: input, shape index: {}]   ;;  %s1200_s3 = inlined_call_operand.vmem [shape: f32[32,1], index: 3, kind: input, shape index: {}]   ;;  %s1201_s4 = inlined_call_operand.vmem [shape: bf16[32,128], index: 4, kind: output, shape index: {}]  }
   0x1   :  { %v895_v0 = vld [vmem:[%s1197_s0 + $0x78] sm:$0xff]   ;;  %894 = vset.pattern.permute.xlu1 %v961_v1  ;;  %893 = vset.pattern.permute.xlu0 %v961_v1  ;;  %v899_v5 = vld [vmem:[%s1197_s0 + $0x70] sm:$0xff]   ;;  %v903_v9 = vld [vmem:[%s1197_s0 + $0x68] sm:$0xff]  }
   0x2   :  { %v896_v2 = vld [vmem:[%s1197_s0 + $0xf8] sm:$0xff]   ;;  %792 = vmatprep.subr.bf16.mxu0 %v895_v0  ;;  %v900_v6 = vld [vmem:[%s1197_s0 + $0xf0] sm:$0xff]   ;;  %v904_v10 = vld [vmem:[%s1197_s0 + $0xe8] sm:$0xff]  }
   0x3   :  { %v897_v3 = vld [vmem:[%s1197_s0 + $0x38] sm:$0xff]   ;;  %820 = vmatprep.subr.bf16.mxu1 %v896_v2  ;;  %v901_v7 = vld [vmem:[%s1197_s0 + $0x30] sm:$0xff]   ;;  %v905_v11 = vld [vmem:[%s1197_s0 + $0x28] sm:$0xff]  }
   0x4   :  { %v898_v4 = vld [vmem:[%s1197_s0 + $0xb8] sm:$0xff]   ;;  %793 = vmatpush3.bf16.msra.mxu0 %v897_v3  ;;  %v902_v8 = vld [vmem:[%s1197_s0 + $0xb0] sm:$0xff]   ;;  %v906_v12 = vld [vmem:[%s1197_s0 + $0xa8] sm:$0xff]  }
   0x5   :  { %821 = vmatpush3.bf16.msra.mxu1 %v898_v4  ;;  %794 = vmatprep.subr.bf16.mxu0 %v899_v5  ;;  %v907_v13 = vld [vmem:[%s1197_s0 + $0x60] sm:$0xff]   ;;  %v911_v17 = vld [vmem:[%s1197_s0 + $0x58] sm:$0xff]   ;;  %v915_v21 = vld [vmem:[%s1197_s0 + $0x50] sm:$0xff]  }
   0x6   :  { %822 = vmatprep.subr.bf16.mxu1 %v900_v6  ;;  %v908_v14 = vld [vmem:[%s1197_s0 + $0xe0] sm:$0xff]   ;;  %v912_v18 = vld [vmem:[%s1197_s0 + $0xd8] sm:$0xff]   ;;  %v916_v22 = vld [vmem:[%s1197_s0 + $0xd0] sm:$0xff]  }
   0x7   :  { %v909_v15 = vld [vmem:[%s1197_s0 + $0x20] sm:$0xff]   ;;  %v913_v19 = vld [vmem:[%s1197_s0 + $0x18] sm:$0xff]   ;;  %v917_v23 = vld [vmem:[%s1197_s0 + $0x10] sm:$0xff]  }
   0x8   :  { %795 = vmatpush3.bf16.msra.mxu0 %v901_v7  ;;  %v910_v16 = vld [vmem:[%s1197_s0 + $0xa0] sm:$0xff]   ;;  %v914_v20 = vld [vmem:[%s1197_s0 + $0x98] sm:$0xff]   ;;  %v918_v24 = vld [vmem:[%s1197_s0 + $0x90] sm:$0xff]  }
   0x9   :  { %823 = vmatpush3.bf16.msra.mxu1 %v902_v8  ;;  %796 = vmatprep.subr.bf16.mxu0 %v903_v9  ;;  %v919_v25 = vld [vmem:[%s1197_s0 + $0x48] sm:$0xff]   ;;  %v923_v29 = vld [vmem:[%s1197_s0 + $0x40] sm:$0xff]   ;;  %v933_v37 = vld [vmem:[%s1197_s0 + $0x178] sm:$0xff]  }
   0xa   :  { %824 = vmatprep.subr.bf16.mxu1 %v904_v10  ;;  %v920_v26 = vld [vmem:[%s1197_s0 + $0xc8] sm:$0xff]   ;;  %v924_v30 = vld [vmem:[%s1197_s0 + $0xc0] sm:$0xff]   ;;  %v934_v38 = vld [vmem:[%s1197_s0 + $0x138] sm:$0xff]  }
   0xb   :  { %v921_v27 = vld [vmem:[%s1197_s0 + $0x8] sm:$0xff]   ;;  %v925_v31 = vld [vmem:[%s1197_s0] sm:$0xff]   ;;  %v935_v39 = vld [vmem:[%s1197_s0 + $0x170] sm:$0xff]  }
   0xc   :  { %797 = vmatpush3.bf16.msra.mxu0 %v905_v11  ;;  %v922_v28 = vld [vmem:[%s1197_s0 + $0x88] sm:$0xff]   ;;  %v926_v32 = vld [vmem:[%s1197_s0 + $0x80] sm:$0xff]   ;;  %v936_v40 = vld [vmem:[%s1197_s0 + $0x130] sm:$0xff]  }
   0xd   :  { %825 = vmatpush3.bf16.msra.mxu1 %v906_v12  ;;  %798 = vmatprep.subr.bf16.mxu0 %v907_v13  ;;  %v927_v33 = vld [vmem:[%s1198_s1] ss:$24 sps:$4 sm:$0xff]   ;;  %v929_v34 = vld [vmem:[%s1198_s1 + $0x4] ss:$24 sps:$4 sm:$0xff]   ;;  %v937_v41 = vld [vmem:[%s1197_s0 + $0x168] sm:$0xff]  }
   0xe   :  { %826 = vmatprep.subr.bf16.mxu1 %v908_v14  ;;  %v930_v35 = vld [vmem:[%s1198_s1 + $0x8] ss:$24 sps:$4 sm:$0xff]   ;;  %v932_v36 = vld [vmem:[%s1198_s1 + $0xc] ss:$24 sps:$4 sm:$0xff]   ;;  %506 = vmatprep.mubr.bf16.mxu0 %v929_v34  ;;  %v944_v46 = vld [vmem:[%s1198_s1 + $0x3c] ss:$24 sps:$4 sm:$0xff]  }
   0xf   :  { %555 = vmatprep.mubr.bf16.mxu1 %v932_v36  ;;  %v938_v42 = vld [vmem:[%s1197_s0 + $0x128] sm:$0xff]   ;;  %v939_v43 = vld [vmem:[%s1197_s0 + $0x160] sm:$0xff]   ;;  %v941_v47 = vld [vmem:[%s1197_s0 + $0x158] sm:$0xff]  }
  0x10   :  { %799 = vmatpush3.bf16.msra.mxu0 %v909_v15  ;;  %v940_v44 = vld [vmem:[%s1197_s0 + $0x120] sm:$0xff]   ;;  %v942_v45 = vld [vmem:[%s1198_s1 + $0x34] ss:$24 sps:$4 sm:$0xff]   ;;  %v947_v48 = vld [vmem:[%s1198_s1 + $0x30] ss:$24 sps:$4 sm:$0xff]  }
  0x11   :  { %827 = vmatpush3.bf16.msra.mxu1 %v910_v16  ;;  %800 = vmatprep.subr.bf16.mxu0 %v911_v17  ;;  %v948_v49 = vld [vmem:[%s1198_s1 + $0x38] ss:$24 sps:$4 sm:$0xff]   ;;  %v957_v53 = vld [vmem:[%s1198_s1 + $0x14] ss:$24 sps:$4 sm:$0xff]   ;;  %v960_v55 = vld [vmem:[%s1198_s1 + $0x44] ss:$24 sps:$4 sm:$0xff]  }
  0x12   :  { %828 = vmatprep.subr.bf16.mxu1 %v912_v18  ;;  %v946_v50 = vld [vmem:[%s1197_s0 + $0x118] sm:$0xff]   ;;  %v949_v51 = vld [vmem:[%s1197_s0 + $0x150] sm:$0xff]   ;;  %v951_v54 = vld [vmem:[%s1197_s0 + $0x148] sm:$0xff]  }
  0x13   :  { %v950_v52 = vld [vmem:[%s1197_s0 + $0x110] sm:$0xff]   ;;  %v621_v57 = vld [vmem:[%s1199_s2] sm:$0xff]  ;;  %v952_v58 = vld [vmem:[%s1197_s0 + $0x108] sm:$0xff]  }
  0x14   :  { %801 = vmatpush3.bf16.msra.mxu0 %v913_v19  ;;  %v623_v56 = vld [vmem:[%s1199_s2 + $0x10] sm:$0xff]  ;;  %627 = vperm.xlu0 %893, %v621_v57   ;;  %v624_v59 = vld [vmem:[%s1199_s2 + $0x18] sm:$0xff]  ;;  %v953_v60 = vld [vmem:[%s1197_s0 + $0x140] sm:$0xff]  }
  0x15   :  { %829 = vmatpush3.bf16.msra.mxu1 %v914_v20  ;;  %802 = vmatprep.subr.bf16.mxu0 %v915_v21  ;;  %v622_v61 = vld [vmem:[%s1199_s2 + $0x8] sm:$0xff]  ;;  %v954_v62 = vld [vmem:[%s1197_s0 + $0x100] sm:$0xff]   ;;  %v652_v3 = vld [vmem:[%s1200_s3 + $0x18] sm:$0xff] }
  0x16   :  { %830 = vmatprep.subr.bf16.mxu1 %v916_v22  ;;  %637 = vperm.xlu1 %894, %v623_v56   ;;  %v650_v63 = vld [vmem:[%s1200_s3 + $0x8] sm:$0xff]  ;;  %v649_v0 = vld [vmem:[%s1200_s3] sm:$0xff]  ;;  %v651_v4 = vld [vmem:[%s1200_s3 + $0x10] sm:$0xff] }
  0x17   :  { %v955_v1 = vld [vmem:[%s1198_s1 + $0x10] ss:$24 sps:$4 sm:$0xff]   ;;  %v958_v2 = vld [vmem:[%s1198_s1 + $0x40] ss:$24 sps:$4 sm:$0xff]  }
  0x18   :  { %803 = vmatpush3.bf16.msra.mxu0 %v917_v23  ;;  %632 = vperm.xlu0 %893, %v622_v61  }
  0x19   :  { %831 = vmatpush3.bf16.msra.mxu1 %v918_v24  ;;  %804 = vmatprep.subr.bf16.mxu0 %v919_v25 }
  0x1a   :  { %832 = vmatprep.subr.bf16.mxu1 %v920_v26  ;;  %642 = vperm.xlu1 %894, %v624_v59  }
  0x1c   :  { %805 = vmatpush3.bf16.msra.mxu0 %v921_v27  ;;  %655 = vperm.xlu0 %893, %v649_v0  }
  0x1d   :  { %833 = vmatpush3.bf16.msra.mxu1 %v922_v28  ;;  %806 = vmatprep.subr.bf16.mxu0 %v923_v29 }
  0x1e   :  { %834 = vmatprep.subr.bf16.mxu1 %v924_v30  ;;  %660 = vperm.xlu1 %894, %v650_v63  }
  0x20   :  { %807 = vmatpush3.bf16.msra.mxu0 %v925_v31  ;;  %665 = vperm.xlu0 %893, %v651_v4  }
  0x21   :  { %835 = vmatpush3.bf16.msra.mxu1 %v926_v32  ;;  %848 = vmatprep.subr.bf16.mxu0 %v933_v37 }
  0x22   :  { %876 = vmatprep.subr.bf16.mxu1 %v933_v37  ;;  %670 = vperm.xlu1 %894, %v652_v3  }
  0x23   :  { %507 = vmatmul.mubr.bf16.vlgmr.msra.gmra.mxu0 %v927_v33 }
  0x24   :  { %556 = vmatmul.mubr.bf16.vlgmr.msra.gmra.mxu1 %v930_v35  ;;  %849 = vmatpush3.bf16.msra.mxu0 %v934_v38 }
  0x25   :  { %884 = vmatpush3.bf16.msra.mxu1 %v934_v38  ;;  %850 = vmatprep.subr.bf16.mxu0 %v935_v39 }
  0x26   :  { %877 = vmatprep.subr.bf16.mxu1 %v935_v39  ;;  %514 = vmatprep.mubr.bf16.mxu0 %v942_v45 }
  0x27   :  { %563 = vmatprep.mubr.bf16.mxu1 %v944_v46 }
  0x28   :  { %851 = vmatpush3.bf16.msra.mxu0 %v936_v40 }
  0x29   :  { %885 = vmatpush3.bf16.msra.mxu1 %v936_v40  ;;  %852 = vmatprep.subr.bf16.mxu0 %v937_v41 }
  0x2a   :  { %878 = vmatprep.subr.bf16.mxu1 %v937_v41 }
  0x2b   :  { %515 = vmatmul.mubr.bf16.gmra.mxu0 %v947_v48 }
  0x2c   :  { %853 = vmatpush3.bf16.msra.mxu0 %v938_v42  ;;  %564 = vmatmul.mubr.bf16.gmra.mxu1 %v948_v49 }
  0x2d   :  { %886 = vmatpush3.bf16.msra.mxu1 %v938_v42  ;;  %854 = vmatprep.subr.bf16.mxu0 %v939_v43 }
  0x2e   :  { %879 = vmatprep.subr.bf16.mxu1 %v939_v43  ;;  %604 = vmatprep.mubr.bf16.mxu0 %v957_v53 }
  0x2f   :  { %612 = vmatprep.mubr.bf16.mxu1 %v960_v55 }
  0x30   :  { %855 = vmatpush3.bf16.msra.mxu0 %v940_v44 }
  0x31   :  { %887 = vmatpush3.bf16.msra.mxu1 %v940_v44  ;;  %856 = vmatprep.subr.bf16.mxu0 %v941_v47 }
  0x32   :  { %880 = vmatprep.subr.bf16.mxu1 %v941_v47 }
  0x34   :  { %857 = vmatpush3.bf16.msra.mxu0 %v946_v50 }
  0x35   :  { %888 = vmatpush3.bf16.msra.mxu1 %v946_v50  ;;  %858 = vmatprep.subr.bf16.mxu0 %v949_v51 }
  0x36   :  { %881 = vmatprep.subr.bf16.mxu1 %v949_v51 }
  0x38   :  { %859 = vmatpush3.bf16.msra.mxu0 %v950_v52 }
  0x39   :  { %889 = vmatpush3.bf16.msra.mxu1 %v950_v52  ;;  %860 = vmatprep.subr.bf16.mxu0 %v951_v54 }
  0x3a   :  { %882 = vmatprep.subr.bf16.mxu1 %v951_v54 }
  0x3c   :  { %861 = vmatpush3.bf16.msra.mxu0 %v952_v58 }
  0x3d   :  { %890 = vmatpush3.bf16.msra.mxu1 %v952_v58  ;;  %862 = vmatprep.subr.bf16.mxu0 %v953_v60 }
  0x3e   :  { %883 = vmatprep.subr.bf16.mxu1 %v953_v60 }
  0x40   :  { %863 = vmatpush3.bf16.msra.mxu0 %v954_v62 }
  0x41   :  { %891 = vmatpush3.bf16.msra.mxu1 %v954_v62 }
  0x43   :  { %605 = vmatmul.mubr.bf16.vlgmr.msra.gmra.mxu0 %v955_v1 }
  0x44   :  { %613 = vmatmul.mubr.bf16.vlgmr.msra.gmra.mxu1 %v958_v2 }
  0x8f   :  { %v628_v16 = vpop.permute.xlu0 %627 }
  0x91   :  { %v638_v19 = vpop.permute.xlu1 %637 }
  0x93   :  { %v633_v21 = vpop.permute.xlu0 %632 }
  0x95   :  { %v643_v29 = vpop.permute.xlu1 %642 }
  0x97   :  { %v656_v35 = vpop.permute.xlu0 %655 }
  0x99   :  { %v661_v48 = vpop.permute.xlu1 %660 }
  0x9b   :  { %v666_v55 = vpop.permute.xlu0 %665 }
  0x9d   :  { %v671_v62 = vpop.permute.xlu1 %670 }
  0xe3   :  { %v808_v5 = vpop.f32.mrf.mxu0 }
  0xe4   :  { %v836_v6 = vpop.f32.mrf.mxu1 }
  0xe5   :  { %v809_v7 = vpop.f32.mrf.mxu0 }
  0xe6   :  { %v837_v8 = vpop.f32.mrf.mxu1  ;;  %v810_v23 = vadd.f32 %v809_v7, %v808_v5 }
  0xe7   :  { %v811_v9 = vpop.f32.mrf.mxu0  ;;  %v838_v24 = vadd.f32 %v837_v8, %v836_v6 }
  0xe8   :  { %v839_v10 = vpop.f32.mrf.mxu1 }
  0xe9   :  { %v812_v11 = vpop.f32.mrf.mxu0  ;;  %v558_v32 = vadd.f32 %v838_v24, %v810_v23 }
  0xea   :  { %v840_v12 = vpop.f32.mrf.mxu1  ;;  %v813_v33 = vadd.f32 %v812_v11, %v811_v9 }
  0xeb   :  { %v814_v13 = vpop.f32.mrf.mxu0  ;;  %v841_v34 = vadd.f32 %v840_v12, %v839_v10 }
  0xec   :  { %v842_v14 = vpop.f32.mrf.mxu1 }
  0xed   :  { %v815_v15 = vpop.f32.mrf.mxu0  ;;  %v561_v47 = vadd.f32 %v841_v34, %v813_v33 }
  0xee   :  { %v843_v17 = vpop.f32.mrf.mxu1  ;;  %v816_v26 = vadd.f32 %v815_v15, %v814_v13 }
  0xef   :  { %v817_v18 = vpop.f32.mrf.mxu0  ;;  %v844_v27 = vadd.f32 %v843_v17, %v842_v14 }
  0xf0   :  { %v845_v20 = vpop.f32.mrf.mxu1 }
  0xf1   :  { %v818_v22 = vpop.f32.mrf.mxu0  ;;  %v566_v38 = vadd.f32 %v844_v27, %v816_v26 }
  0xf2   :  { %v846_v25 = vpop.f32.mrf.mxu1  ;;  %v819_v39 = vadd.f32 %v818_v22, %v817_v18 }
  0xf3   :  { %v847_v40 = vadd.f32 %v846_v25, %v845_v20 }
  0xf5   :  { %v569_v52 = vadd.f32 %v847_v40, %v819_v39 }
 0x103   :  { %v864_v28 = vpop.f32.mrf.mxu0 }
 0x104   :  { %v870_v30 = vpop.f32.mrf.mxu1 }
 0x105   :  { %v865_v31 = vpop.f32.mrf.mxu0 }
 0x106   :  { %v866_v36 = vadd.f32 %v865_v31, %v864_v28  ;;  %v871_v37 = vpop.f32.mrf.mxu1 }
 0x107   :  { %v872_v41 = vadd.f32 %v871_v37, %v870_v30  ;;  %v867_v42 = vpop.f32.mrf.mxu0 }
 0x108   :  { %v607_v43 = vadd.f32 %v866_v36, %v558_v32  ;;  %v873_v44 = vpop.f32.mrf.mxu1 }
 0x109   :  { %v615_v45 = vadd.f32 %v872_v41, %v566_v38  ;;  %v868_v46 = vpop.f32.mrf.mxu0 }
 0x10a   :  { %v645_v49 = vmul.f32 %v628_v16, %v607_v43  ;;  %v869_v50 = vadd.f32 %v868_v46, %v867_v42  ;;  %v874_v51 = vpop.f32.mrf.mxu1 }
 0x10b   :  { %v647_v53 = vmul.f32 %v638_v19, %v615_v45  ;;  %v875_v54 = vadd.f32 %v874_v51, %v873_v44 }
 0x10c   :  { %v673_v56 = vadd.f32 %v656_v35, %v645_v49  ;;  %v610_v57 = vadd.f32 %v869_v50, %v561_v47 }
 0x10d   :  { %v675_v58 = vadd.f32 %v666_v55, %v647_v53  ;;  %v618_v59 = vadd.f32 %v875_v54, %v569_v52 }
 0x10e   :  { %v646_v60 = vmul.f32 %v633_v21, %v610_v57  ;;  %v681_v63 = vmul.f32 0.2, %v673_v56  ;;  %vm677_vm0 = vcmp.ge.f32.partialorder %v673_v56, 0.0 }
 0x10f   :  { %v648_v61 = vmul.f32 %v643_v29, %v618_v59  ;;  %v683_v1 = vmul.f32 0.2, %v675_v58  ;;  %vm679_vm1 = vcmp.ge.f32.partialorder %v675_v58, 0.0 }
 0x110   :  { %v674_v0 = vadd.f32 %v661_v48, %v646_v60  ;;  %v685_v5 = vsel %vm677_vm0, %v673_v56, %v681_v63 }
 0x111   :  { %v676_v2 = vadd.f32 %v671_v62, %v648_v61  ;;  %v687_v7 = vsel %vm679_vm1, %v675_v58, %v683_v1 }
 0x112   :  { %vm678_vm2 = vcmp.ge.f32.partialorder %v674_v0, 0.0  ;;  %v682_v3 = vmul.f32 0.2, %v674_v0 }
 0x113   :  { %vm680_vm3 = vcmp.ge.f32.partialorder %v676_v2, 0.0  ;;  %v684_v4 = vmul.f32 0.2, %v676_v2 }
 0x114   :  { %v686_v6 = vsel %vm678_vm2, %v674_v0, %v682_v3 }
 0x115   :  { %v784_v8 = vpack.c.bf16 %v686_v6, %v685_v5  ;;  %v688_v9 = vsel %vm680_vm3, %v676_v2, %v684_v4 }
 0x116   :  { %v789_v10 = vpack.c.bf16 %v688_v9, %v687_v7 }
 0x117   :  { %785 = vst [vmem:[%s1201_s4] sm:$0xff] %v784_v8  }
 0x118   :  { %791 = vst [vmem:[%s1201_s4 + $0x8] sm:$0xff] %v789_v10  }

// kernel: discriminator_forward.9
= control target key start
LH: loop header
LB: loop body
LE: loop exit
PB: predicated region body
PF: predicated region fallthrough
CT: control target
= control target key end

     0   :  { %s867_s17 = smov 0   ;;  %s944_s0 = inlined_call_operand.vmem [shape: bf16[2,32,32], index: 0, kind: input, shape index: {}]   ;;  %s945_s1 = inlined_call_operand.vmem [shape: bf16[32,384], index: 1, kind: input, shape index: {}]   ;;  %s946_s2 = inlined_call_operand.vmem [shape: f32[1,384], index: 2, kind: input, shape index: {}]   ;;  %s947_s3 = inlined_call_operand.<no memory space> [shape: f32[1,1], index: 3, kind: input, shape index: {}]   ;;  %s948_s4 = inlined_call_operand.vmem [shape: bf16[2,32,32], index: 4, kind: output, shape index: {}]  }
   0x1   :  { %v9_v0 = vstv %s947_s3 }
   0x2   :  { %10 = vst [vmem:[#allocation2] sm:$0x1] %v9_v0 }
   0x3 LB: > { %s698_s18 = sadd.s32 4294967295, %s836_s17   ;;  %p702_p0 = scmp.ge.s32.totalorder %s836_s17, 1  ;;  %s836_s17 = sphi %s867_s17, %s16_s17  }
   0x4   : > { %p164_p1 = scmp.lt.s32.totalorder %s836_s17, 3 }
   0x6   : > { %p165_p2 = pnand %p702_p0, %p164_p1 }
   0x7   : > { %p190_p3 = scmp.lt.s32.totalorder (!%p165_p2), %s698_s18, 1 }
   0x8   : > { %168 = sbr.rel (%p165_p2) target bundleno = 964 (0x3c4), region = 36 }
   0xd   : > { %v802_v1 = vld [vmem:[%s945_s1 + $0x1c] ss:$12 sps:$4 sm:$0xff]   ;;  %v804_v2 = vld [vmem:[%s945_s1 + $0x18] ss:$12 sps:$4 sm:$0xff]   ;;  %v838_v3 = vmov 0   ;;  %s950_s18 = smov (!%p190_p3, %s698_s18), 1  ;;  %v215_v8 = vlaneseq }
   0xe   : > { %311 = vmatprep.mubr.bf16.mxu0 %v838_v3  ;;  %291 = vmatprep.subr.bf16.mxu0 %v802_v1  ;;  %v805_v4 = vld [vmem:[%s945_s1 + $0x4] ss:$12 sps:$4 sm:$0xff]   ;;  %v807_v5 = vld [vmem:[%s945_s1] ss:$12 sps:$4 sm:$0xff]   ;;  %s729_s26 = sshll.u32 %s950_s18, 4  ;;  %vm272_vm0 = vcmask 261120  }
   0xf   : > { %292 = vmatpush1.bf16.msra.mxu0 %v804_v2  ;;  %s194_s29 = scalar_lea.vmem %s944_s0, %s729_s26  ;;  %v216_v9 = vshrl.u32 %v215_v8, 7  ;;  %v213_v11 = vld [vmem:[%s946_s2] sm:$0x7]  ;;  %v811_v32 = vld [vmem:[%s945_s1 + $0x8] ss:$12 sps:$4 sm:$0xff]   ;;  %s199_s13 = scalar_lea.vmem %s948_s4, %s729_s26  ;;  %vm638_vm1 = vcmask 257024  }
  0x10   : > { %293 = vmatprep.subr.bf16.mxu0 %v805_v4  ;;  %v895_v6 = vld [vmem:[%s194_s29] sm:$0xff]   ;;  %v901_v7 = vld [vmem:[%s194_s29 + $0x8] sm:$0xff]  }
  0x11   : > { %759 = vmatprep.mubr.msk.bf16.mxu1 %vm272_vm0, %v895_v6  ;;  %v217_v10 = vsub.s32 0, %v216_v9  ;;  %v221_v19 = vsub.s32 1, %v216_v9  ;;  %v810_v31 = vld [vmem:[%s945_s1 + $0x20] ss:$12 sps:$4 sm:$0xff]   ;;  %v225_v41 = vsub.s32 2, %v216_v9 }
  0x12   : > { %755 = vmatprep.subr.bf16.mxu1 %v810_v31  ;;  %v607_v9 = vld [vmem:[#allocation2] sm:$0x1] }
  0x13   : > { %294 = vmatpush1.bf16.msra.mxu0 %v807_v5  ;;  %v218_v12 = vrot.slane %v213_v11, %v217_v10  ;;  %v222_v22 = vrot.slane %v213_v11, %v221_v19  ;;  %756 = vmatpush3.bf16.msra.mxu1 %v810_v31  ;;  %v226_v43 = vrot.slane %v213_v11, %v225_v41 }
  0x14   : > { %757 = vmatprep.subr.bf16.mxu1 %v811_v32  ;;  %791 = vpush %v607_v9 }
  0x16   : > { %715 = vmatmul.mubr.msk.bf16.vlgmr.msra.gmra.mxu0 %vm272_vm0, %v895_v6 }
  0x17   : > { %321 = vmatprep.mubr.bf16.mxu0 %v838_v3  ;;  %758 = vmatpush3.bf16.msra.mxu1 %v811_v32 }
  0x1a   : > { %760 = vmatmul.mubr.msk.bf16.vlgmr.msra.gmra.mxu1 %vm272_vm0, %v901_v7 }
  0x1e   : > { %716 = vmatmul.mubr.msk.bf16.gmra.mxu0 %vm272_vm0, %v901_v7 }
  0x45   : > { %s792_s10 = spop %791 }
  0xd6   : > { %v313_v13 = vpop.f32.mrf.mxu0 }
  0xd7   : > { %v314_v14 = vadd.f32 %v313_v13, %v218_v12 }
  0xd8   : > { %v315_v15 = vpop.f32.mrf.mxu0 }
  0xd9   : > { %771 = vmatprep.mubr.f32.mxu0 %v314_v14  ;;  %v316_v27 = vadd.f32 %v315_v15, %v222_v22 }
  0xda   : > { %v317_v16 = vpop.f32.mrf.mxu0  ;;  %v761_v42 = vpop.f32.mrf.mxu1 }
  0xdb   : > { %v318_v28 = vadd.f32 %v317_v16, %v218_v12  ;;  %v375_v46 = vadd.f32 %v761_v42, %v226_v43 }
  0xdc   : > { %v319_v17 = vpop.f32.mrf.mxu0  ;;  %v366_v44 = vpop.f32.mrf.mxu1 }
  0xdd   : > { %v320_v26 = vadd.f32 %v319_v17, %v222_v22  ;;  %v367_v5 = vadd.f32 %v366_v44, %v226_v43 }
  0xde   : > { %v323_v18 = vpop.f32.mrf.mxu0  ;;  %v762_v45 = vpop.f32.mrf.mxu1 }
  0xdf   : > { %v324_v29 = vadd.f32 %v323_v18, %v218_v12  ;;  %v378_v47 = vadd.f32 %v762_v45, %v226_v43 }
  0xe0   : > { %v325_v20 = vpop.f32.mrf.mxu0  ;;  %v369_v4 = vpop.f32.mrf.mxu1 }
  0xe1   : > { %v326_v25 = vadd.f32 %v325_v20, %v222_v22  ;;  %777 = vmatprep.subr.mxu1 %v378_v47  ;;  %v370_v8 = vadd.f32 %v369_v4, %v226_v43 }
  0xe2   : > { %v327_v21 = vpop.f32.mrf.mxu0  ;;  %778 = vmatpush3.msra.mxu1 %v378_v47 }
  0xe3   : > { %v328_v30 = vadd.f32 %v327_v21, %v218_v12  ;;  %779 = vmatprep.subr.mxu1 %v375_v46 }
  0xe4   : > { %v329_v23 = vpop.f32.mrf.mxu0  ;;  %780 = vmatpush3.msra.mxu1 %v375_v46 }
  0xe5   : > { %v330_v24 = vadd.f32 %v329_v23, %v222_v22  ;;  %781 = vmatprep.subr.mxu1 %v370_v8  ;;  %v609_v22 = vstv %s792_s10  ;;  %v615_v23 = vunpack.c.h.bf16 %v895_v6 }
  0xe6   : > { %782 = vmatpush3.msra.mxu1 %v370_v8 }
  0xe7   : > { %763 = vmatprep.subr.mxu0 %v330_v24  ;;  %783 = vmatprep.subr.mxu1 %v367_v5 }
  0xe8   : > { %764 = vmatpush3.xpose.msra.mxu0 %v330_v24  ;;  %784 = vmatpush3.msra.mxu1 %v367_v5 }
  0xe9   : > { %765 = vmatprep.subr.mxu0 %v326_v25 }
  0xec   : > { %766 = vmatpush3.xpose.msra.mxu0 %v326_v25 }
  0xed   : > { %767 = vmatprep.subr.mxu0 %v320_v26 }
  0xf0   : > { %768 = vmatpush3.xpose.msra.mxu0 %v320_v26  ;;  %v614_v26 = vunpack.c.l.bf16 %v895_v6 }
  0xf1   : > { %769 = vmatprep.subr.mxu0 %v316_v27 }
  0xf4   : > { %770 = vmatpush3.xpose.msra.mxu0 %v316_v27 }
  0xf7   : > { %772 = vmatmul.mubr.f32.vlgmr.msra.gmra.mxu0 %v318_v28 }
  0xf8   : > { %774 = vmatprep.mubr.f32.mxu0 %v324_v29 }
  0xfb   : > { %775 = vmatmul.mubr.f32.gmra.mxu0 %v328_v30  ;;  %v617_v30 = vunpack.c.h.bf16 %v901_v7 }
 0x1b7   : > { %v773_v33 = vpop.f32.mrf.mxu0 }
 0x1b8   : > { %v469_v38 = vsel %vm272_vm0, %v773_v33, -inf }
 0x1b9   : > { %v447_v34 = vpop.f32.mrf.mxu0 }
 0x1ba   : > { %v466_v35 = vsel %vm272_vm0, %v447_v34, -inf }
 0x1bb   : > { %467 = vmax.xlane.f32.xlu0 %v466_v35  ;;  %v776_v36 = vpop.f32.mrf.mxu0  ;;  %v616_v35 = vunpack.c.l.bf16 %v901_v7 }
 0x1bc   : > { %v475_v40 = vsel %vm272_vm0, %v776_v36, -inf }
 0x1bd   : > { %v457_v37 = vpop.f32.mrf.mxu0 }
 0x1be   : > { %v472_v39 = vsel %vm272_vm0, %v457_v37, -inf }
 0x1bf   : > { %470 = vmax.xlane.f32.xlu0 %v469_v38  ;;  %473 = vmax.xlane.f32.xlu1 %v472_v39 }
 0x1c3   : > { %476 = vmax.xlane.f32.xlu1 %v475_v40 }
 0x244   : > { %v468_v48 = vpop.xlane.xlu0 %467 }
 0x245   : > { %v478_v49 = vsub.f32 %v447_v34, %v468_v48 }
 0x247   : > { %v482_v50 = vmul.f32 1.442695, %v478_v49 }
 0x248   : > { %v471_v51 = vpop.xlane.xlu0 %470  ;;  %v474_v52 = vpop.xlane.xlu1 %473 }
 0x249   : > { %814 = vpow2.f32 %v482_v50  ;;  %v479_v53 = vsub.f32 %v773_v33, %v471_v51  ;;  %v480_v54 = vsub.f32 %v457_v37, %v474_v52 }
 0x24b   : > { %v484_v55 = vmul.f32 1.442695, %v479_v53  ;;  %v486_v56 = vmul.f32 1.442695, %v480_v54 }
 0x24c   : > { %v477_v57 = vpop.xlane.xlu1 %476 }
 0x24d   : > { %816 = vpow2.f32 %v484_v55  ;;  %v481_v58 = vsub.f32 %v776_v36, %v477_v57 }
 0x24e   : > { %818 = vpow2.f32 %v486_v56 }
 0x24f   : > { %v488_v59 = vmul.f32 1.442695, %v481_v58 }
 0x251   : > { %820 = vpow2.f32 %v488_v59 }
 0x256   : > { %v815_v60 = vpop.eup %814 }
 0x257   : > { %v490_v61 = vsel %vm272_vm0, %v815_v60, 0.0 }
 0x258   : > { %491 = vadd.xlane.f32.xlu0 %v490_v61 }
 0x25a   : > { %v817_v62 = vpop.eup %816 }
 0x25b   : > { %v819_v63 = vpop.eup %818  ;;  %v493_v0 = vsel %vm272_vm0, %v817_v62, 0.0 }
 0x25c   : > { %494 = vadd.xlane.f32.xlu1 %v493_v0  ;;  %v496_v1 = vsel %vm272_vm0, %v819_v63, 0.0 }
 0x25d   : > { %497 = vadd.xlane.f32.xlu0 %v496_v1 }
 0x25e   : > { %v821_v2 = vpop.eup %820 }
 0x25f   : > { %v499_v3 = vsel %vm272_vm0, %v821_v2, 0.0 }
 0x260   : > { %500 = vadd.xlane.f32.xlu1 %v499_v3 }
 0x2e1   : > { %v492_v10 = vpop.xlane.xlu0 %491 }
 0x2e2   : > { %822 = vrcp.f32 %v492_v10 }
 0x2e5   : > { %v495_v11 = vpop.xlane.xlu1 %494 }
 0x2e6   : > { %v498_v12 = vpop.xlane.xlu0 %497  ;;  %824 = vrcp.f32 %v495_v11 }
 0x2e7   : > { %826 = vrcp.f32 %v498_v12 }
 0x2e9   : > { %v501_v13 = vpop.xlane.xlu1 %500 }
 0x2ea   : > { %828 = vrcp.f32 %v501_v13 }
 0x2ef   : > { %v823_v14 = vpop.eup %822 }
 0x2f0   : > { %v506_v15 = vmul.f32 %v823_v14, %v815_v60 }
 0x2f2   : > { %785 = vmatprep.mubr.msk.f32.mxu1 %vm272_vm0, %v506_v15 }
 0x2f3   : > { %v825_v16 = vpop.eup %824 }
 0x2f4   : > { %v827_v17 = vpop.eup %826  ;;  %v507_v18 = vmul.f32 %v825_v16, %v817_v62 }
 0x2f5   : > { %v508_v19 = vmul.f32 %v827_v17, %v819_v63 }
 0x2f6   : > { %786 = vmatmul.mubr.msk.f32.vlgmr.msra.gmra.mxu1 %vm272_vm0, %v507_v18 }
 0x2f7   : > { %v829_v20 = vpop.eup %828  ;;  %788 = vmatprep.mubr.msk.f32.mxu1 %vm272_vm0, %v508_v19 }
 0x2f8   : > { %v509_v21 = vmul.f32 %v829_v20, %v821_v2 }
 0x2fa   : > { %789 = vmatmul.mubr.msk.f32.gmra.mxu1 %vm272_vm0, %v509_v21 }
 0x3b6   : > { %v787_v24 = vpop.f32.mrf.mxu1 }
 0x3b7   : > { %v611_v25 = vmul.f32 %v787_v24, %v609_v22 }
 0x3b8   : > { %v588_v27 = vpop.f32.mrf.mxu1 }
 0x3b9   : > { %v619_v28 = vadd.f32 %v615_v23, %v611_v25  ;;  %v610_v29 = vmul.f32 %v609_v22, %v588_v27 }
 0x3ba   : > { %v790_v31 = vpop.f32.mrf.mxu1 }
 0x3bb   : > { %v732_v32 = vpack.c.bf16 %v619_v28, %v619_v28  ;;  %v618_v33 = vadd.f32 %v614_v26, %v610_v29  ;;  %v613_v34 = vmul.f32 %v790_v31, %v609_v22 }
 0x3bc   : > { %v598_v36 = vpop.f32.mrf.mxu1 }
 0x3bd   : > { %640 = vst.msk [vmem:[%s199_s13 + $0x4] sm:$0xf] %vm638_vm1, %v732_v32  ;;  %v731_v6 = vpack.c.bf16 %v618_v33, %v618_v33  ;;  %v621_v37 = vadd.f32 %v617_v30, %v613_v34  ;;  %v612_v38 = vmul.f32 %v609_v22, %v598_v36 }
 0x3bf   : > { %639 = vst.msk [vmem:[%s199_s13] sm:$0xf] %vm638_vm1, %v731_v6  ;;  %v734_v39 = vpack.c.bf16 %v621_v37, %v621_v37  ;;  %v620_v40 = vadd.f32 %v616_v35, %v612_v38 }
 0x3c1   : > { %642 = vst.msk [vmem:[%s199_s13 + $0xc] sm:$0xf] %vm638_vm1, %v734_v39  ;;  %v733_v41 = vpack.c.bf16 %v620_v40, %v620_v40 }
 0x3c3   : > { %641 = vst.msk [vmem:[%s199_s13 + $0x8] sm:$0xf] %vm638_vm1, %v733_v41 }
 0x3c4 PF: > { %s16_s17 = sadd.s32 1, %s836_s17  }
 0x3c5   : > { %p13_p4 = scmp.ge.s32.totalorder %s16_s17, 4  }
 0x3c7   :  { %15 = sbr.rel (!%p13_p4) target bundleno = 3 (0x3), region = 66 }

// kernel: discriminator_forward.10
= control target key start
LH: loop header
LB: loop body
LE: loop exit
PB: predicated region body
PF: predicated region fallthrough
CT: control target
= control target key end

     0   :  { %v2238_v20 = vmov 0   ;;  %s2929_s0 = inlined_call_operand.vmem [shape: bf16[1536,128], index: 0, kind: input, shape index: {}]   ;;  %s2930_s1 = inlined_call_operand.vmem [shape: bf16[64,1536], index: 1, kind: input, shape index: {}]   ;;  %s2931_s2 = inlined_call_operand.vmem [shape: f32[64,1], index: 2, kind: input, shape index: {}]   ;;  %s2932_s3 = inlined_call_operand.vmem [shape: f32[64,1], index: 3, kind: input, shape index: {}]   ;;  %s2933_s4 = inlined_call_operand.vmem [shape: bf16[64,128], index: 4, kind: output, shape index: {}]  }
   0x1   :  { %v2070_v0 = vld [vmem:[%s2929_s0 + $0x78] sm:$0xff]   ;;  %v2074_v4 = vld [vmem:[%s2929_s0 + $0x70] sm:$0xff]   ;;  %v2078_v8 = vld [vmem:[%s2929_s0 + $0x68] sm:$0xff]   ;;  %2069 = vset.pattern.permute.xlu1 %v2238_v20  ;;  %2068 = vset.pattern.permute.xlu0 %v2238_v20 }
   0x2   :  { %v2071_v1 = vld [vmem:[%s2929_s0 + $0xf8] sm:$0xff]   ;;  %1827 = vmatprep.subr.bf16.mxu0 %v2070_v0  ;;  %v2075_v5 = vld [vmem:[%s2929_s0 + $0xf0] sm:$0xff]   ;;  %v2079_v9 = vld [vmem:[%s2929_s0 + $0xe8] sm:$0xff]  }
   0x3   :  { %v2072_v2 = vld [vmem:[%s2929_s0 + $0x38] sm:$0xff]   ;;  %1867 = vmatprep.subr.bf16.mxu1 %v2071_v1  ;;  %v2076_v6 = vld [vmem:[%s2929_s0 + $0x30] sm:$0xff]   ;;  %v2080_v10 = vld [vmem:[%s2929_s0 + $0x28] sm:$0xff]  }
   0x4   :  { %v2073_v3 = vld [vmem:[%s2929_s0 + $0xb8] sm:$0xff]   ;;  %1828 = vmatpush3.bf16.msra.mxu0 %v2072_v2  ;;  %v2077_v7 = vld [vmem:[%s2929_s0 + $0xb0] sm:$0xff]   ;;  %v2081_v11 = vld [vmem:[%s2929_s0 + $0xa8] sm:$0xff]  }
   0x5   :  { %1868 = vmatpush3.bf16.msra.mxu1 %v2073_v3  ;;  %1829 = vmatprep.subr.bf16.mxu0 %v2074_v4  ;;  %v2082_v12 = vld [vmem:[%s2929_s0 + $0x60] sm:$0xff]   ;;  %v2086_v16 = vld [vmem:[%s2929_s0 + $0x58] sm:$0xff]   ;;  %v2090_v21 = vld [vmem:[%s2929_s0 + $0x50] sm:$0xff]  }
   0x6   :  { %1869 = vmatprep.subr.bf16.mxu1 %v2075_v5  ;;  %v2083_v13 = vld [vmem:[%s2929_s0 + $0xe0] sm:$0xff]   ;;  %v2087_v17 = vld [vmem:[%s2929_s0 + $0xd8] sm:$0xff]   ;;  %v2091_v22 = vld [vmem:[%s2929_s0 + $0xd0] sm:$0xff]  }
   0x7   :  { %v2084_v14 = vld [vmem:[%s2929_s0 + $0x20] sm:$0xff]   ;;  %v2088_v18 = vld [vmem:[%s2929_s0 + $0x18] sm:$0xff]   ;;  %v2092_v23 = vld [vmem:[%s2929_s0 + $0x10] sm:$0xff]  }
   0x8   :  { %1830 = vmatpush3.bf16.msra.mxu0 %v2076_v6  ;;  %v2085_v15 = vld [vmem:[%s2929_s0 + $0xa0] sm:$0xff]   ;;  %v2089_v19 = vld [vmem:[%s2929_s0 + $0x98] sm:$0xff]   ;;  %v2093_v24 = vld [vmem:[%s2929_s0 + $0x90] sm:$0xff]  }
   0x9   :  { %1870 = vmatpush3.bf16.msra.mxu1 %v2077_v7  ;;  %1831 = vmatprep.subr.bf16.mxu0 %v2078_v8  ;;  %v2094_v25 = vld [vmem:[%s2929_s0 + $0x48] sm:$0xff]   ;;  %v2098_v29 = vld [vmem:[%s2929_s0 + $0x40] sm:$0xff]   ;;  %v2108_v37 = vld [vmem:[%s2929_s0 + $0x178] sm:$0xff]  }
   0xa   :  { %1871 = vmatprep.subr.bf16.mxu1 %v2079_v9  ;;  %v2095_v26 = vld [vmem:[%s2929_s0 + $0xc8] sm:$0xff]   ;;  %v2099_v30 = vld [vmem:[%s2929_s0 + $0xc0] sm:$0xff]   ;;  %v2109_v38 = vld [vmem:[%s2929_s0 + $0x1f8] sm:$0xff]  }
   0xb   :  { %v2096_v27 = vld [vmem:[%s2929_s0 + $0x8] sm:$0xff]   ;;  %v2100_v31 = vld [vmem:[%s2929_s0] sm:$0xff]   ;;  %v2110_v39 = vld [vmem:[%s2929_s0 + $0x138] sm:$0xff]  }
   0xc   :  { %1832 = vmatpush3.bf16.msra.mxu0 %v2080_v10  ;;  %v2097_v28 = vld [vmem:[%s2929_s0 + $0x88] sm:$0xff]   ;;  %v2101_v32 = vld [vmem:[%s2929_s0 + $0x80] sm:$0xff]   ;;  %v2111_v40 = vld [vmem:[%s2929_s0 + $0x1b8] sm:$0xff]  }
   0xd   :  { %1872 = vmatpush3.bf16.msra.mxu1 %v2081_v11  ;;  %1833 = vmatprep.subr.bf16.mxu0 %v2082_v12  ;;  %v2102_v33 = vld [vmem:[%s2930_s1] ss:$48 sps:$4 sm:$0xff]   ;;  %v2104_v34 = vld [vmem:[%s2930_s1 + $0x4] ss:$48 sps:$4 sm:$0xff]   ;;  %v2105_v35 = vld [vmem:[%s2930_s1 + $0x8] ss:$48 sps:$4 sm:$0xff]  }
   0xe   :  { %1873 = vmatprep.subr.bf16.mxu1 %v2083_v13  ;;  %v2107_v36 = vld [vmem:[%s2930_s1 + $0xc] ss:$48 sps:$4 sm:$0xff]   ;;  %1106 = vmatprep.mubr.bf16.mxu0 %v2104_v34  ;;  %v2112_v41 = vld [vmem:[%s2929_s0 + $0x170] sm:$0xff]   ;;  %v2121_v48 = vld [vmem:[%s2930_s1 + $0x68] ss:$48 sps:$4 sm:$0xff]  }
   0xf   :  { %1171 = vmatprep.mubr.bf16.mxu1 %v2107_v36  ;;  %v2113_v42 = vld [vmem:[%s2929_s0 + $0x1f0] sm:$0xff]   ;;  %v2118_v46 = vld [vmem:[%s2930_s1 + $0x6c] ss:$48 sps:$4 sm:$0xff]   ;;  %v2126_v53 = vld [vmem:[%s2929_s0 + $0x160] sm:$0xff]  }
  0x10   :  { %1834 = vmatpush3.bf16.msra.mxu0 %v2084_v14  ;;  %v2114_v43 = vld [vmem:[%s2929_s0 + $0x130] sm:$0xff]   ;;  %v2122_v49 = vld [vmem:[%s2929_s0 + $0x168] sm:$0xff]   ;;  %v2127_v54 = vld [vmem:[%s2929_s0 + $0x1e0] sm:$0xff]  }
  0x11   :  { %1874 = vmatpush3.bf16.msra.mxu1 %v2085_v15  ;;  %1835 = vmatprep.subr.bf16.mxu0 %v2086_v16  ;;  %v2115_v44 = vld [vmem:[%s2929_s0 + $0x1b0] sm:$0xff]   ;;  %v2123_v50 = vld [vmem:[%s2929_s0 + $0x1e8] sm:$0xff]   ;;  %v2128_v55 = vld [vmem:[%s2929_s0 + $0x120] sm:$0xff]  }
  0x12   :  { %1875 = vmatprep.subr.bf16.mxu1 %v2087_v17  ;;  %v2116_v45 = vld [vmem:[%s2930_s1 + $0x64] ss:$48 sps:$4 sm:$0xff]   ;;  %v2120_v47 = vld [vmem:[%s2930_s1 + $0x60] ss:$48 sps:$4 sm:$0xff]   ;;  %v2124_v51 = vld [vmem:[%s2929_s0 + $0x128] sm:$0xff]  }
  0x13   :  { %v2125_v52 = vld [vmem:[%s2929_s0 + $0x1a8] sm:$0xff]   ;;  %v2129_v56 = vld [vmem:[%s2929_s0 + $0x1a0] sm:$0xff]   ;;  %v2136_v61 = vld [vmem:[%s2929_s0 + $0x158] sm:$0xff]  }
  0x14   :  { %1836 = vmatpush3.bf16.msra.mxu0 %v2088_v18  ;;  %v2130_v57 = vld [vmem:[%s2930_s1 + $0xc4] ss:$48 sps:$4 sm:$0xff]   ;;  %v2132_v58 = vld [vmem:[%s2930_s1 + $0xcc] ss:$48 sps:$4 sm:$0xff]   ;;  %v2134_v59 = vld [vmem:[%s2930_s1 + $0xc0] ss:$48 sps:$4 sm:$0xff]  }
  0x15   :  { %1876 = vmatpush3.bf16.msra.mxu1 %v2089_v19  ;;  %1837 = vmatprep.subr.bf16.mxu0 %v2090_v21  ;;  %v2135_v60 = vld [vmem:[%s2930_s1 + $0xc8] ss:$48 sps:$4 sm:$0xff]   ;;  %v2140_v1 = vld [vmem:[%s2929_s0 + $0x150] sm:$0xff]   ;;  %v2146_v6 = vld [vmem:[%s2930_s1 + $0x12c] ss:$48 sps:$4 sm:$0xff]  }
  0x16   :  { %1877 = vmatprep.subr.bf16.mxu1 %v2091_v22  ;;  %v2137_v62 = vld [vmem:[%s2929_s0 + $0x1d8] sm:$0xff]   ;;  %v2141_v2 = vld [vmem:[%s2929_s0 + $0x1d0] sm:$0xff]   ;;  %v2150_v9 = vld [vmem:[%s2929_s0 + $0x148] sm:$0xff]  }
  0x17   :  { %v2138_v63 = vld [vmem:[%s2929_s0 + $0x118] sm:$0xff]   ;;  %v2142_v3 = vld [vmem:[%s2929_s0 + $0x110] sm:$0xff]   ;;  %v2151_v10 = vld [vmem:[%s2929_s0 + $0x1c8] sm:$0xff]  }
  0x18   :  { %1838 = vmatpush3.bf16.msra.mxu0 %v2092_v23  ;;  %v2139_v0 = vld [vmem:[%s2929_s0 + $0x198] sm:$0xff]   ;;  %v2143_v4 = vld [vmem:[%s2929_s0 + $0x190] sm:$0xff]   ;;  %v2152_v11 = vld [vmem:[%s2929_s0 + $0x108] sm:$0xff]  }
  0x19   :  { %1878 = vmatpush3.bf16.msra.mxu1 %v2093_v24  ;;  %1839 = vmatprep.subr.bf16.mxu0 %v2094_v25  ;;  %v2144_v5 = vld [vmem:[%s2930_s1 + $0x124] ss:$48 sps:$4 sm:$0xff]   ;;  %v2148_v7 = vld [vmem:[%s2930_s1 + $0x120] ss:$48 sps:$4 sm:$0xff]   ;;  %v2149_v8 = vld [vmem:[%s2930_s1 + $0x128] ss:$48 sps:$4 sm:$0xff]  }
  0x1a   :  { %1879 = vmatprep.subr.bf16.mxu1 %v2095_v26  ;;  %v2153_v12 = vld [vmem:[%s2929_s0 + $0x188] sm:$0xff]   ;;  %v2154_v13 = vld [vmem:[%s2929_s0 + $0x140] sm:$0xff]   ;;  %v2164_v21 = vld [vmem:[%s2929_s0 + $0x278] sm:$0xff]  }
  0x1b   :  { %v2155_v14 = vld [vmem:[%s2929_s0 + $0x1c0] sm:$0xff]   ;;  %v2161_v19 = vld [vmem:[%s2930_s1 + $0x18] ss:$48 sps:$4 sm:$0xff]   ;;  %v2163_v20 = vld [vmem:[%s2930_s1 + $0x1c] ss:$48 sps:$4 sm:$0xff]  }
  0x1c   :  { %1840 = vmatpush3.bf16.msra.mxu0 %v2096_v27  ;;  %v2156_v15 = vld [vmem:[%s2929_s0 + $0x100] sm:$0xff]   ;;  %v2165_v22 = vld [vmem:[%s2929_s0 + $0x2f8] sm:$0xff]   ;;  %v2168_v25 = vld [vmem:[%s2929_s0 + $0x270] sm:$0xff]  }
  0x1d   :  { %1880 = vmatpush3.bf16.msra.mxu1 %v2097_v28  ;;  %1841 = vmatprep.subr.bf16.mxu0 %v2098_v29  ;;  %v2157_v16 = vld [vmem:[%s2929_s0 + $0x180] sm:$0xff]   ;;  %v2166_v23 = vld [vmem:[%s2929_s0 + $0x238] sm:$0xff]   ;;  %v2169_v26 = vld [vmem:[%s2929_s0 + $0x2f0] sm:$0xff]  }
  0x1e   :  { %1881 = vmatprep.subr.bf16.mxu1 %v2099_v30  ;;  %v2158_v17 = vld [vmem:[%s2930_s1 + $0x10] ss:$48 sps:$4 sm:$0xff]   ;;  %v2160_v18 = vld [vmem:[%s2930_s1 + $0x14] ss:$48 sps:$4 sm:$0xff]   ;;  %v2167_v24 = vld [vmem:[%s2929_s0 + $0x2b8] sm:$0xff]  }
  0x1f   :  { %v2170_v27 = vld [vmem:[%s2929_s0 + $0x230] sm:$0xff]   ;;  %v2174_v30 = vld [vmem:[%s2930_s1 + $0x7c] ss:$48 sps:$4 sm:$0xff]  }
  0x20   :  { %1842 = vmatpush3.bf16.msra.mxu0 %v2100_v31  ;;  %v2171_v28 = vld [vmem:[%s2929_s0 + $0x2b0] sm:$0xff]   ;;  %v2179_v34 = vld [vmem:[%s2929_s0 + $0x2e8] sm:$0xff]  }
  0x21   :  { %1882 = vmatpush3.bf16.msra.mxu1 %v2101_v32  ;;  %1907 = vmatprep.subr.bf16.mxu0 %v2108_v37  ;;  %v2172_v29 = vld [vmem:[%s2930_s1 + $0x74] ss:$48 sps:$4 sm:$0xff]   ;;  %v2176_v31 = vld [vmem:[%s2930_s1 + $0x70] ss:$48 sps:$4 sm:$0xff]   ;;  %v2177_v32 = vld [vmem:[%s2930_s1 + $0x78] ss:$48 sps:$4 sm:$0xff]  }
  0x22   :  { %1947 = vmatprep.subr.bf16.mxu1 %v2109_v38  ;;  %v2181_v36 = vld [vmem:[%s2929_s0 + $0x2a8] sm:$0xff]   ;;  %v2182_v37 = vld [vmem:[%s2929_s0 + $0x260] sm:$0xff]  }
  0x23   :  { %1107 = vmatmul.mubr.bf16.vlgmr.msra.gmra.mxu0 %v2102_v33  ;;  %v2178_v33 = vld [vmem:[%s2929_s0 + $0x268] sm:$0xff]   ;;  %v2183_v38 = vld [vmem:[%s2929_s0 + $0x2e0] sm:$0xff]  }
  0x24   :  { %1172 = vmatmul.mubr.bf16.vlgmr.msra.gmra.mxu1 %v2105_v35  ;;  %1908 = vmatpush3.bf16.msra.mxu0 %v2110_v39  ;;  %v2180_v35 = vld [vmem:[%s2929_s0 + $0x228] sm:$0xff]   ;;  %v2184_v39 = vld [vmem:[%s2929_s0 + $0x220] sm:$0xff]  }
  0x25   :  { %1948 = vmatpush3.bf16.msra.mxu1 %v2111_v40  ;;  %1909 = vmatprep.subr.bf16.mxu0 %v2112_v41  ;;  %v2185_v40 = vld [vmem:[%s2929_s0 + $0x2a0] sm:$0xff]  }
  0x26   :  { %1949 = vmatprep.subr.bf16.mxu1 %v2113_v42  ;;  %1114 = vmatprep.mubr.bf16.mxu0 %v2116_v45  ;;  %v2186_v41 = vld [vmem:[%s2930_s1 + $0xd4] ss:$48 sps:$4 sm:$0xff]   ;;  %v2188_v42 = vld [vmem:[%s2930_s1 + $0xdc] ss:$48 sps:$4 sm:$0xff]  }
  0x27   :  { %1179 = vmatprep.mubr.bf16.mxu1 %v2118_v46  ;;  %v2192_v45 = vld [vmem:[%s2929_s0 + $0x258] sm:$0xff]  }
  0x28   :  { %1910 = vmatpush3.bf16.msra.mxu0 %v2114_v43  ;;  %v2190_v43 = vld [vmem:[%s2930_s1 + $0xd0] ss:$48 sps:$4 sm:$0xff]   ;;  %v2193_v46 = vld [vmem:[%s2929_s0 + $0x2d8] sm:$0xff]  }
  0x29   :  { %1950 = vmatpush3.bf16.msra.mxu1 %v2115_v44  ;;  %1911 = vmatprep.subr.bf16.mxu0 %v2122_v49  ;;  %v2191_v44 = vld [vmem:[%s2930_s1 + $0xd8] ss:$48 sps:$4 sm:$0xff]   ;;  %v2196_v49 = vld [vmem:[%s2929_s0 + $0x250] sm:$0xff]  }
  0x2a   :  { %1951 = vmatprep.subr.bf16.mxu1 %v2123_v50  ;;  %v2197_v50 = vld [vmem:[%s2929_s0 + $0x2d0] sm:$0xff]  }
  0x2b   :  { %1115 = vmatmul.mubr.bf16.gmra.mxu0 %v2120_v47  ;;  %v2194_v47 = vld [vmem:[%s2929_s0 + $0x218] sm:$0xff]  }
  0x2c   :  { %1180 = vmatmul.mubr.bf16.gmra.mxu1 %v2121_v48  ;;  %1912 = vmatpush3.bf16.msra.mxu0 %v2124_v51  ;;  %v2195_v48 = vld [vmem:[%s2929_s0 + $0x298] sm:$0xff]   ;;  %v2198_v51 = vld [vmem:[%s2929_s0 + $0x210] sm:$0xff]  }
  0x2d   :  { %1952 = vmatpush3.bf16.msra.mxu1 %v2125_v52  ;;  %1913 = vmatprep.subr.bf16.mxu0 %v2126_v53  ;;  %v2199_v52 = vld [vmem:[%s2929_s0 + $0x290] sm:$0xff]  }
  0x2e   :  { %1953 = vmatprep.subr.bf16.mxu1 %v2127_v54  ;;  %1122 = vmatprep.mubr.bf16.mxu0 %v2130_v57  ;;  %v2200_v53 = vld [vmem:[%s2930_s1 + $0x134] ss:$48 sps:$4 sm:$0xff]   ;;  %v2202_v54 = vld [vmem:[%s2930_s1 + $0x13c] ss:$48 sps:$4 sm:$0xff]  }
  0x2f   :  { %1187 = vmatprep.mubr.bf16.mxu1 %v2132_v58  ;;  %v2206_v57 = vld [vmem:[%s2929_s0 + $0x248] sm:$0xff]  }
  0x30   :  { %1914 = vmatpush3.bf16.msra.mxu0 %v2128_v55  ;;  %v2204_v55 = vld [vmem:[%s2930_s1 + $0x130] ss:$48 sps:$4 sm:$0xff]   ;;  %v2207_v58 = vld [vmem:[%s2929_s0 + $0x2c8] sm:$0xff]  }
  0x31   :  { %1954 = vmatpush3.bf16.msra.mxu1 %v2129_v56  ;;  %1915 = vmatprep.subr.bf16.mxu0 %v2136_v61  ;;  %v2205_v56 = vld [vmem:[%s2930_s1 + $0x138] ss:$48 sps:$4 sm:$0xff]   ;;  %v2210_v61 = vld [vmem:[%s2929_s0 + $0x240] sm:$0xff]  }
  0x32   :  { %1955 = vmatprep.subr.bf16.mxu1 %v2137_v62  ;;  %v2211_v62 = vld [vmem:[%s2929_s0 + $0x2c0] sm:$0xff]  }
  0x33   :  { %1123 = vmatmul.mubr.bf16.gmra.mxu0 %v2134_v59  ;;  %v2208_v59 = vld [vmem:[%s2929_s0 + $0x208] sm:$0xff]  }
  0x34   :  { %1188 = vmatmul.mubr.bf16.gmra.mxu1 %v2135_v60  ;;  %1916 = vmatpush3.bf16.msra.mxu0 %v2138_v63  ;;  %v2209_v60 = vld [vmem:[%s2929_s0 + $0x288] sm:$0xff]   ;;  %v2212_v63 = vld [vmem:[%s2929_s0 + $0x200] sm:$0xff]  }
  0x35   :  { %1956 = vmatpush3.bf16.msra.mxu1 %v2139_v0  ;;  %1917 = vmatprep.subr.bf16.mxu0 %v2140_v1  ;;  %v2213_v0 = vld [vmem:[%s2929_s0 + $0x280] sm:$0xff]  }
  0x36   :  { %1957 = vmatprep.subr.bf16.mxu1 %v2141_v2  ;;  %1130 = vmatprep.mubr.bf16.mxu0 %v2144_v5  ;;  %v2214_v1 = vld [vmem:[%s2930_s1 + $0x20] ss:$48 sps:$4 sm:$0xff]   ;;  %v2216_v2 = vld [vmem:[%s2930_s1 + $0x24] ss:$48 sps:$4 sm:$0xff]  }
  0x37   :  { %1195 = vmatprep.mubr.bf16.mxu1 %v2146_v6  ;;  %v2220_v5 = vld [vmem:[%s2930_s1 + $0x84] ss:$48 sps:$4 sm:$0xff]   ;;  %v2222_v6 = vld [vmem:[%s2930_s1 + $0x8c] ss:$48 sps:$4 sm:$0xff]  }
  0x38   :  { %1918 = vmatpush3.bf16.msra.mxu0 %v2142_v3  ;;  %v2217_v3 = vld [vmem:[%s2930_s1 + $0x28] ss:$48 sps:$4 sm:$0xff]  }
  0x39   :  { %1958 = vmatpush3.bf16.msra.mxu1 %v2143_v4  ;;  %1919 = vmatprep.subr.bf16.mxu0 %v2150_v9  ;;  %v2219_v4 = vld [vmem:[%s2930_s1 + $0x2c] ss:$48 sps:$4 sm:$0xff]   ;;  %v2226_v9 = vld [vmem:[%s2930_s1 + $0xe4] ss:$48 sps:$4 sm:$0xff]  }
  0x3a   :  { %1959 = vmatprep.subr.bf16.mxu1 %v2151_v10  ;;  %v2228_v10 = vld [vmem:[%s2930_s1 + $0xec] ss:$48 sps:$4 sm:$0xff]  }
  0x3b   :  { %1131 = vmatmul.mubr.bf16.gmra.mxu0 %v2148_v7  ;;  %v2224_v7 = vld [vmem:[%s2930_s1 + $0x80] ss:$48 sps:$4 sm:$0xff]  }
  0x3c   :  { %1196 = vmatmul.mubr.bf16.gmra.mxu1 %v2149_v8  ;;  %1920 = vmatpush3.bf16.msra.mxu0 %v2152_v11  ;;  %v2225_v8 = vld [vmem:[%s2930_s1 + $0x88] ss:$48 sps:$4 sm:$0xff]   ;;  %v1466_v11 = vld [vmem:[%s2931_s2 + $0x10] sm:$0xff] }
  0x3d   :  { %1960 = vmatpush3.bf16.msra.mxu1 %v2153_v12  ;;  %1921 = vmatprep.subr.bf16.mxu0 %v2154_v13  ;;  %v1464_v12 = vld [vmem:[%s2931_s2] sm:$0xff]  ;;  %v1467_v13 = vld [vmem:[%s2931_s2 + $0x18] sm:$0xff] }
  0x3e   :  { %1961 = vmatprep.subr.bf16.mxu1 %v2155_v14  ;;  %1236 = vmatprep.mubr.bf16.mxu0 %v2160_v18  ;;  %v1465_v14 = vld [vmem:[%s2931_s2 + $0x8] sm:$0xff] }
  0x3f   :  { %1301 = vmatprep.mubr.bf16.mxu1 %v2163_v20  ;;  %1484 = vperm.xlu1 %2069, %v1466_v11   ;;  %v1469_v18 = vld [vmem:[%s2931_s2 + $0x28] sm:$0xff]  ;;  %v1468_v20 = vld [vmem:[%s2931_s2 + $0x20] sm:$0xff] }
  0x40   :  { %1922 = vmatpush3.bf16.msra.mxu0 %v2156_v15  ;;  %1474 = vperm.xlu0 %2068, %v1464_v12   ;;  %v2230_v15 = vld [vmem:[%s2930_s1 + $0xe0] ss:$48 sps:$4 sm:$0xff]  }
  0x41   :  { %1962 = vmatpush3.bf16.msra.mxu1 %v2157_v16  ;;  %1987 = vmatprep.subr.bf16.mxu0 %v2164_v21  ;;  %v2231_v16 = vld [vmem:[%s2930_s1 + $0xe8] ss:$48 sps:$4 sm:$0xff]  }
  0x42   :  { %2027 = vmatprep.subr.bf16.mxu1 %v2165_v22  ;;  %v1471_v21 = vld [vmem:[%s2931_s2 + $0x38] sm:$0xff]  ;;  %v1470_v22 = vld [vmem:[%s2931_s2 + $0x30] sm:$0xff] }
  0x43   :  { %1237 = vmatmul.mubr.bf16.vlgmr.msra.gmra.mxu0 %v2158_v17  ;;  %1489 = vperm.xlu1 %2069, %v1467_v13   ;;  %v2232_v17 = vld [vmem:[%s2930_s1 + $0x144] ss:$48 sps:$4 sm:$0xff]  }
  0x44   :  { %1302 = vmatmul.mubr.bf16.vlgmr.msra.gmra.mxu1 %v2161_v19  ;;  %1988 = vmatpush3.bf16.msra.mxu0 %v2166_v23  ;;  %v2234_v19 = vld [vmem:[%s2930_s1 + $0x14c] ss:$48 sps:$4 sm:$0xff]   ;;  %v2236_v23 = vld [vmem:[%s2930_s1 + $0x140] ss:$48 sps:$4 sm:$0xff]  }
  0x45   :  { %2028 = vmatpush3.bf16.msra.mxu1 %v2167_v24  ;;  %1989 = vmatprep.subr.bf16.mxu0 %v2168_v25  ;;  %v2237_v24 = vld [vmem:[%s2930_s1 + $0x148] ss:$48 sps:$4 sm:$0xff]  }
  0x46   :  { %2029 = vmatprep.subr.bf16.mxu1 %v2169_v26  ;;  %1244 = vmatprep.mubr.bf16.mxu0 %v2172_v29  ;;  %v1521_v25 = vld [vmem:[%s2932_s3 + $0x8] sm:$0xff]  ;;  %v1520_v26 = vld [vmem:[%s2932_s3] sm:$0xff] }
  0x47   :  { %1309 = vmatprep.mubr.bf16.mxu1 %v2174_v30  ;;  %1479 = vperm.xlu0 %2068, %v1465_v14   ;;  %v1525_v29 = vld [vmem:[%s2932_s3 + $0x28] sm:$0xff]  ;;  %v1524_v30 = vld [vmem:[%s2932_s3 + $0x20] sm:$0xff] }
  0x48   :  { %1990 = vmatpush3.bf16.msra.mxu0 %v2170_v27  ;;  %1499 = vperm.xlu1 %2069, %v1469_v18   ;;  %v1523_v27 = vld [vmem:[%s2932_s3 + $0x18] sm:$0xff] }
  0x49   :  { %2030 = vmatpush3.bf16.msra.mxu1 %v2171_v28  ;;  %1991 = vmatprep.subr.bf16.mxu0 %v2178_v33  ;;  %v1522_v28 = vld [vmem:[%s2932_s3 + $0x10] sm:$0xff] }
  0x4a   :  { %2031 = vmatprep.subr.bf16.mxu1 %v2179_v34 }
  0x4b   :  { %1245 = vmatmul.mubr.bf16.gmra.mxu0 %v2176_v31  ;;  %1494 = vperm.xlu0 %2068, %v1468_v20   ;;  %v1527_v31 = vld [vmem:[%s2932_s3 + $0x38] sm:$0xff] }
  0x4c   :  { %1310 = vmatmul.mubr.bf16.gmra.mxu1 %v2177_v32  ;;  %1992 = vmatpush3.bf16.msra.mxu0 %v2180_v35  ;;  %v1526_v32 = vld [vmem:[%s2932_s3 + $0x30] sm:$0xff] }
  0x4d   :  { %2032 = vmatpush3.bf16.msra.mxu1 %v2181_v36  ;;  %1993 = vmatprep.subr.bf16.mxu0 %v2182_v37 }
  0x4e   :  { %2033 = vmatprep.subr.bf16.mxu1 %v2183_v38  ;;  %1252 = vmatprep.mubr.bf16.mxu0 %v2186_v41 }
  0x4f   :  { %1317 = vmatprep.mubr.bf16.mxu1 %v2188_v42  ;;  %1509 = vperm.xlu1 %2069, %v1471_v21  }
  0x50   :  { %1994 = vmatpush3.bf16.msra.mxu0 %v2184_v39  ;;  %1504 = vperm.xlu0 %2068, %v1470_v22  }
  0x51   :  { %2034 = vmatpush3.bf16.msra.mxu1 %v2185_v40  ;;  %1995 = vmatprep.subr.bf16.mxu0 %v2192_v45 }
  0x52   :  { %2035 = vmatprep.subr.bf16.mxu1 %v2193_v46 }
  0x53   :  { %1253 = vmatmul.mubr.bf16.gmra.mxu0 %v2190_v43  ;;  %1535 = vperm.xlu1 %2069, %v1521_v25  }
  0x54   :  { %1318 = vmatmul.mubr.bf16.gmra.mxu1 %v2191_v44  ;;  %1996 = vmatpush3.bf16.msra.mxu0 %v2194_v47 }
  0x55   :  { %2036 = vmatpush3.bf16.msra.mxu1 %v2195_v48  ;;  %1997 = vmatprep.subr.bf16.mxu0 %v2196_v49 }
  0x56   :  { %2037 = vmatprep.subr.bf16.mxu1 %v2197_v50  ;;  %1260 = vmatprep.mubr.bf16.mxu0 %v2200_v53 }
  0x57   :  { %1325 = vmatprep.mubr.bf16.mxu1 %v2202_v54  ;;  %1530 = vperm.xlu0 %2068, %v1520_v26  }
  0x58   :  { %1998 = vmatpush3.bf16.msra.mxu0 %v2198_v51  ;;  %1545 = vperm.xlu1 %2069, %v1523_v27  }
  0x59   :  { %2038 = vmatpush3.bf16.msra.mxu1 %v2199_v52  ;;  %1999 = vmatprep.subr.bf16.mxu0 %v2206_v57 }
  0x5a   :  { %2039 = vmatprep.subr.bf16.mxu1 %v2207_v58 }
  0x5b   :  { %1261 = vmatmul.mubr.bf16.gmra.mxu0 %v2204_v55  ;;  %1540 = vperm.xlu0 %2068, %v1522_v28  }
  0x5c   :  { %1326 = vmatmul.mubr.bf16.gmra.mxu1 %v2205_v56  ;;  %2000 = vmatpush3.bf16.msra.mxu0 %v2208_v59 }
  0x5d   :  { %2040 = vmatpush3.bf16.msra.mxu1 %v2209_v60  ;;  %2001 = vmatprep.subr.bf16.mxu0 %v2210_v61 }
  0x5e   :  { %2041 = vmatprep.subr.bf16.mxu1 %v2211_v62  ;;  %1366 = vmatprep.mubr.bf16.mxu0 %v2216_v2 }
  0x5f   :  { %1431 = vmatprep.mubr.bf16.mxu1 %v2219_v4  ;;  %1555 = vperm.xlu1 %2069, %v1525_v29  }
  0x60   :  { %2002 = vmatpush3.bf16.msra.mxu0 %v2212_v63  ;;  %1550 = vperm.xlu0 %2068, %v1524_v30  }
  0x61   :  { %2042 = vmatpush3.bf16.msra.mxu1 %v2213_v0 }
  0x63   :  { %1367 = vmatmul.mubr.bf16.vlgmr.msra.gmra.mxu0 %v2214_v1  ;;  %1565 = vperm.xlu1 %2069, %v1527_v31  }
  0x64   :  { %1432 = vmatmul.mubr.bf16.vlgmr.msra.gmra.mxu1 %v2217_v3  ;;  %1374 = vmatprep.mubr.bf16.mxu0 %v2220_v5 }
  0x65   :  { %1439 = vmatprep.mubr.bf16.mxu1 %v2222_v6  ;;  %1560 = vperm.xlu0 %2068, %v1526_v32  }
  0x6b   :  { %1375 = vmatmul.mubr.bf16.gmra.mxu0 %v2224_v7 }
  0x6c   :  { %1440 = vmatmul.mubr.bf16.gmra.mxu1 %v2225_v8  ;;  %1382 = vmatprep.mubr.bf16.mxu0 %v2226_v9 }
  0x6d   :  { %1447 = vmatprep.mubr.bf16.mxu1 %v2228_v10 }
  0x73   :  { %1383 = vmatmul.mubr.bf16.gmra.mxu0 %v2230_v15 }
  0x74   :  { %1448 = vmatmul.mubr.bf16.gmra.mxu1 %v2231_v16  ;;  %1390 = vmatprep.mubr.bf16.mxu0 %v2232_v17 }
  0x75   :  { %1455 = vmatprep.mubr.bf16.mxu1 %v2234_v19 }
  0x7b   :  { %1391 = vmatmul.mubr.bf16.gmra.mxu0 %v2236_v23 }
  0x7c   :  { %1456 = vmatmul.mubr.bf16.gmra.mxu1 %v2237_v24 }
  0xba   :  { %v2830_v27 = vpop.permute.xlu1 %1484 }
  0xbb   :  { %v1475_v24 = vpop.permute.xlu0 %1474 }
  0xc2   :  { %v2836_v30 = vpop.permute.xlu0 %1479 }
  0xe3   :  { %v2744_v33 = vpop.f32.mrf.mxu0 }
  0xe4   :  { %v2746_v34 = vpop.f32.mrf.mxu1 }
  0xe5   :  { %v1844_v35 = vpop.f32.mrf.mxu0 }
  0xe6   :  { %v1884_v36 = vpop.f32.mrf.mxu1  ;;  %v1845_v32 = vadd.f32 %v1844_v35, %v2744_v33  ;;  %v2856_v33 = vpop.permute.xlu0 %1494 }
  0xe7   :  { %v2748_v37 = vpop.f32.mrf.mxu0  ;;  %2947 = vst [vmem:[#allocation15_spill] sm:$0xff] %v2856_v33 }
  0xe8   :  { %v2750_v38 = vpop.f32.mrf.mxu1 }
  0xe9   :  { %v2752_v39 = vpop.f32.mrf.mxu0 }
  0xea   :  { %v2754_v40 = vpop.f32.mrf.mxu1 }
  0xeb   :  { %v2756_v41 = vpop.f32.mrf.mxu0 }
  0xec   :  { %v2758_v42 = vpop.f32.mrf.mxu1 }
  0xed   :  { %v2760_v43 = vpop.f32.mrf.mxu0 }
  0xee   :  { %v2762_v44 = vpop.f32.mrf.mxu1 }
  0xef   :  { %v2764_v45 = vpop.f32.mrf.mxu0 }
  0xf0   :  { %v2766_v46 = vpop.f32.mrf.mxu1 }
  0xf1   :  { %v2768_v47 = vpop.f32.mrf.mxu0 }
  0xf2   :  { %v2770_v48 = vpop.f32.mrf.mxu1 }
  0xf3   :  { %v2772_v49 = vpop.f32.mrf.mxu0 }
  0xf4   :  { %v2774_v50 = vpop.f32.mrf.mxu1 }
  0xf5   :  { %v2776_v51 = vpop.f32.mrf.mxu0 }
  0xf6   :  { %v2778_v52 = vpop.f32.mrf.mxu1 }
  0xf7   :  { %v2780_v53 = vpop.f32.mrf.mxu0 }
  0xf8   :  { %v2782_v54 = vpop.f32.mrf.mxu1 }
  0xf9   :  { %v2784_v55 = vpop.f32.mrf.mxu0 }
  0xfa   :  { %v2786_v56 = vpop.f32.mrf.mxu1 }
  0xfb   :  { %v2788_v57 = vpop.f32.mrf.mxu0 }
  0xfc   :  { %v2790_v58 = vpop.f32.mrf.mxu1 }
  0xfd   :  { %v2792_v59 = vpop.f32.mrf.mxu0 }
  0xfe   :  { %v2794_v60 = vpop.f32.mrf.mxu1 }
  0xff   :  { %v2796_v61 = vpop.f32.mrf.mxu0 }
 0x100   :  { %2934 = vst [vmem:[#allocation2_spill] sm:$0xff] %v2796_v61  ;;  %v2798_v62 = vpop.f32.mrf.mxu1 }
 0x101   :  { %2935 = vst [vmem:[#allocation3_spill] sm:$0xff] %v2798_v62  ;;  %v2800_v63 = vpop.f32.mrf.mxu0 }
 0x102   :  { %2936 = vst [vmem:[#allocation4_spill] sm:$0xff] %v2800_v63  ;;  %v2802_v0 = vpop.f32.mrf.mxu1  ;;  %v2846_v63 = vpop.permute.xlu1 %1489 }
 0x103   :  { %2937 = vst [vmem:[#allocation5_spill] sm:$0xff] %v2802_v0  ;;  %v1923_v1 = vpop.f32.mrf.mxu0 }
 0x104   :  { %v1963_v2 = vpop.f32.mrf.mxu1 }
 0x105   :  { %v1924_v3 = vpop.f32.mrf.mxu0 }
 0x106   :  { %v1964_v4 = vpop.f32.mrf.mxu1 }
 0x107   :  { %v1926_v5 = vpop.f32.mrf.mxu0 }
 0x108   :  { %v1966_v6 = vpop.f32.mrf.mxu1 }
 0x109   :  { %v1927_v7 = vpop.f32.mrf.mxu0 }
 0x10a   :  { %v1967_v8 = vpop.f32.mrf.mxu1  ;;  %v1928_v35 = vadd.f32 %v1927_v7, %v1926_v5  ;;  %v1854_v5 = vadd.f32 %v2768_v47, %v2764_v45  ;;  %v1894_v7 = vadd.f32 %v2770_v48, %v2766_v46 }
 0x10b   :  { %v1929_v9 = vpop.f32.mrf.mxu0 }
 0x10c   :  { %v2804_v10 = vpop.f32.mrf.mxu1 }
 0x10d   :  { %v1930_v11 = vpop.f32.mrf.mxu0 }
 0x10e   :  { %v2806_v12 = vpop.f32.mrf.mxu1 }
 0x10f   :  { %v1932_v13 = vpop.f32.mrf.mxu0 }
 0x110   :  { %v2808_v14 = vpop.f32.mrf.mxu1 }
 0x111   :  { %v1933_v15 = vpop.f32.mrf.mxu0 }
 0x112   :  { %v2810_v16 = vpop.f32.mrf.mxu1 }
 0x113   :  { %v2812_v17 = vpop.f32.mrf.mxu0 }
 0x114   :  { %v2814_v18 = vpop.f32.mrf.mxu1 }
 0x115   :  { %v2816_v19 = vpop.f32.mrf.mxu0 }
 0x116   :  { %v2818_v20 = vpop.f32.mrf.mxu1 }
 0x117   :  { %v2820_v21 = vpop.f32.mrf.mxu0 }
 0x118   :  { %v2822_v22 = vpop.f32.mrf.mxu1 }
 0x119   :  { %2938 = vst [vmem:[#allocation6_spill] sm:$0xff] %v2822_v22  ;;  %v2824_v23 = vpop.f32.mrf.mxu0  ;;  %v1885_v22 = vadd.f32 %v1884_v36, %v2746_v34 }
 0x11a   :  { %v2826_v25 = vpop.f32.mrf.mxu1 }
 0x11b   :  { %2939 = vst [vmem:[#allocation7_spill] sm:$0xff] %v2826_v25  ;;  %v2828_v26 = vpop.f32.mrf.mxu0  ;;  %v1925_v25 = vadd.f32 %v1924_v3, %v1923_v1  ;;  %v1851_v1 = vadd.f32 %v2760_v43, %v2756_v41  ;;  %v1891_v3 = vadd.f32 %v2762_v44, %v2758_v42  ;;  %v2868_v41 = vpop.permute.xlu0 %1504  ;;  %v1968_v44 = vadd.f32 %v1967_v8, %v1966_v6 }
 0x11c   :  { %2940 = vst [vmem:[#allocation8_spill] sm:$0xff] %v2828_v26  ;;  %v2832_v28 = vpop.f32.mrf.mxu1 }
 0x11d   :  { %2941 = vst [vmem:[#allocation9_spill] sm:$0xff] %v2832_v28  ;;  %v2834_v29 = vpop.f32.mrf.mxu0  ;;  %v1174_v28 = vadd.f32 %v1885_v22, %v1845_v32  ;;  %v1965_v22 = vadd.f32 %v1964_v4, %v1963_v2  ;;  %v1182_v42 = vadd.f32 %v1891_v3, %v1851_v1 }
 0x11e   :  { %2942 = vst [vmem:[#allocation10_spill] sm:$0xff] %v2834_v29  ;;  %v2838_v31 = vpop.f32.mrf.mxu1  ;;  %v1848_v29 = vadd.f32 %v2752_v39, %v2748_v37  ;;  %v2862_v37 = vpop.permute.xlu1 %1499 }
 0x11f   :  { %2943 = vst [vmem:[#allocation11_spill] sm:$0xff] %v2838_v31  ;;  %v2842_v0 = vpop.f32.mrf.mxu0  ;;  %v1888_v31 = vadd.f32 %v2754_v40, %v2750_v38  ;;  %v1239_v34 = vadd.f32 %v1925_v25, %v1174_v28 }
 0x120   :  { %v2844_v62 = vpop.f32.mrf.mxu1 }
 0x121   :  { %2944 = vst [vmem:[#allocation12_spill] sm:$0xff] %v2844_v62  ;;  %v2848_v61 = vpop.f32.mrf.mxu0  ;;  %v1177_v62 = vadd.f32 %v1888_v31, %v1848_v29  ;;  %v1304_v38 = vadd.f32 %v1965_v22, %v1239_v34  ;;  %v1185_v31 = vadd.f32 %v1894_v7, %v1854_v5 }
 0x122   :  { %2945 = vst [vmem:[#allocation13_spill] sm:$0xff] %v2848_v61  ;;  %v2854_v26 = vpop.f32.mrf.mxu1  ;;  %v2874_v34 = vpop.permute.xlu1 %1509 }
 0x123   :  { %2946 = vst [vmem:[#allocation14_spill] sm:$0xff] %v2854_v26  ;;  %v2003_v36 = vpop.f32.mrf.mxu0  ;;  %v1242_v40 = vadd.f32 %v1928_v35, %v1177_v62  ;;  %v1931_v26 = vadd.f32 %v1930_v11, %v1929_v9  ;;  %v1857_v62 = vadd.f32 %v2776_v51, %v2772_v49  ;;  %v1897_v9 = vadd.f32 %v2778_v52, %v2774_v50 }
 0x124   :  { %v2043_v32 = vpop.f32.mrf.mxu1  ;;  %v1934_v11 = vadd.f32 %v1933_v15, %v1932_v13  ;;  %v1860_v50 = vadd.f32 %v2784_v55, %v2780_v53  ;;  %v1937_v13 = vadd.f32 %v2816_v19, %v2812_v17  ;;  %v1531_v15 = vpop.permute.xlu0 %1530  ;;  %v1903_v53 = vadd.f32 %v2794_v60, %v2790_v58 }
 0x125   :  { %v2004_v39 = vpop.f32.mrf.mxu0  ;;  %v1307_v45 = vadd.f32 %v1968_v44, %v1242_v40  ;;  %v1247_v47 = vadd.f32 %v1931_v26, %v1182_v42  ;;  %v1190_v35 = vadd.f32 %v1897_v9, %v1857_v62  ;;  %v1974_v55 = vadd.f32 %v2810_v16, %v2808_v14  ;;  %v2948_v9 = vld [vmem:[#allocation8_spill] sm:$0xff] }
 0x126   :  { %v2005_v61 = vadd.f32 %v2004_v39, %v2003_v36  ;;  %v2044_v33 = vpop.f32.mrf.mxu1  ;;  %v1250_v52 = vadd.f32 %v1934_v11, %v1185_v31  ;;  %v2949_v11 = vld [vmem:[#allocation10_spill] sm:$0xff] }
 0x127   :  { %v2006_v43 = vpop.f32.mrf.mxu0  ;;  %v2045_v4 = vadd.f32 %v2044_v33, %v2043_v32  ;;  %v1255_v5 = vadd.f32 %v1937_v13, %v1190_v35  ;;  %v2955_v35 = vld [vmem:[#allocation7_spill] sm:$0xff] }
 0x128   :  { %v1369_v2 = vadd.f32 %v2005_v61, %v1304_v38  ;;  %v2046_v25 = vpop.f32.mrf.mxu1  ;;  %v1971_v61 = vadd.f32 %v2806_v12, %v2804_v10  ;;  %v1900_v10 = vadd.f32 %v2786_v56, %v2782_v54  ;;  %v1863_v12 = vadd.f32 %v2792_v59, %v2788_v57  ;;  %v1536_v56 = vpop.permute.xlu1 %1535 }
 0x129   :  { %v2007_v28 = vpop.f32.mrf.mxu0  ;;  %v1315_v40 = vadd.f32 %v1974_v55, %v1250_v52  ;;  %v1940_v54 = vadd.f32 %v2824_v23, %v2820_v21 }
 0x12a   :  { %v1434_v29 = vadd.f32 %v2045_v4, %v1369_v2  ;;  %v2008_v46 = vadd.f32 %v2007_v28, %v2006_v43  ;;  %v2047_v48 = vpop.f32.mrf.mxu1  ;;  %v1312_v36 = vadd.f32 %v1971_v61, %v1247_v47  ;;  %v1193_v14 = vadd.f32 %v1900_v10, %v1860_v50  ;;  %v1541_v47 = vpop.permute.xlu0 %1540  ;;  %v2951_v61 = vld [vmem:[#allocation4_spill] sm:$0xff] }
 0x12b   :  { %v2009_v6 = vpop.f32.mrf.mxu0  ;;  %v2048_v49 = vadd.f32 %v2047_v48, %v2046_v25  ;;  %v1198_v16 = vadd.f32 %v1903_v53, %v1863_v12  ;;  %v1943_v28 = vadd.f32 %v2949_v11, %v2948_v9 }
 0x12c   :  { %v1512_v8 = vmul.f32 %v1475_v24, %v1434_v29  ;;  %v1372_v33 = vadd.f32 %v2008_v46, %v1307_v45  ;;  %v2049_v51 = vpop.f32.mrf.mxu1  ;;  %v1258_v62 = vadd.f32 %v1940_v54, %v1193_v14  ;;  %v1546_v12 = vpop.permute.xlu1 %1545 }
 0x12d   :  { %v2010_v26 = vpop.f32.mrf.mxu0 }
 0x12e   :  { %v1568_v1 = vadd.f32 %v1531_v15, %v1512_v8  ;;  %v1437_v3 = vadd.f32 %v2048_v49, %v1372_v33  ;;  %v2011_v22 = vadd.f32 %v2010_v26, %v2009_v6  ;;  %v2050_v32 = vpop.f32.mrf.mxu1  ;;  %v2950_v6 = vld [vmem:[#allocation2_spill] sm:$0xff]  ;;  %v2953_v33 = vld [vmem:[#allocation5_spill] sm:$0xff]  ;;  %v1551_v14 = vpop.permute.xlu0 %1550 }
 0x12f   :  { %v2012_v17 = vpop.f32.mrf.mxu0  ;;  %v2051_v39 = vadd.f32 %v2050_v32, %v2049_v51  ;;  %v1866_v8 = vadd.f32 %v2951_v61, %v2950_v6  ;;  %v2954_v51 = vld [vmem:[#allocation6_spill] sm:$0xff]  ;;  %v2956_v32 = vld [vmem:[#allocation13_spill] sm:$0xff] }
 0x130   :  { %v1513_v19 = vmul.f32 %v2836_v30, %v1437_v3  ;;  %v1377_v24 = vadd.f32 %v2011_v22, %v1312_v36  ;;  %v2052_v38 = vpop.f32.mrf.mxu1  ;;  %v1584_v7 = vmul.f32 0.2, %v1568_v1  ;;  %vm1576_vm0 = vcmp.ge.f32.partialorder %v1568_v1, 0.0 }
 0x131   :  { %v2013_v57 = vpop.f32.mrf.mxu0  ;;  %v1977_v30 = vadd.f32 %v2818_v20, %v2814_v18  ;;  %v1980_v50 = vadd.f32 %v2955_v35, %v2954_v51  ;;  %v1263_v22 = vadd.f32 %v1943_v28, %v1198_v16  ;;  %v1946_v10 = vadd.f32 %v2956_v32, %v2842_v0 }
 0x132   :  { %v1569_v59 = vadd.f32 %v1536_v56, %v1513_v19  ;;  %v1442_v58 = vadd.f32 %v2051_v39, %v1377_v24  ;;  %v2014_v60 = vadd.f32 %v2013_v57, %v2012_v17  ;;  %v2053_v43 = vpop.f32.mrf.mxu1  ;;  %v1592_v45 = vsel %vm1576_vm0, %v1568_v1, %v1584_v7  ;;  %v2959_v7 = vld [vmem:[#allocation15_spill] sm:$0xff]  ;;  %v1561_v51 = vpop.permute.xlu0 %1560 }
 0x133   :  { %v2054_v42 = vadd.f32 %v2053_v43, %v2052_v38  ;;  %v2015_v44 = vpop.f32.mrf.mxu0  ;;  %v1320_v25 = vadd.f32 %v1977_v30, %v1255_v5  ;;  %v1323_v3 = vadd.f32 %v1980_v50, %v1258_v62  ;;  %v2957_v38 = vld [vmem:[#allocation9_spill] sm:$0xff] }
 0x134   :  { %vm1577_vm1 = vcmp.ge.f32.partialorder %v1569_v59, 0.0  ;;  %v1585_v2 = vmul.f32 0.2, %v1569_v59  ;;  %v1514_v4 = vmul.f32 %v2830_v27, %v1442_v58  ;;  %v1380_v21 = vadd.f32 %v2014_v60, %v1315_v40  ;;  %v2055_v23 = vpop.f32.mrf.mxu1  ;;  %v2952_v27 = vld [vmem:[#allocation3_spill] sm:$0xff] }
 0x135   :  { %v2016_v29 = vpop.f32.mrf.mxu0  ;;  %v1906_v49 = vadd.f32 %v2953_v33, %v2952_v27  ;;  %v2958_v40 = vld [vmem:[#allocation11_spill] sm:$0xff] }
 0x136   :  { %v1593_v46 = vsel %vm1577_vm1, %v1569_v59, %v1585_v2  ;;  %v1570_v48 = vadd.f32 %v1541_v47, %v1514_v4  ;;  %v1445_v18 = vadd.f32 %v2054_v42, %v1380_v21  ;;  %v2017_v20 = vadd.f32 %v2016_v29, %v2015_v44  ;;  %v2056_v31 = vpop.f32.mrf.mxu1 }
 0x137   :  { %v1807_v52 = vpack.c.bf16 %v1593_v46, %v1592_v45  ;;  %v2018_v13 = vpop.f32.mrf.mxu0  ;;  %v2057_v36 = vadd.f32 %v2056_v31, %v2055_v23  ;;  %v1201_v39 = vadd.f32 %v1906_v49, %v1866_v8  ;;  %v1983_v5 = vadd.f32 %v2958_v40, %v2957_v38  ;;  %v2960_v23 = vld [vmem:[#allocation12_spill] sm:$0xff] }
 0x138   :  { %v1515_v15 = vmul.f32 %v2846_v63, %v1445_v18  ;;  %v1385_v26 = vadd.f32 %v2017_v20, %v1320_v25  ;;  %v2058_v1 = vpop.f32.mrf.mxu1  ;;  %v1586_v53 = vmul.f32 0.2, %v1570_v48  ;;  %vm1578_vm2 = vcmp.ge.f32.partialorder %v1570_v48, 0.0  ;;  %v2961_v25 = vld [vmem:[#allocation14_spill] sm:$0xff]  ;;  %v1556_v18 = vpop.permute.xlu1 %1555 }
 0x139   :  { %1808 = vst [vmem:[%s2933_s4] sm:$0xff] %v1807_v52   ;;  %v2019_v55 = vpop.f32.mrf.mxu0  ;;  %v1328_v60 = vadd.f32 %v1983_v5, %v1263_v22  ;;  %v1266_v43 = vadd.f32 %v1946_v10, %v1201_v39  ;;  %v1986_v62 = vadd.f32 %v2961_v25, %v2960_v23 }
 0x13a   :  { %v1571_v17 = vadd.f32 %v1546_v12, %v1515_v15  ;;  %v1450_v19 = vadd.f32 %v2057_v36, %v1385_v26  ;;  %v2020_v24 = vadd.f32 %v2019_v55, %v2018_v13  ;;  %v2059_v63 = vpop.f32.mrf.mxu1  ;;  %v1594_v16 = vsel %vm1578_vm2, %v1570_v48, %v1586_v53 }
 0x13b   :  { %v2060_v54 = vadd.f32 %v2059_v63, %v2058_v1  ;;  %v2021_v56 = vpop.f32.mrf.mxu0  ;;  %v1331_v46 = vadd.f32 %v1986_v62, %v1266_v43 }
 0x13c   :  { %vm1579_vm3 = vcmp.ge.f32.partialorder %v1571_v17, 0.0  ;;  %v1587_v0 = vmul.f32 0.2, %v1571_v17  ;;  %v1516_v57 = vmul.f32 %v2959_v7, %v1450_v19  ;;  %v1388_v59 = vadd.f32 %v2020_v24, %v1323_v3  ;;  %v2061_v58 = vpop.f32.mrf.mxu1  ;;  %v1566_v36 = vpop.permute.xlu1 %1565 }
 0x13d   :  { %v2022_v30 = vpop.f32.mrf.mxu0 }
 0x13e   :  { %v1595_v42 = vsel %vm1579_vm3, %v1571_v17, %v1587_v0  ;;  %v1572_v44 = vadd.f32 %v1551_v14, %v1516_v57  ;;  %v1453_v2 = vadd.f32 %v2060_v54, %v1388_v59  ;;  %v2023_v4 = vadd.f32 %v2022_v30, %v2021_v56  ;;  %v2062_v21 = vpop.f32.mrf.mxu1 }
 0x13f   :  { %v1812_v9 = vpack.c.bf16 %v1595_v42, %v1594_v16  ;;  %v2024_v11 = vpop.f32.mrf.mxu0  ;;  %v2063_v47 = vadd.f32 %v2062_v21, %v2061_v58 }
 0x140   :  { %v1517_v28 = vmul.f32 %v2862_v37, %v1453_v2  ;;  %v1393_v45 = vadd.f32 %v2023_v4, %v1328_v60  ;;  %v2064_v29 = vpop.f32.mrf.mxu1  ;;  %v1588_v20 = vmul.f32 0.2, %v1572_v44  ;;  %vm1580_vm4 = vcmp.ge.f32.partialorder %v1572_v44, 0.0 }
 0x141   :  { %1824 = vst [vmem:[%s2933_s4 + $0x8] sm:$0xff] %v1812_v9   ;;  %v2025_v48 = vpop.f32.mrf.mxu0 }
 0x142   :  { %v1573_v31 = vadd.f32 %v1556_v18, %v1517_v28  ;;  %v1458_v6 = vadd.f32 %v2063_v47, %v1393_v45  ;;  %v2026_v61 = vadd.f32 %v2025_v48, %v2024_v11  ;;  %v2065_v8 = vpop.f32.mrf.mxu1  ;;  %v1596_v35 = vsel %vm1580_vm4, %v1572_v44, %v1588_v20 }
 0x143   :  { %v2066_v27 = vadd.f32 %v2065_v8, %v2064_v29 }
 0x144   :  { %vm1581_vm5 = vcmp.ge.f32.partialorder %v1573_v31, 0.0  ;;  %v1589_v33 = vmul.f32 0.2, %v1573_v31  ;;  %v1518_v37 = vmul.f32 %v2868_v41, %v1458_v6  ;;  %v1396_v49 = vadd.f32 %v2026_v61, %v1331_v46 }
 0x146   :  { %v1597_v50 = vsel %vm1581_vm5, %v1573_v31, %v1589_v33  ;;  %v1574_v52 = vadd.f32 %v1561_v51, %v1518_v37  ;;  %v1461_v13 = vadd.f32 %v2066_v27, %v1396_v49 }
 0x147   :  { %v1817_v15 = vpack.c.bf16 %v1597_v50, %v1596_v35 }
 0x148   :  { %v1519_v26 = vmul.f32 %v2874_v34, %v1461_v13  ;;  %v1590_v1 = vmul.f32 0.2, %v1574_v52  ;;  %vm1582_vm6 = vcmp.ge.f32.partialorder %v1574_v52, 0.0 }
 0x149   :  { %1825 = vst [vmem:[%s2933_s4 + $0x10] sm:$0xff] %v1817_v15  }
 0x14a   :  { %v1575_v3 = vadd.f32 %v1566_v36, %v1519_v26  ;;  %v1598_v41 = vsel %vm1582_vm6, %v1574_v52, %v1590_v1 }
 0x14c   :  { %vm1583_vm7 = vcmp.ge.f32.partialorder %v1575_v3, 0.0  ;;  %v1591_v22 = vmul.f32 0.2, %v1575_v3 }
 0x14e   :  { %v1599_v32 = vsel %vm1583_vm7, %v1575_v3, %v1591_v22 }
 0x14f   :  { %v1822_v10 = vpack.c.bf16 %v1599_v32, %v1598_v41 }
 0x151   :  { %1826 = vst [vmem:[%s2933_s4 + $0x18] sm:$0xff] %v1822_v10  }

// kernel: discriminator_forward.11
= control target key start
LH: loop header
LB: loop body
LE: loop exit
PB: predicated region body
PF: predicated region fallthrough
CT: control target
= control target key end

     0   :  { %v2896_v22 = vmov 1966171168   ;;  %v416_v24 = vlaneseq  ;;  %s3556_s0 = inlined_call_operand.vmem [shape: bf16[3072,128], index: 0, kind: input, shape index: {}]   ;;  %s3557_s1 = inlined_call_operand.vmem [shape: bf16[1,3072], index: 1, kind: input, shape index: {}]   ;;  %s3558_s2 = inlined_call_operand.<no memory space> [shape: f32[1,1], index: 2, kind: input, shape index: {}]   ;;  %s3559_s3 = inlined_call_operand.<no memory space> [shape: f32[1,1], index: 3, kind: input, shape index: {}]   ;;  %s3560_s4 = inlined_call_operand.vmem [shape: f32[1,128], index: 4, kind: output, shape index: {}]  }
   0x1   :  { %v2701_v0 = vld [vmem:[%s3556_s0 + $0x78] sm:$0xff]   ;;  %v2705_v4 = vld [vmem:[%s3556_s0 + $0x70] sm:$0xff]   ;;  %v2709_v8 = vld [vmem:[%s3556_s0 + $0x68] sm:$0xff]   ;;  %v414_v23 = vunpack.c.l.s4 %v2896_v22 }
   0x2   :  { %v2702_v1 = vld [vmem:[%s3556_s0 + $0xf8] sm:$0xff]   ;;  %2434 = vmatprep.subr.bf16.mxu0 %v2701_v0  ;;  %v2706_v5 = vld [vmem:[%s3556_s0 + $0xf0] sm:$0xff]   ;;  %v2710_v9 = vld [vmem:[%s3556_s0 + $0xe8] sm:$0xff]   ;;  %v3001_v30 = vshrl.u32 %v416_v24, 7 }
   0x3   :  { %v2703_v2 = vld [vmem:[%s3556_s0 + $0x38] sm:$0xff]   ;;  %2456 = vmatprep.subr.bf16.mxu1 %v2702_v1  ;;  %v2707_v6 = vld [vmem:[%s3556_s0 + $0x30] sm:$0xff]   ;;  %v2711_v10 = vld [vmem:[%s3556_s0 + $0x28] sm:$0xff]   ;;  %v415_v29 = vunpack.c.0.s8 %v414_v23 }
   0x4   :  { %v2704_v3 = vld [vmem:[%s3556_s0 + $0xb8] sm:$0xff]   ;;  %2435 = vmatpush3.bf16.msra.mxu0 %v2703_v2  ;;  %v2708_v7 = vld [vmem:[%s3556_s0 + $0xb0] sm:$0xff]   ;;  %v2712_v11 = vld [vmem:[%s3556_s0 + $0xa8] sm:$0xff]  }
   0x5   :  { %2457 = vmatpush3.bf16.msra.mxu1 %v2704_v3  ;;  %2436 = vmatprep.subr.bf16.mxu0 %v2705_v4  ;;  %v2713_v12 = vld [vmem:[%s3556_s0 + $0x60] sm:$0xff]   ;;  %v2717_v16 = vld [vmem:[%s3556_s0 + $0x58] sm:$0xff]   ;;  %v2721_v20 = vld [vmem:[%s3556_s0 + $0x50] sm:$0xff]   ;;  %v3016_v35 = vsub.s32 %v415_v29, %v3001_v30 }
   0x6   :  { %2458 = vmatprep.subr.bf16.mxu1 %v2706_v5  ;;  %v2714_v13 = vld [vmem:[%s3556_s0 + $0xe0] sm:$0xff]   ;;  %v2718_v17 = vld [vmem:[%s3556_s0 + $0xd8] sm:$0xff]   ;;  %v2722_v21 = vld [vmem:[%s3556_s0 + $0xd0] sm:$0xff]  }
   0x7   :  { %v2715_v14 = vld [vmem:[%s3556_s0 + $0x20] sm:$0xff]   ;;  %v2719_v18 = vld [vmem:[%s3556_s0 + $0x18] sm:$0xff]   ;;  %v2723_v25 = vld [vmem:[%s3556_s0 + $0x10] sm:$0xff]  }
   0x8   :  { %2437 = vmatpush3.bf16.msra.mxu0 %v2707_v6  ;;  %v2716_v15 = vld [vmem:[%s3556_s0 + $0xa0] sm:$0xff]   ;;  %v2720_v19 = vld [vmem:[%s3556_s0 + $0x98] sm:$0xff]   ;;  %v2724_v26 = vld [vmem:[%s3556_s0 + $0x90] sm:$0xff]  }
   0x9   :  { %2459 = vmatpush3.bf16.msra.mxu1 %v2708_v7  ;;  %2438 = vmatprep.subr.bf16.mxu0 %v2709_v8  ;;  %v2725_v27 = vld [vmem:[%s3556_s0 + $0x48] sm:$0xff]   ;;  %v2729_v33 = vld [vmem:[%s3556_s0 + $0x40] sm:$0xff]   ;;  %v2734_v41 = vld [vmem:[%s3556_s0 + $0x178] sm:$0xff]  }
   0xa   :  { %2460 = vmatprep.subr.bf16.mxu1 %v2710_v9  ;;  %v2726_v28 = vld [vmem:[%s3556_s0 + $0xc8] sm:$0xff]   ;;  %v2730_v34 = vld [vmem:[%s3556_s0 + $0xc0] sm:$0xff]   ;;  %v2735_v42 = vld [vmem:[%s3556_s0 + $0x1f8] sm:$0xff]  }
   0xb   :  { %v2727_v31 = vld [vmem:[%s3556_s0 + $0x8] sm:$0xff]   ;;  %v2731_v36 = vld [vmem:[%s3556_s0] sm:$0xff]   ;;  %v2736_v47 = vld [vmem:[%s3556_s0 + $0x138] sm:$0xff]  }
   0xc   :  { %2439 = vmatpush3.bf16.msra.mxu0 %v2711_v10  ;;  %v2728_v32 = vld [vmem:[%s3556_s0 + $0x88] sm:$0xff]   ;;  %v2732_v37 = vld [vmem:[%s3556_s0 + $0x80] sm:$0xff]   ;;  %v2738_v50 = vld [vmem:[%s3556_s0 + $0x170] sm:$0xff]  }
   0xd   :  { %2461 = vmatpush3.bf16.msra.mxu1 %v2712_v11  ;;  %2440 = vmatprep.subr.bf16.mxu0 %v2713_v12  ;;  %v22_v38 = vld [vmem:[%s3557_s1] sm:$0xff]  ;;  %v2737_v52 = vld [vmem:[%s3556_s0 + $0x1b8] sm:$0xff]   ;;  %v2739_v54 = vld [vmem:[%s3556_s0 + $0x1f0] sm:$0xff]  }
   0xe   :  { %2462 = vmatprep.subr.bf16.mxu1 %v2714_v13  ;;  %v412_v39 = vcombine.high %v22_v38, %v22_v38  ;;  %v419_v40 = vrot.slane %v22_v38, %v3016_v35  ;;  %v2740_v55 = vld [vmem:[%s3556_s0 + $0x130] sm:$0xff]   ;;  %v2742_v57 = vld [vmem:[%s3556_s0 + $0x168] sm:$0xff]   ;;  %v2746_v61 = vld [vmem:[%s3556_s0 + $0x160] sm:$0xff]  }
   0xf   :  { %v2741_v58 = vld [vmem:[%s3556_s0 + $0x1b0] sm:$0xff]   ;;  %v2743_v59 = vld [vmem:[%s3556_s0 + $0x1e8] sm:$0xff]   ;;  %v2747_v63 = vld [vmem:[%s3556_s0 + $0x1e0] sm:$0xff]  }
  0x10   :  { %2441 = vmatpush3.bf16.msra.mxu0 %v2715_v14  ;;  %v427_v43 = vcombine.high %v419_v40, %v419_v40  ;;  %v435_v44 = vrot.slane %v419_v40, %v3016_v35  ;;  %v3036_v45 = vrot.slane %v412_v39, %v3016_v35  ;;  %v2744_v60 = vld [vmem:[%s3556_s0 + $0x128] sm:$0xff]   ;;  %v2748_v0 = vld [vmem:[%s3556_s0 + $0x120] sm:$0xff]   ;;  %v2750_v1 = vld [vmem:[%s3556_s0 + $0x158] sm:$0xff]  }
  0x11   :  { %2463 = vmatpush3.bf16.msra.mxu1 %v2716_v15  ;;  %2442 = vmatprep.subr.bf16.mxu0 %v2717_v16  ;;  %v2745_v62 = vld [vmem:[%s3556_s0 + $0x1a8] sm:$0xff]   ;;  %v2749_v2 = vld [vmem:[%s3556_s0 + $0x1a0] sm:$0xff]   ;;  %v2751_v3 = vld [vmem:[%s3556_s0 + $0x1d8] sm:$0xff]  }
  0x12   :  { %2464 = vmatprep.subr.bf16.mxu1 %v2718_v17  ;;  %v449_v46 = vrot.slane %v427_v43, %v3016_v35  ;;  %v428_v48 = vcombine.high %v3036_v45, %v3036_v45  ;;  %v457_v49 = vcombine.high %v435_v44, %v435_v44  ;;  %v2752_v4 = vld [vmem:[%s3556_s0 + $0x118] sm:$0xff]   ;;  %v2754_v5 = vld [vmem:[%s3556_s0 + $0x150] sm:$0xff]   ;;  %v2758_v9 = vld [vmem:[%s3556_s0 + $0x148] sm:$0xff]   ;;  %v442_v17 = vrot.slane %v3036_v45, %v3016_v35 }
  0x13   :  { %v2753_v6 = vld [vmem:[%s3556_s0 + $0x198] sm:$0xff]   ;;  %v2755_v7 = vld [vmem:[%s3556_s0 + $0x1d0] sm:$0xff]   ;;  %v2759_v11 = vld [vmem:[%s3556_s0 + $0x1c8] sm:$0xff]  }
  0x14   :  { %2443 = vmatpush3.bf16.msra.mxu0 %v2719_v18  ;;  %1767 = vmatprep.mubr.bf16.mxu0 %v449_v46  ;;  %v459_v51 = vcombine.high %v449_v46, %v449_v46  ;;  %v456_v53 = vrot.slane %v428_v48, %v3016_v35  ;;  %v2756_v8 = vld [vmem:[%s3556_s0 + $0x110] sm:$0xff]   ;;  %v2760_v12 = vld [vmem:[%s3556_s0 + $0x108] sm:$0xff]   ;;  %v2762_v13 = vld [vmem:[%s3556_s0 + $0x140] sm:$0xff]   ;;  %v458_v22 = vcombine.high %v442_v17, %v442_v17 }
  0x15   :  { %2465 = vmatpush3.bf16.msra.mxu1 %v2720_v19  ;;  %2444 = vmatprep.subr.bf16.mxu0 %v2721_v20  ;;  %v2757_v10 = vld [vmem:[%s3556_s0 + $0x190] sm:$0xff]   ;;  %v2761_v14 = vld [vmem:[%s3556_s0 + $0x188] sm:$0xff]   ;;  %v2763_v15 = vld [vmem:[%s3556_s0 + $0x1c0] sm:$0xff]  }
  0x16   :  { %2466 = vmatprep.subr.bf16.mxu1 %v2722_v21  ;;  %1807 = vmatprep.mubr.bf16.mxu1 %v459_v51  ;;  %v460_v56 = vcombine.high %v456_v53, %v456_v53  ;;  %v2764_v16 = vld [vmem:[%s3556_s0 + $0x100] sm:$0xff]   ;;  %v2766_v18 = vld [vmem:[%s3556_s0 + $0x278] sm:$0xff]   ;;  %v2770_v23 = vld [vmem:[%s3556_s0 + $0x270] sm:$0xff]  }
  0x17   :  { %v2765_v19 = vld [vmem:[%s3556_s0 + $0x180] sm:$0xff]   ;;  %v2767_v20 = vld [vmem:[%s3556_s0 + $0x2f8] sm:$0xff]   ;;  %v2775_v29 = vld [vmem:[%s3556_s0 + $0x2e8] sm:$0xff]  }
  0x18   :  { %2445 = vmatpush3.bf16.msra.mxu0 %v2723_v25  ;;  %v2768_v21 = vld [vmem:[%s3556_s0 + $0x238] sm:$0xff]   ;;  %v2771_v25 = vld [vmem:[%s3556_s0 + $0x2f0] sm:$0xff]   ;;  %v2781_v38 = vld [vmem:[%s3556_s0 + $0x2a0] sm:$0xff]  }
  0x19   :  { %2467 = vmatpush3.bf16.msra.mxu1 %v2724_v26  ;;  %2446 = vmatprep.subr.bf16.mxu0 %v2725_v27  ;;  %v2769_v24 = vld [vmem:[%s3556_s0 + $0x2b8] sm:$0xff]   ;;  %v2772_v26 = vld [vmem:[%s3556_s0 + $0x230] sm:$0xff]   ;;  %v2774_v27 = vld [vmem:[%s3556_s0 + $0x268] sm:$0xff]  }
  0x1a   :  { %2468 = vmatprep.subr.bf16.mxu1 %v2726_v28  ;;  %v2773_v28 = vld [vmem:[%s3556_s0 + $0x2b0] sm:$0xff]   ;;  %v2783_v39 = vld [vmem:[%s3556_s0 + $0x2d8] sm:$0xff]   ;;  %v2790_v45 = vld [vmem:[%s3556_s0 + $0x248] sm:$0xff]  }
  0x1b   :  { %v2784_v40 = vld [vmem:[%s3556_s0 + $0x218] sm:$0xff]   ;;  %v2787_v43 = vld [vmem:[%s3556_s0 + $0x2d0] sm:$0xff]   ;;  %v2792_v48 = vld [vmem:[%s3556_s0 + $0x208] sm:$0xff]  }
  0x1c   :  { %2447 = vmatpush3.bf16.msra.mxu0 %v2727_v31  ;;  %v2776_v31 = vld [vmem:[%s3556_s0 + $0x228] sm:$0xff]   ;;  %v2789_v46 = vld [vmem:[%s3556_s0 + $0x290] sm:$0xff]   ;;  %v2795_v51 = vld [vmem:[%s3556_s0 + $0x2c0] sm:$0xff]  }
  0x1d   :  { %2469 = vmatpush3.bf16.msra.mxu1 %v2728_v32  ;;  %2448 = vmatprep.subr.bf16.mxu0 %v2729_v33  ;;  %v2778_v32 = vld [vmem:[%s3556_s0 + $0x260] sm:$0xff]   ;;  %v2777_v33 = vld [vmem:[%s3556_s0 + $0x2a8] sm:$0xff]  }
  0x1e   :  { %2470 = vmatprep.subr.bf16.mxu1 %v2730_v34  ;;  %v2779_v34 = vld [vmem:[%s3556_s0 + $0x2e0] sm:$0xff]  }
  0x20   :  { %2449 = vmatpush3.bf16.msra.mxu0 %v2731_v36  ;;  %v2780_v36 = vld [vmem:[%s3556_s0 + $0x220] sm:$0xff]  }
  0x21   :  { %2471 = vmatpush3.bf16.msra.mxu1 %v2732_v37  ;;  %2478 = vmatprep.subr.bf16.mxu0 %v2734_v41  ;;  %v2782_v37 = vld [vmem:[%s3556_s0 + $0x258] sm:$0xff]   ;;  %v2786_v41 = vld [vmem:[%s3556_s0 + $0x250] sm:$0xff]  }
  0x22   :  { %2500 = vmatprep.subr.bf16.mxu1 %v2735_v42  ;;  %v2785_v42 = vld [vmem:[%s3556_s0 + $0x298] sm:$0xff]  }
  0x23   :  { %1768 = vmatmul.mubr.bf16.vlgmr.msra.gmra.mxu0 %v435_v44  ;;  %v2788_v44 = vld [vmem:[%s3556_s0 + $0x210] sm:$0xff]  }
  0x24   :  { %2479 = vmatpush3.bf16.msra.mxu0 %v2736_v47  ;;  %1808 = vmatmul.mubr.bf16.vlgmr.msra.gmra.mxu1 %v457_v49  ;;  %v2791_v47 = vld [vmem:[%s3556_s0 + $0x2c8] sm:$0xff]   ;;  %v2794_v49 = vld [vmem:[%s3556_s0 + $0x240] sm:$0xff]  }
  0x25   :  { %2480 = vmatprep.subr.bf16.mxu0 %v2738_v50  ;;  %2501 = vmatpush3.bf16.msra.mxu1 %v2737_v52  ;;  %v2793_v50 = vld [vmem:[%s3556_s0 + $0x288] sm:$0xff]  }
  0x26   :  { %1847 = vmatprep.mubr.bf16.mxu0 %v456_v53  ;;  %2502 = vmatprep.subr.bf16.mxu1 %v2739_v54  ;;  %v23_v52 = vld [vmem:[%s3557_s1 + $0x8] sm:$0xff]  ;;  %v2796_v53 = vld [vmem:[%s3556_s0 + $0x200] sm:$0xff]  }
  0x27   :  { %1887 = vmatprep.mubr.bf16.mxu1 %v460_v56  ;;  %v468_v54 = vrot.slane %v23_v52, %v3016_v35  ;;  %v2798_v56 = vld [vmem:[%s3556_s0 + $0x378] sm:$0xff]  }
  0x28   :  { %2481 = vmatpush3.bf16.msra.mxu0 %v2740_v55  ;;  %v461_v55 = vcombine.high %v23_v52, %v23_v52  ;;  %v2897_v52 = vmov 0  }
  0x29   :  { %2482 = vmatprep.subr.bf16.mxu0 %v2742_v57  ;;  %2503 = vmatpush3.bf16.msra.mxu1 %v2741_v58  ;;  %v2797_v57 = vld [vmem:[%s3556_s0 + $0x280] sm:$0xff]   ;;  %v476_v58 = vcombine.high %v468_v54, %v468_v54 }
  0x2a   :  { %2504 = vmatprep.subr.bf16.mxu1 %v2743_v59  ;;  %v484_v59 = vrot.slane %v468_v54, %v3016_v35  ;;  %2700 = vset.pattern.permute.xlu0 %v2897_v52  ;;  %v2844_v54 = vld [vmem:[%s3556_s0 + $0x4e0] sm:$0xff]  }
  0x2b   :  { %v2892_v52 = vld [vmem:[%s3556_s0 + $0x5c0] sm:$0xff]  }
  0x2c   :  { %2483 = vmatpush3.bf16.msra.mxu0 %v2744_v60  ;;  %v3239_v60 = vrot.slane %v461_v55, %v3016_v35  ;;  %v2845_v55 = vld [vmem:[%s3556_s0 + $0x420] sm:$0xff]  }
  0x2d   :  { %2484 = vmatprep.subr.bf16.mxu0 %v2746_v61  ;;  %2505 = vmatpush3.bf16.msra.mxu1 %v2745_v62  ;;  %v2799_v61 = vld [vmem:[%s3556_s0 + $0x3f8] sm:$0xff]   ;;  %v498_v62 = vrot.slane %v476_v58, %v3016_v35 }
  0x2e   :  { %2506 = vmatprep.subr.bf16.mxu1 %v2747_v63  ;;  %v2800_v63 = vld [vmem:[%s3556_s0 + $0x338] sm:$0xff]  }
  0x2f   :  { %v2848_v58 = vld [vmem:[%s3556_s0 + $0x4d8] sm:$0xff]  }
  0x30   :  { %2485 = vmatpush3.bf16.msra.mxu0 %v2748_v0  ;;  %v477_v0 = vcombine.high %v3239_v60, %v3239_v60 }
  0x31   :  { %2486 = vmatprep.subr.bf16.mxu0 %v2750_v1  ;;  %2507 = vmatpush3.bf16.msra.mxu1 %v2749_v2  ;;  %v506_v1 = vcombine.high %v484_v59, %v484_v59  ;;  %v2802_v2 = vld [vmem:[%s3556_s0 + $0x370] sm:$0xff]  }
  0x32   :  { %2508 = vmatprep.subr.bf16.mxu1 %v2751_v3  ;;  %v508_v3 = vcombine.high %v498_v62, %v498_v62 }
  0x34   :  { %2487 = vmatpush3.bf16.msra.mxu0 %v2752_v4  ;;  %v2801_v4 = vld [vmem:[%s3556_s0 + $0x3b8] sm:$0xff]  }
  0x35   :  { %2488 = vmatprep.subr.bf16.mxu0 %v2754_v5  ;;  %2509 = vmatpush3.bf16.msra.mxu1 %v2753_v6  ;;  %v505_v5 = vrot.slane %v477_v0, %v3016_v35  ;;  %v2803_v6 = vld [vmem:[%s3556_s0 + $0x3f0] sm:$0xff]   ;;  %v2855_v0 = vld [vmem:[%s3556_s0 + $0x448] sm:$0xff]  }
  0x36   :  { %2510 = vmatprep.subr.bf16.mxu1 %v2755_v7  ;;  %v2804_v7 = vld [vmem:[%s3556_s0 + $0x330] sm:$0xff]  }
  0x38   :  { %2489 = vmatpush3.bf16.msra.mxu0 %v2756_v8  ;;  %v509_v8 = vcombine.high %v505_v5, %v505_v5 }
  0x39   :  { %2490 = vmatprep.subr.bf16.mxu0 %v2758_v9  ;;  %2511 = vmatpush3.bf16.msra.mxu1 %v2757_v10  ;;  %v2806_v9 = vld [vmem:[%s3556_s0 + $0x368] sm:$0xff]   ;;  %v2805_v10 = vld [vmem:[%s3556_s0 + $0x3b0] sm:$0xff]  }
  0x3a   :  { %2512 = vmatprep.subr.bf16.mxu1 %v2759_v11  ;;  %v2807_v11 = vld [vmem:[%s3556_s0 + $0x3e8] sm:$0xff]  }
  0x3c   :  { %2491 = vmatpush3.bf16.msra.mxu0 %v2760_v12  ;;  %v2808_v12 = vld [vmem:[%s3556_s0 + $0x328] sm:$0xff]  }
  0x3d   :  { %2492 = vmatprep.subr.bf16.mxu0 %v2762_v13  ;;  %2513 = vmatpush3.bf16.msra.mxu1 %v2761_v14  ;;  %v2810_v13 = vld [vmem:[%s3556_s0 + $0x360] sm:$0xff]   ;;  %v2809_v14 = vld [vmem:[%s3556_s0 + $0x3a8] sm:$0xff]  }
  0x3e   :  { %2514 = vmatprep.subr.bf16.mxu1 %v2763_v15  ;;  %v2811_v15 = vld [vmem:[%s3556_s0 + $0x3e0] sm:$0xff]  }
  0x40   :  { %2493 = vmatpush3.bf16.msra.mxu0 %v2764_v16  ;;  %v2812_v16 = vld [vmem:[%s3556_s0 + $0x320] sm:$0xff]  }
  0x41   :  { %2522 = vmatprep.subr.bf16.mxu0 %v2766_v18  ;;  %2515 = vmatpush3.bf16.msra.mxu1 %v2765_v19  ;;  %v2813_v18 = vld [vmem:[%s3556_s0 + $0x3a0] sm:$0xff]   ;;  %v2815_v19 = vld [vmem:[%s3556_s0 + $0x3d8] sm:$0xff]  }
  0x42   :  { %2544 = vmatprep.subr.bf16.mxu1 %v2767_v20  ;;  %v2816_v20 = vld [vmem:[%s3556_s0 + $0x318] sm:$0xff]  }
  0x43   :  { %1848 = vmatmul.mubr.bf16.vlgmr.msra.gmra.mxu0 %v442_v17  ;;  %v2814_v17 = vld [vmem:[%s3556_s0 + $0x358] sm:$0xff]  }
  0x44   :  { %2523 = vmatpush3.bf16.msra.mxu0 %v2768_v21  ;;  %1888 = vmatmul.mubr.bf16.vlgmr.msra.gmra.mxu1 %v458_v22  ;;  %v2818_v21 = vld [vmem:[%s3556_s0 + $0x350] sm:$0xff]   ;;  %v2817_v22 = vld [vmem:[%s3556_s0 + $0x398] sm:$0xff]  }
  0x45   :  { %2524 = vmatprep.subr.bf16.mxu0 %v2770_v23  ;;  %2545 = vmatpush3.bf16.msra.mxu1 %v2769_v24  ;;  %v2819_v23 = vld [vmem:[%s3556_s0 + $0x3d0] sm:$0xff]  }
  0x46   :  { %2546 = vmatprep.subr.bf16.mxu1 %v2771_v25  ;;  %1927 = vmatprep.mubr.bf16.mxu0 %v498_v62  ;;  %v2820_v24 = vld [vmem:[%s3556_s0 + $0x310] sm:$0xff]   ;;  %v2822_v25 = vld [vmem:[%s3556_s0 + $0x348] sm:$0xff]  }
  0x47   :  { %1967 = vmatprep.mubr.bf16.mxu1 %v508_v3  ;;  %v2852_v62 = vld [vmem:[%s3556_s0 + $0x4d0] sm:$0xff]   ;;  %v2857_v3 = vld [vmem:[%s3556_s0 + $0x408] sm:$0xff]  }
  0x48   :  { %2525 = vmatpush3.bf16.msra.mxu0 %v2772_v26  ;;  %v2821_v26 = vld [vmem:[%s3556_s0 + $0x390] sm:$0xff]  }
  0x49   :  { %2526 = vmatprep.subr.bf16.mxu0 %v2774_v27  ;;  %2547 = vmatpush3.bf16.msra.mxu1 %v2773_v28  ;;  %v2823_v27 = vld [vmem:[%s3556_s0 + $0x3c8] sm:$0xff]  }
  0x4a   :  { %2548 = vmatprep.subr.bf16.mxu1 %v2775_v29  ;;  %v2824_v28 = vld [vmem:[%s3556_s0 + $0x308] sm:$0xff]   ;;  %v2826_v29 = vld [vmem:[%s3556_s0 + $0x340] sm:$0xff]  }
  0x4c   :  { %2527 = vmatpush3.bf16.msra.mxu0 %v2776_v31  ;;  %v2825_v31 = vld [vmem:[%s3556_s0 + $0x388] sm:$0xff]  }
  0x4d   :  { %2528 = vmatprep.subr.bf16.mxu0 %v2778_v32  ;;  %2549 = vmatpush3.bf16.msra.mxu1 %v2777_v33  ;;  %v2827_v32 = vld [vmem:[%s3556_s0 + $0x3c0] sm:$0xff]  }
  0x4e   :  { %2550 = vmatprep.subr.bf16.mxu1 %v2779_v34  ;;  %v2828_v33 = vld [vmem:[%s3556_s0 + $0x300] sm:$0xff]   ;;  %v491_v34 = vrot.slane %v3239_v60, %v3016_v35  ;;  %v2851_v60 = vld [vmem:[%s3556_s0 + $0x450] sm:$0xff]  }
  0x50   :  { %2529 = vmatpush3.bf16.msra.mxu0 %v2780_v36  ;;  %v2831_v36 = vld [vmem:[%s3556_s0 + $0x478] sm:$0xff]  }
  0x51   :  { %2530 = vmatprep.subr.bf16.mxu0 %v2782_v37  ;;  %2551 = vmatpush3.bf16.msra.mxu1 %v2781_v38  ;;  %v2829_v37 = vld [vmem:[%s3556_s0 + $0x380] sm:$0xff]   ;;  %v2832_v38 = vld [vmem:[%s3556_s0 + $0x4f8] sm:$0xff]  }
  0x52   :  { %2552 = vmatprep.subr.bf16.mxu1 %v2783_v39  ;;  %v2833_v39 = vld [vmem:[%s3556_s0 + $0x438] sm:$0xff]  }
  0x54   :  { %2531 = vmatpush3.bf16.msra.mxu0 %v2784_v40  ;;  %v507_v40 = vcombine.high %v491_v34, %v491_v34 }
  0x55   :  { %2532 = vmatprep.subr.bf16.mxu0 %v2786_v41  ;;  %2553 = vmatpush3.bf16.msra.mxu1 %v2785_v42  ;;  %v2835_v41 = vld [vmem:[%s3556_s0 + $0x470] sm:$0xff]   ;;  %v9_v42 = vstv %s3558_s2 }
  0x56   :  { %2554 = vmatprep.subr.bf16.mxu1 %v2787_v43  ;;  %v2834_v43 = vld [vmem:[%s3556_s0 + $0x4b8] sm:$0xff]   ;;  %10 = vst [vmem:[#allocation2] sm:$0x1] %v9_v42  ;;  %v2883_v42 = vld [vmem:[%s3556_s0 + $0x550] sm:$0xff]  }
  0x58   :  { %2533 = vmatpush3.bf16.msra.mxu0 %v2788_v44  ;;  %v2836_v44 = vld [vmem:[%s3556_s0 + $0x4f0] sm:$0xff]  }
  0x59   :  { %2534 = vmatprep.subr.bf16.mxu0 %v2790_v45  ;;  %2555 = vmatpush3.bf16.msra.mxu1 %v2789_v46  ;;  %v2837_v45 = vld [vmem:[%s3556_s0 + $0x430] sm:$0xff]   ;;  %v2839_v46 = vld [vmem:[%s3556_s0 + $0x468] sm:$0xff]  }
  0x5a   :  { %2556 = vmatprep.subr.bf16.mxu1 %v2791_v47  ;;  %v11_v47 = vstv %s3559_s3 }
  0x5b   :  { %12 = vst [vmem:[#allocation3] sm:$0x1] %v11_v47  ;;  %v2886_v47 = vld [vmem:[%s3556_s0 + $0x590] sm:$0xff]  }
  0x5c   :  { %2535 = vmatpush3.bf16.msra.mxu0 %v2792_v48  ;;  %v2838_v48 = vld [vmem:[%s3556_s0 + $0x4b0] sm:$0xff]  }
  0x5d   :  { %2536 = vmatprep.subr.bf16.mxu0 %v2794_v49  ;;  %2557 = vmatpush3.bf16.msra.mxu1 %v2793_v50  ;;  %v2840_v49 = vld [vmem:[%s3556_s0 + $0x4e8] sm:$0xff]  }
  0x5e   :  { %2558 = vmatprep.subr.bf16.mxu1 %v2795_v51  ;;  %v2841_v50 = vld [vmem:[%s3556_s0 + $0x428] sm:$0xff]   ;;  %v2843_v51 = vld [vmem:[%s3556_s0 + $0x460] sm:$0xff]  }
  0x60   :  { %2537 = vmatpush3.bf16.msra.mxu0 %v2796_v53  ;;  %v2842_v53 = vld [vmem:[%s3556_s0 + $0x4a8] sm:$0xff]  }
  0x61   :  { %2566 = vmatprep.subr.bf16.mxu0 %v2798_v56  ;;  %2559 = vmatpush3.bf16.msra.mxu1 %v2797_v57  ;;  %v2847_v56 = vld [vmem:[%s3556_s0 + $0x458] sm:$0xff]   ;;  %v2846_v57 = vld [vmem:[%s3556_s0 + $0x4a0] sm:$0xff]  }
  0x62   :  { %2588 = vmatprep.subr.bf16.mxu1 %v2799_v61  ;;  %v2850_v61 = vld [vmem:[%s3556_s0 + $0x498] sm:$0xff]  }
  0x63   :  { %1928 = vmatmul.mubr.bf16.vlgmr.msra.gmra.mxu0 %v484_v59  ;;  %v2849_v59 = vld [vmem:[%s3556_s0 + $0x418] sm:$0xff]  }
  0x64   :  { %2567 = vmatpush3.bf16.msra.mxu0 %v2800_v63  ;;  %1968 = vmatmul.mubr.bf16.vlgmr.msra.gmra.mxu1 %v506_v1  ;;  %v2853_v63 = vld [vmem:[%s3556_s0 + $0x410] sm:$0xff]  }
  0x65   :  { %2568 = vmatprep.subr.bf16.mxu0 %v2802_v2  ;;  %2589 = vmatpush3.bf16.msra.mxu1 %v2801_v4  ;;  %v2854_v1 = vld [vmem:[%s3556_s0 + $0x490] sm:$0xff]   ;;  %v2856_v2 = vld [vmem:[%s3556_s0 + $0x4c8] sm:$0xff]   ;;  %v2859_v4 = vld [vmem:[%s3556_s0 + $0x440] sm:$0xff]  }
  0x66   :  { %2007 = vmatprep.mubr.bf16.mxu0 %v505_v5  ;;  %2590 = vmatprep.subr.bf16.mxu1 %v2803_v6  ;;  %v2858_v5 = vld [vmem:[%s3556_s0 + $0x488] sm:$0xff]   ;;  %v2860_v6 = vld [vmem:[%s3556_s0 + $0x4c0] sm:$0xff]  }
  0x67   :  { %2047 = vmatprep.mubr.bf16.mxu1 %v509_v8  ;;  %v2861_v8 = vld [vmem:[%s3556_s0 + $0x400] sm:$0xff]  }
  0x68   :  { %2569 = vmatpush3.bf16.msra.mxu0 %v2804_v7  ;;  %v24_v7 = vld [vmem:[%s3557_s1 + $0x10] sm:$0xff] }
  0x69   :  { %2570 = vmatprep.subr.bf16.mxu0 %v2806_v9  ;;  %2591 = vmatpush3.bf16.msra.mxu1 %v2805_v10  ;;  %v517_v9 = vrot.slane %v24_v7, %v3016_v35  ;;  %v510_v10 = vcombine.high %v24_v7, %v24_v7 }
  0x6a   :  { %2592 = vmatprep.subr.bf16.mxu1 %v2807_v11  ;;  %v2863_v11 = vld [vmem:[%s3556_s0 + $0x578] sm:$0xff]  }
  0x6c   :  { %2571 = vmatpush3.bf16.msra.mxu0 %v2808_v12  ;;  %v2862_v12 = vld [vmem:[%s3556_s0 + $0x480] sm:$0xff]  }
  0x6d   :  { %2572 = vmatprep.subr.bf16.mxu0 %v2810_v13  ;;  %2593 = vmatpush3.bf16.msra.mxu1 %v2809_v14  ;;  %v525_v13 = vcombine.high %v517_v9, %v517_v9  ;;  %v533_v14 = vrot.slane %v517_v9, %v3016_v35 }
  0x6e   :  { %2594 = vmatprep.subr.bf16.mxu1 %v2811_v15  ;;  %v3451_v15 = vrot.slane %v510_v10, %v3016_v35 }
  0x70   :  { %2573 = vmatpush3.bf16.msra.mxu0 %v2812_v16  ;;  %v2864_v16 = vld [vmem:[%s3556_s0 + $0x5f8] sm:$0xff]  }
  0x71   :  { %2574 = vmatprep.subr.bf16.mxu0 %v2814_v17  ;;  %2595 = vmatpush3.bf16.msra.mxu1 %v2813_v18  ;;  %v547_v17 = vrot.slane %v525_v13, %v3016_v35  ;;  %v2865_v18 = vld [vmem:[%s3556_s0 + $0x538] sm:$0xff]  }
  0x72   :  { %2596 = vmatprep.subr.bf16.mxu1 %v2815_v19  ;;  %v526_v19 = vcombine.high %v3451_v15, %v3451_v15 }
  0x74   :  { %2575 = vmatpush3.bf16.msra.mxu0 %v2816_v20  ;;  %v555_v20 = vcombine.high %v533_v14, %v533_v14 }
  0x75   :  { %2576 = vmatprep.subr.bf16.mxu0 %v2818_v21  ;;  %2597 = vmatpush3.bf16.msra.mxu1 %v2817_v22  ;;  %v2867_v21 = vld [vmem:[%s3556_s0 + $0x570] sm:$0xff]   ;;  %v557_v22 = vcombine.high %v547_v17, %v547_v17 }
  0x76   :  { %2598 = vmatprep.subr.bf16.mxu1 %v2819_v23  ;;  %v2866_v23 = vld [vmem:[%s3556_s0 + $0x5b8] sm:$0xff]  }
  0x78   :  { %2577 = vmatpush3.bf16.msra.mxu0 %v2820_v24  ;;  %v554_v24 = vrot.slane %v526_v19, %v3016_v35 }
  0x79   :  { %2578 = vmatprep.subr.bf16.mxu0 %v2822_v25  ;;  %2599 = vmatpush3.bf16.msra.mxu1 %v2821_v26  ;;  %v2868_v25 = vld [vmem:[%s3556_s0 + $0x5f0] sm:$0xff]  }
  0x7a   :  { %2600 = vmatprep.subr.bf16.mxu1 %v2823_v27  ;;  %v2869_v26 = vld [vmem:[%s3556_s0 + $0x530] sm:$0xff]   ;;  %v558_v27 = vcombine.high %v554_v24, %v554_v24 }
  0x7c   :  { %2579 = vmatpush3.bf16.msra.mxu0 %v2824_v28  ;;  %v2871_v28 = vld [vmem:[%s3556_s0 + $0x568] sm:$0xff]  }
  0x7d   :  { %2580 = vmatprep.subr.bf16.mxu0 %v2826_v29  ;;  %2601 = vmatpush3.bf16.msra.mxu1 %v2825_v31  ;;  %v2870_v29 = vld [vmem:[%s3556_s0 + $0x5b0] sm:$0xff]   ;;  %v2872_v31 = vld [vmem:[%s3556_s0 + $0x5e8] sm:$0xff]  }
  0x7e   :  { %2602 = vmatprep.subr.bf16.mxu1 %v2827_v32  ;;  %v2873_v32 = vld [vmem:[%s3556_s0 + $0x528] sm:$0xff]  }
  0x80   :  { %2581 = vmatpush3.bf16.msra.mxu0 %v2828_v33  ;;  %v2875_v33 = vld [vmem:[%s3556_s0 + $0x560] sm:$0xff]  }
  0x81   :  { %2610 = vmatprep.subr.bf16.mxu0 %v2831_v36  ;;  %2603 = vmatpush3.bf16.msra.mxu1 %v2829_v37  ;;  %v2876_v36 = vld [vmem:[%s3556_s0 + $0x5e0] sm:$0xff]  }
  0x82   :  { %2632 = vmatprep.subr.bf16.mxu1 %v2832_v38  ;;  %v2877_v37 = vld [vmem:[%s3556_s0 + $0x520] sm:$0xff]   ;;  %v2879_v38 = vld [vmem:[%s3556_s0 + $0x558] sm:$0xff]  }
  0x83   :  { %2008 = vmatmul.mubr.bf16.vlgmr.msra.gmra.mxu0 %v491_v34  ;;  %v2874_v34 = vld [vmem:[%s3556_s0 + $0x5a8] sm:$0xff]  }
  0x84   :  { %2611 = vmatpush3.bf16.msra.mxu0 %v2833_v39  ;;  %2048 = vmatmul.mubr.bf16.vlgmr.msra.gmra.mxu1 %v507_v40  ;;  %v2878_v39 = vld [vmem:[%s3556_s0 + $0x5a0] sm:$0xff]   ;;  %v2880_v40 = vld [vmem:[%s3556_s0 + $0x5d8] sm:$0xff]  }
  0x85   :  { %2612 = vmatprep.subr.bf16.mxu0 %v2835_v41  ;;  %2633 = vmatpush3.bf16.msra.mxu1 %v2834_v43  ;;  %v2881_v41 = vld [vmem:[%s3556_s0 + $0x518] sm:$0xff]  }
  0x86   :  { %2634 = vmatprep.subr.bf16.mxu1 %v2836_v44  ;;  %2087 = vmatprep.mubr.bf16.mxu0 %v547_v17  ;;  %v2882_v43 = vld [vmem:[%s3556_s0 + $0x598] sm:$0xff]   ;;  %v2884_v44 = vld [vmem:[%s3556_s0 + $0x5d0] sm:$0xff]  }
  0x87   :  { %2127 = vmatprep.mubr.bf16.mxu1 %v557_v22 }
  0x88   :  { %2613 = vmatpush3.bf16.msra.mxu0 %v2837_v45  ;;  %v2885_v45 = vld [vmem:[%s3556_s0 + $0x510] sm:$0xff]  }
  0x89   :  { %2614 = vmatprep.subr.bf16.mxu0 %v2839_v46  ;;  %2635 = vmatpush3.bf16.msra.mxu1 %v2838_v48  ;;  %v2887_v46 = vld [vmem:[%s3556_s0 + $0x548] sm:$0xff]  }
  0x8a   :  { %2636 = vmatprep.subr.bf16.mxu1 %v2840_v49  ;;  %v2888_v48 = vld [vmem:[%s3556_s0 + $0x5c8] sm:$0xff]  }
  0x8b   :  { %v2889_v49 = vld [vmem:[%s3556_s0 + $0x508] sm:$0xff]  }
  0x8c   :  { %2615 = vmatpush3.bf16.msra.mxu0 %v2841_v50  ;;  %v2891_v50 = vld [vmem:[%s3556_s0 + $0x540] sm:$0xff]  }
  0x8d   :  { %2616 = vmatprep.subr.bf16.mxu0 %v2843_v51  ;;  %2637 = vmatpush3.bf16.msra.mxu1 %v2842_v53  ;;  %v2890_v51 = vld [vmem:[%s3556_s0 + $0x588] sm:$0xff]   ;;  %v2893_v53 = vld [vmem:[%s3556_s0 + $0x500] sm:$0xff]  }
  0x8e   :  { %2638 = vmatprep.subr.bf16.mxu1 %v2844_v54  ;;  %v2215_v54 = vld [vmem:[#allocation2] sm:$0x1] }
  0x8f   :  { %2218 = vperm.xlu0 %2700, %v2215_v54  }
  0x90   :  { %2617 = vmatpush3.bf16.msra.mxu0 %v2845_v55  ;;  %v540_v55 = vrot.slane %v3451_v15, %v3016_v35 }
  0x91   :  { %2618 = vmatprep.subr.bf16.mxu0 %v2847_v56  ;;  %2639 = vmatpush3.bf16.msra.mxu1 %v2846_v57  ;;  %v2894_v56 = vld [vmem:[%s3556_s0 + $0x580] sm:$0xff]  }
  0x92   :  { %2640 = vmatprep.subr.bf16.mxu1 %v2848_v58  ;;  %v2226_v57 = vld [vmem:[#allocation3] sm:$0x1]  ;;  %v556_v58 = vcombine.high %v540_v55, %v540_v55 }
  0x93   :  { %2229 = vperm.xlu0 %2700, %v2226_v57  }
  0x94   :  { %2619 = vmatpush3.bf16.msra.mxu0 %v2849_v59 }
  0x95   :  { %2620 = vmatprep.subr.bf16.mxu0 %v2851_v60  ;;  %2641 = vmatpush3.bf16.msra.mxu1 %v2850_v61 }
  0x96   :  { %2642 = vmatprep.subr.bf16.mxu1 %v2852_v62 }
  0x98   :  { %2621 = vmatpush3.bf16.msra.mxu0 %v2853_v63 }
  0x99   :  { %2622 = vmatprep.subr.bf16.mxu0 %v2855_v0  ;;  %2643 = vmatpush3.bf16.msra.mxu1 %v2854_v1 }
  0x9a   :  { %2644 = vmatprep.subr.bf16.mxu1 %v2856_v2 }
  0x9c   :  { %2623 = vmatpush3.bf16.msra.mxu0 %v2857_v3 }
  0x9d   :  { %2624 = vmatprep.subr.bf16.mxu0 %v2859_v4  ;;  %2645 = vmatpush3.bf16.msra.mxu1 %v2858_v5 }
  0x9e   :  { %2646 = vmatprep.subr.bf16.mxu1 %v2860_v6 }
  0xa0   :  { %2625 = vmatpush3.bf16.msra.mxu0 %v2861_v8 }
  0xa1   :  { %2654 = vmatprep.subr.bf16.mxu0 %v2863_v11  ;;  %2647 = vmatpush3.bf16.msra.mxu1 %v2862_v12 }
  0xa2   :  { %2676 = vmatprep.subr.bf16.mxu1 %v2864_v16 }
  0xa3   :  { %2088 = vmatmul.mubr.bf16.vlgmr.msra.gmra.mxu0 %v533_v14 }
  0xa4   :  { %2655 = vmatpush3.bf16.msra.mxu0 %v2865_v18  ;;  %2128 = vmatmul.mubr.bf16.vlgmr.msra.gmra.mxu1 %v555_v20 }
  0xa5   :  { %2656 = vmatprep.subr.bf16.mxu0 %v2867_v21  ;;  %2677 = vmatpush3.bf16.msra.mxu1 %v2866_v23 }
  0xa6   :  { %2167 = vmatprep.mubr.bf16.mxu0 %v554_v24  ;;  %2678 = vmatprep.subr.bf16.mxu1 %v2868_v25 }
  0xa7   :  { %2207 = vmatprep.mubr.bf16.mxu1 %v558_v27 }
  0xa8   :  { %2657 = vmatpush3.bf16.msra.mxu0 %v2869_v26 }
  0xa9   :  { %2658 = vmatprep.subr.bf16.mxu0 %v2871_v28  ;;  %2679 = vmatpush3.bf16.msra.mxu1 %v2870_v29 }
  0xaa   :  { %2680 = vmatprep.subr.bf16.mxu1 %v2872_v31 }
  0xac   :  { %2659 = vmatpush3.bf16.msra.mxu0 %v2873_v32 }
  0xad   :  { %2660 = vmatprep.subr.bf16.mxu0 %v2875_v33  ;;  %2681 = vmatpush3.bf16.msra.mxu1 %v2874_v34 }
  0xae   :  { %2682 = vmatprep.subr.bf16.mxu1 %v2876_v36 }
  0xb0   :  { %2661 = vmatpush3.bf16.msra.mxu0 %v2877_v37 }
  0xb1   :  { %2662 = vmatprep.subr.bf16.mxu0 %v2879_v38  ;;  %2683 = vmatpush3.bf16.msra.mxu1 %v2878_v39 }
  0xb2   :  { %2684 = vmatprep.subr.bf16.mxu1 %v2880_v40 }
  0xb4   :  { %2663 = vmatpush3.bf16.msra.mxu0 %v2881_v41 }
  0xb5   :  { %2664 = vmatprep.subr.bf16.mxu0 %v2883_v42  ;;  %2685 = vmatpush3.bf16.msra.mxu1 %v2882_v43 }
  0xb6   :  { %2686 = vmatprep.subr.bf16.mxu1 %v2884_v44 }
  0xb8   :  { %2665 = vmatpush3.bf16.msra.mxu0 %v2885_v45 }
  0xb9   :  { %2666 = vmatprep.subr.bf16.mxu0 %v2887_v46  ;;  %2687 = vmatpush3.bf16.msra.mxu1 %v2886_v47 }
  0xba   :  { %2688 = vmatprep.subr.bf16.mxu1 %v2888_v48 }
  0xbc   :  { %2667 = vmatpush3.bf16.msra.mxu0 %v2889_v49 }
  0xbd   :  { %2668 = vmatprep.subr.bf16.mxu0 %v2891_v50  ;;  %2689 = vmatpush3.bf16.msra.mxu1 %v2890_v51 }
  0xbe   :  { %2690 = vmatprep.subr.bf16.mxu1 %v2892_v52 }
  0xc0   :  { %2669 = vmatpush3.bf16.msra.mxu0 %v2893_v53 }
  0xc1   :  { %2691 = vmatpush3.bf16.msra.mxu1 %v2894_v56 }
  0xc3   :  { %2168 = vmatmul.mubr.bf16.vlgmr.msra.gmra.mxu0 %v540_v55 }
  0xc4   :  { %2208 = vmatmul.mubr.bf16.vlgmr.msra.gmra.mxu1 %v556_v58 }
  0xe3   :  { %v2450_v59 = vpop.f32.mrf.mxu0 }
  0xe4   :  { %v2472_v60 = vpop.f32.mrf.mxu1 }
  0xe5   :  { %v2451_v61 = vpop.f32.mrf.mxu0 }
  0xe6   :  { %v2452_v62 = vadd.f32 %v2451_v61, %v2450_v59  ;;  %v2473_v63 = vpop.f32.mrf.mxu1  ;;  %v2223_v59 = vsub.s32 0, %v3001_v30 }
  0xe7   :  { %v2453_v35 = vpop.f32.mrf.mxu0  ;;  %v2474_v0 = vadd.f32 %v2473_v63, %v2472_v60 }
  0xe8   :  { %v2475_v1 = vpop.f32.mrf.mxu1 }
  0xe9   :  { %v2454_v2 = vpop.f32.mrf.mxu0  ;;  %v1810_v3 = vadd.f32 %v2474_v0, %v2452_v62 }
  0xea   :  { %v2476_v4 = vpop.f32.mrf.mxu1 }
 0x103   :  { %v2494_v5 = vpop.f32.mrf.mxu0 }
 0x104   :  { %v2516_v6 = vpop.f32.mrf.mxu1 }
 0x105   :  { %v2495_v7 = vpop.f32.mrf.mxu0 }
 0x106   :  { %v2496_v8 = vadd.f32 %v2495_v7, %v2494_v5  ;;  %v2517_v9 = vpop.f32.mrf.mxu1 }
 0x107   :  { %v2497_v10 = vpop.f32.mrf.mxu0  ;;  %v2518_v12 = vadd.f32 %v2517_v9, %v2516_v6 }
 0x108   :  { %v1850_v11 = vadd.f32 %v2496_v8, %v1810_v3  ;;  %v2519_v13 = vpop.f32.mrf.mxu1 }
 0x109   :  { %v2498_v14 = vpop.f32.mrf.mxu0 }
 0x10a   :  { %v1890_v15 = vadd.f32 %v2518_v12, %v1850_v11  ;;  %v2520_v16 = vpop.f32.mrf.mxu1  ;;  %v2219_v54 = vpop.permute.xlu0 %2218 }
 0x10b   :  { %v2224_v3 = vrot.slane %v2219_v54, %v2223_v59 }
 0x10e   :  { %v2230_v0 = vpop.permute.xlu0 %2229 }
 0x10f   :  { %v2235_v7 = vrot.slane %v2230_v0, %v2223_v59 }
 0x123   :  { %v2538_v17 = vpop.f32.mrf.mxu0 }
 0x124   :  { %v2560_v18 = vpop.f32.mrf.mxu1 }
 0x125   :  { %v2539_v19 = vpop.f32.mrf.mxu0 }
 0x126   :  { %v2540_v20 = vadd.f32 %v2539_v19, %v2538_v17  ;;  %v2561_v21 = vpop.f32.mrf.mxu1 }
 0x127   :  { %v2541_v22 = vpop.f32.mrf.mxu0  ;;  %v2562_v24 = vadd.f32 %v2561_v21, %v2560_v18 }
 0x128   :  { %v1930_v23 = vadd.f32 %v2540_v20, %v1890_v15  ;;  %v2563_v25 = vpop.f32.mrf.mxu1 }
 0x129   :  { %v2542_v26 = vpop.f32.mrf.mxu0 }
 0x12a   :  { %v1970_v27 = vadd.f32 %v2562_v24, %v1930_v23  ;;  %v2564_v28 = vpop.f32.mrf.mxu1 }
 0x143   :  { %v2582_v29 = vpop.f32.mrf.mxu0 }
 0x144   :  { %v2604_v31 = vpop.f32.mrf.mxu1 }
 0x145   :  { %v2583_v32 = vpop.f32.mrf.mxu0 }
 0x146   :  { %v2605_v33 = vpop.f32.mrf.mxu1  ;;  %v2584_v47 = vadd.f32 %v2583_v32, %v2582_v29 }
 0x147   :  { %v2585_v34 = vpop.f32.mrf.mxu0  ;;  %v2606_v49 = vadd.f32 %v2605_v33, %v2604_v31 }
 0x148   :  { %v2607_v36 = vpop.f32.mrf.mxu1  ;;  %v2010_v48 = vadd.f32 %v2584_v47, %v1970_v27 }
 0x149   :  { %v2586_v37 = vpop.f32.mrf.mxu0 }
 0x14a   :  { %v2608_v38 = vpop.f32.mrf.mxu1  ;;  %v2050_v51 = vadd.f32 %v2606_v49, %v2010_v48 }
 0x163   :  { %v2626_v39 = vpop.f32.mrf.mxu0 }
 0x164   :  { %v2648_v40 = vpop.f32.mrf.mxu1 }
 0x165   :  { %v2627_v41 = vpop.f32.mrf.mxu0 }
 0x166   :  { %v2649_v42 = vpop.f32.mrf.mxu1  ;;  %v2628_v50 = vadd.f32 %v2627_v41, %v2626_v39 }
 0x167   :  { %v2629_v43 = vpop.f32.mrf.mxu0  ;;  %v2650_v53 = vadd.f32 %v2649_v42, %v2648_v40 }
 0x168   :  { %v2651_v44 = vpop.f32.mrf.mxu1  ;;  %v2090_v52 = vadd.f32 %v2628_v50, %v2050_v51 }
 0x169   :  { %v2630_v45 = vpop.f32.mrf.mxu0 }
 0x16a   :  { %v2652_v46 = vpop.f32.mrf.mxu1  ;;  %v2130_v58 = vadd.f32 %v2650_v53, %v2090_v52 }
 0x183   :  { %v2670_v55 = vpop.f32.mrf.mxu0 }
 0x184   :  { %v2692_v56 = vpop.f32.mrf.mxu1 }
 0x185   :  { %v2671_v57 = vpop.f32.mrf.mxu0 }
 0x186   :  { %v2672_v60 = vadd.f32 %v2671_v57, %v2670_v55  ;;  %v2693_v61 = vpop.f32.mrf.mxu1 }
 0x187   :  { %v2673_v62 = vpop.f32.mrf.mxu0  ;;  %v2694_v35 = vadd.f32 %v2693_v61, %v2692_v56 }
 0x188   :  { %v2170_v63 = vadd.f32 %v2672_v60, %v2130_v58  ;;  %v2695_v1 = vpop.f32.mrf.mxu1 }
 0x189   :  { %v2674_v2 = vpop.f32.mrf.mxu0 }
 0x18a   :  { %v2210_v4 = vadd.f32 %v2694_v35, %v2170_v63  ;;  %v2696_v5 = vpop.f32.mrf.mxu1 }
 0x18c   :  { %v2225_v6 = vmul.f32 %v2224_v3, %v2210_v4 }
 0x18e   :  { %v2236_v8 = vadd.f32 %v2235_v7, %v2225_v6 }
 0x190   :  { %2237 = vst [vmem:[%s3560_s4] sm:$0x1] %v2236_v8 }

</bundles_post_ra>
